<compile_context>
chip_gen: v6e
topology: v6e:2x2x1
jax: 0.10.0
libtpu: 0.0.40
codegen_flags: <defaults>
</compile_context>

<pallas_src>
import math

import jax
import jax.numpy as jnp
from jax.experimental import pallas as pl
from jax.experimental.pallas import tpu as pltpu


# ----------------------------------------------------------------------------
# small helpers
# ----------------------------------------------------------------------------
def _mm(a, b):  # a @ b with f32 accumulation on the MXU
    return jax.lax.dot_general(a, b, (((1,), (0,)), ((), ())),
                               preferred_element_type=jnp.float32)


def _round_up(x, m):
    return ((x + m - 1) // m) * m


def _tpu_hw_info():
    """Best-effort (physical VMEM bytes, tensorcores per chip)."""
    vmem_phys = 128 * 1024 * 1024
    n_tc = 1
    try:
        kind = jax.devices()[0].device_kind.lower()
    except Exception:
        kind = ""
    if "v7" in kind:
        vmem_phys, n_tc = 64 * 1024 * 1024, 2
    try:
        vmem_phys = int(pltpu.get_tpu_info().vmem_capacity_bytes)
    except Exception:
        pass
    return vmem_phys, n_tc


def _supports_single_buffering():
    try:
        pl.BlockSpec((8, 128), lambda i: (0, 0), pipeline_mode=pl.Buffered(1))
        return True
    except Exception:
        return False


def _replicated_spec(a, single_buffer):
    """Full-array BlockSpec with a constant index map (grid-invariant input)."""
    nd = a.ndim
    index_map = lambda i, _nd=nd: (0,) * _nd
    if single_buffer:
        try:  # constant index map -> double-buffering buys nothing; save VMEM
            return pl.BlockSpec(a.shape, index_map, pipeline_mode=pl.Buffered(1))
        except Exception:
            pass
    return pl.BlockSpec(a.shape, index_map)


def _estimate_vmem_bytes(TB, S, Dp, Dh, L, cdt_bytes, weight_buffers, feats_bytes):
    """Rough per-kernel VMEM need (I/O slabs + weights + f32 temporaries)."""
    R = TB * S
    io = 2 * (R * Dp * cdt_bytes          # item_e slab (double-buffered)
              + R * Dp * feats_bytes      # feats slab
              + R * 128 * 4)              # (TB,S,1) mask padded to a lane tile
    per_layer = (Dp * Dh + Dp * 2 * Dh + Dh * Dp + 2 * Dp * Dp) * cdt_bytes \
        + 10 * 8 * max(Dp, 2 * Dh) * 4    # biases / LN params (tile padded)
    weights = weight_buffers * (L * per_layer + S * Dp * 4 + 6 * 8 * Dp * 4)
    temps = (8 * R * Dp + 4 * R * Dh) * 4 + 4 * TB * S * S * 4
    return io + weights + temps


def _choose_tiling(B, S, Dp, Dh, L, cdt_bytes, weight_buffers, feats_bytes):
    """Per-generation TB (batch rows per grid step) and vmem_limit_bytes."""
    vmem_phys, n_tc = _tpu_hw_info()
    budget = int(vmem_phys * 0.6)         # headroom for Mosaic-internal scratch
    # v5e/v6e (single TC, 128 MiB): big slabs amortize per-step overhead and fill
    # the MXU M dim.  v7x (2 TCs, 64 MiB): smaller slabs, keep >= 2 grid tiles.
    row_target = 1024 if vmem_phys >= (96 << 20) else 256
    tb = 1
    for d in range(1, B + 1):
        if B % d:
            continue
        if d * S > max(row_target, S):
            continue
        if n_tc >= 2 and B > 1 and B // d < 2:
            continue                      # keep both v7x TensorCores busy
        if _estimate_vmem_bytes(d, S, Dp, Dh, L, cdt_bytes,
                                weight_buffers, feats_bytes) > budget:
            continue
        tb = d                            # largest fitting divisor -> best MXU M fill
    need = _estimate_vmem_bytes(tb, S, Dp, Dh, L, cdt_bytes,
                                weight_buffers, feats_bytes)
    vmem_limit = int(min(budget, max(need + (8 << 20), 24 << 20)))
    return tb, vmem_limit


# ----------------------------------------------------------------------------
# kernel
# ----------------------------------------------------------------------------
def _make_kernel(TB, S, D, Dp, H, hdp, L, eps, compute_dtype, approx_recip):
    R = TB * S
    Dh = H * hdp
    cdt = compute_dtype
    inv_d = 1.0 / D
    sqrt_d = float(D) ** 0.5

    def kernel(item_e_ref, pos_e_ref, mask_ref, lane_m_ref,
               a_ln_g_ref, a_ln_b_ref,
               wq_ref, bq_ref, wkv_ref, bkv_ref, wo_ref, bo_ref,
               f_ln_g_ref, f_ln_b_ref, w1_ref, b1_ref, w2_ref, b2_ref,
               last_g_ref, last_b_ref,
               feats_ref):
        lane_mask = lane_m_ref[...]                     # (1,Dp): 1 on real channels

        def layernorm(x, g, b):
            # LayerNorm over the real D channels of a Dp-padded slab (f32 stats).
            mu = jnp.sum(x, axis=-1, keepdims=True) * inv_d
            xc = (x - mu) * lane_mask                   # keep padded lanes at 0
            var = jnp.sum(xc * xc, axis=-1, keepdims=True) * inv_d
            return xc * jax.lax.rsqrt(var + eps) * g + b   # g,b are zero-padded

        # ---- embeddings + timeline mask (f32 elementwise) ----
        mask3 = mask_ref[...].astype(jnp.float32)                    # (TB,S,1)
        x3 = item_e_ref[...].astype(jnp.float32) * sqrt_d + pos_e_ref[...]
        x3 = x3 * mask3
        x = x3.reshape(R, Dp)                                        # (R,Dp)
        mask2 = mask3.reshape(R, 1)

        # additive causal bias, computed once per grid step
        row = jax.lax.broadcasted_iota(jnp.int32, (S, S), 0)
        col = jax.lax.broadcasted_iota(jnp.int32, (S, S), 1)
        attn_bias = jnp.where(col <= row, 0.0, -1e30).astype(jnp.float32)

        for l in range(L):
            # ---- self-attention (pre-LN on Q only, residual on LN(Q)) ----
            q_in = layernorm(x, a_ln_g_ref[l], a_ln_b_ref[l])        # (R,Dp)
            # 1/sqrt(hd) is pre-folded into wq/bq in the wrapper.
            q = _mm(q_in.astype(cdt), wq_ref[l]) + bq_ref[l]         # (R,Dh)
            kv = _mm(x.astype(cdt), wkv_ref[l]) + bkv_ref[l]         # (R,2*Dh) fused K|V
            qc = q.astype(cdt)
            kvc = kv.astype(cdt)

            mha = None
            for h in range(H):                                       # H is 1-2 typically
                c0 = h * hdp                                         # 128-aligned slices
                qh = qc[:, c0:c0 + hdp].reshape(TB, S, hdp)
                kh = kvc[:, c0:c0 + hdp].reshape(TB, S, hdp)
                vh = kvc[:, Dh + c0:Dh + c0 + hdp].reshape(TB, S, hdp)
                s = jnp.einsum('bqd,bkd->bqk', qh, kh,
                               preferred_element_type=jnp.float32)   # (TB,S,S)
                s = s + attn_bias
                s = s - jnp.max(s, axis=-1, keepdims=True)
                p = jnp.exp(s)
                inv = pl.reciprocal(jnp.sum(p, axis=-1, keepdims=True),
                                    approx=approx_recip)
                p = (p * inv).astype(cdt)
                ctx_h = jnp.einsum('bqk,bkd->bqd', p, vh,
                                   preferred_element_type=jnp.float32)  # (TB,S,hdp)
                # ctx @ Wo == sum_h ctx_h @ Wo_h  -> no ctx scratch / concat needed
                part = _mm(ctx_h.reshape(R, hdp).astype(cdt),
                           wo_ref[l, c0:c0 + hdp, :])                # (R,Dp)
                mha = part if mha is None else mha + part
            mha = mha + bo_ref[l]
            x = q_in + mha                                           # residual on LN(Q)

            # ---- point-wise feed-forward (1x1 convs == per-token linears) ----
            x_ln = layernorm(x, f_ln_g_ref[l], f_ln_b_ref[l])
            h1 = jnp.maximum(_mm(x_ln.astype(cdt), w1_ref[l]) + b1_ref[l], 0.0)
            y = _mm(h1.astype(cdt), w2_ref[l]) + b2_ref[l]
            x = (y + x_ln) * mask2                                   # timeline mask

        feats = layernorm(x, last_g_ref[...], last_b_ref[...])
        feats_ref[...] = feats.reshape(TB, S, Dp).astype(feats_ref.dtype)

    return kernel


# ----------------------------------------------------------------------------
# params / wrapper
# ----------------------------------------------------------------------------
def init_params(key, item_num, maxlen, D, L):
    ks = jax.random.split(key, 10)
    f32 = jnp.float32

    def nrm(k, shape, std):
        return (std * jax.random.normal(k, shape)).astype(f32)

    xav_std = math.sqrt(2.0 / (item_num + 1 + D))
    item_emb = nrm(ks[0], (item_num + 1, D), xav_std)
    item_emb = item_emb.at[0].set(0.0)                     # padding_idx=0
    return {
        'item_emb': item_emb,
        'pos_emb': nrm(ks[1], (maxlen, D), 1.0),
        'attn_ln_g': jnp.ones((L, D), f32),
        'attn_ln_b': jnp.zeros((L, D), f32),
        'in_proj_w': nrm(ks[2], (L, 3 * D, D), 0.1),       # torch (3D, D) layout
        'in_proj_b': nrm(ks[3], (L, 3 * D), 0.02),
        'out_proj_w': nrm(ks[4], (L, D, D), 0.1),          # (out, in)
        'out_proj_b': nrm(ks[5], (L, D), 0.02),
        'fwd_ln_g': jnp.ones((L, D), f32),
        'fwd_ln_b': jnp.zeros((L, D), f32),
        'conv1_w': nrm(ks[6], (L, D, D), 0.1),             # (out, in) 1x1 conv
        'conv1_b': nrm(ks[7], (L, D), 0.02),
        'conv2_w': nrm(ks[8], (L, D, D), 0.1),
        'conv2_b': nrm(ks[9], (L, D), 0.02),
        'last_ln_g': jnp.ones((D,), f32),
        'last_ln_b': jnp.zeros((D,), f32),
    }


def sasrec_forward(params, log_seqs, pos_seqs, neg_seqs, *, num_heads,
                   num_blocks, eps, compute_dtype=jnp.bfloat16,
                   feats_dtype=jnp.float32):
    f32 = jnp.float32
    cdt = compute_dtype
    B, S = log_seqs.shape
    D = params['item_emb'].shape[1]
    H, L = num_heads, num_blocks
    assert D % H == 0
    hd = D // H
    scale = 1.0 / math.sqrt(hd)

    # ---- lane padding: model dim -> Dp, per-head dim -> hdp (128 multiples) ----
    Dp = _round_up(max(D, 128), 128)
    hdp = _round_up(max(hd, 128), 128)
    Dh = H * hdp

    single_buffer = _supports_single_buffering()
    weight_buffers = 1 if single_buffer else 2
    cdt_bytes = jnp.dtype(cdt).itemsize
    feats_bytes = jnp.dtype(feats_dtype).itemsize
    TB, vmem_limit = _choose_tiling(B, S, Dp, Dh, L, cdt_bytes,
                                    weight_buffers, feats_bytes)

    # ---- glue: embedding gather + compact per-row mask (plain JAX) ----
    item_e = jnp.pad(params['item_emb'][log_seqs],
                     ((0, 0), (0, 0), (0, Dp - D))).astype(cdt)      # (B,S,Dp)
    pos_e = jnp.pad(params['pos_emb'][:S], ((0, 0), (0, Dp - D))).astype(f32)
    mask = (log_seqs != 0).astype(f32)[..., None]                    # (B,S,1)
    lane_mask = (jnp.arange(Dp) < D).astype(f32)[None, :]            # (1,Dp)

    # ---- glue: weight re-layout (head-padded, lane-padded, matmuls in cdt) ----
    in_w, in_b = params['in_proj_w'], params['in_proj_b']

    def head_pad_cols(w_t):        # (L, D_in, H*hd) -> (L, Dp, H*hdp)
        w4 = w_t.reshape(L, D, H, hd)
        w4 = jnp.pad(w4, ((0, 0), (0, Dp - D), (0, 0), (0, hdp - hd)))
        return w4.reshape(L, Dp, Dh)

    def head_pad_bias(b):          # (L, H*hd) -> (L, 1, H*hdp)
        b3 = jnp.pad(b.reshape(L, H, hd), ((0, 0), (0, 0), (0, hdp - hd)))
        return b3.reshape(L, 1, Dh)

    wq_t = jnp.transpose(in_w[:, :D, :], (0, 2, 1))
    wk_t = jnp.transpose(in_w[:, D:2 * D, :], (0, 2, 1))
    wv_t = jnp.transpose(in_w[:, 2 * D:, :], (0, 2, 1))
    # 1/sqrt(hd) folded into the Q projection once (wrapper side, free).
    wq = (head_pad_cols(wq_t) * scale).astype(cdt)
    bq = (head_pad_bias(in_b[:, :D]) * scale).astype(f32)
    wkv = jnp.concatenate([head_pad_cols(wk_t), head_pad_cols(wv_t)],
                          axis=-1).astype(cdt)                       # (L,Dp,2Dh)
    bkv = jnp.concatenate([head_pad_bias(in_b[:, D:2 * D]),
                           head_pad_bias(in_b[:, 2 * D:])], axis=-1).astype(f32)

    wo_t = jnp.transpose(params['out_proj_w'], (0, 2, 1))            # (L, H*hd, D)
    wo4 = jnp.pad(wo_t.reshape(L, H, hd, D),
                  ((0, 0), (0, 0), (0, hdp - hd), (0, Dp - D)))
    wo = wo4.reshape(L, Dh, Dp).astype(cdt)
    bo = jnp.pad(params['out_proj_b'], ((0, 0), (0, Dp - D)))[:, None, :].astype(f32)

    def pad_mat(w):                # (L, out, in) -> (L, Dp_in, Dp_out)
        wt = jnp.transpose(w, (0, 2, 1))
        return jnp.pad(wt, ((0, 0), (0, Dp - D), (0, Dp - D)))

    def pad_vec(v):                # (L, D) -> (L, 1, Dp) zero-padded
        return jnp.pad(v, ((0, 0), (0, Dp - D)))[:, None, :]

    w1 = pad_mat(params['conv1_w']).astype(cdt)
    b1 = pad_vec(params['conv1_b']).astype(f32)
    w2 = pad_mat(params['conv2_w']).astype(cdt)
    b2 = pad_vec(params['conv2_b']).astype(f32)
    a_ln_g = pad_vec(params['attn_ln_g']).astype(f32)   # zero pad keeps pad lanes 0
    a_ln_b = pad_vec(params['attn_ln_b']).astype(f32)
    f_ln_g = pad_vec(params['fwd_ln_g']).astype(f32)
    f_ln_b = pad_vec(params['fwd_ln_b']).astype(f32)
    last_g = jnp.pad(params['last_ln_g'], (0, Dp - D))[None, :].astype(f32)
    last_b = jnp.pad(params['last_ln_b'], (0, Dp - D))[None, :].astype(f32)

    weights = [a_ln_g, a_ln_b, wq, bq, wkv, bkv, wo, bo,
               f_ln_g, f_ln_b, w1, b1, w2, b2, last_g, last_b]

    seq_spec = pl.BlockSpec((TB, S, Dp), lambda i: (i, 0, 0))
    mask_spec = pl.BlockSpec((TB, S, 1), lambda i: (i, 0, 0))
    out_spec = pl.BlockSpec((TB, S, Dp), lambda i: (i, 0, 0))
    in_specs = ([seq_spec, _replicated_spec(pos_e, single_buffer), mask_spec,
                 _replicated_spec(lane_mask, single_buffer)]
                + [_replicated_spec(w, single_buffer) for w in weights])

    kernel = _make_kernel(TB, S, D, Dp, H, hdp, L, eps, cdt,
                          approx_recip=(cdt != jnp.float32))

    feats_p = pl.pallas_call(
        kernel,
        out_shape=jax.ShapeDtypeStruct((B, S, Dp), feats_dtype),
        grid=(B // TB,),
        in_specs=in_specs,
        out_specs=out_spec,
        compiler_params=pltpu.CompilerParams(
            dimension_semantics=("parallel",),
            vmem_limit_bytes=vmem_limit),
    )(item_e, pos_e, mask, lane_mask, *weights)

    # pos/neg logits in the wrapper (XLA fuses the slice + embedding gathers)
    feats = feats_p[..., :D].astype(f32)
    pos_logits = jnp.sum(feats * params['item_emb'][pos_seqs], axis=-1)
    neg_logits = jnp.sum(feats * params['item_emb'][neg_seqs], axis=-1)
    return pos_logits, neg_logits


# ----------------------------------------------------------------------------
# pure-JAX reference (mirrors the PyTorch forward, eval mode)
# ----------------------------------------------------------------------------
def _layernorm_ref(x, g, b, eps):
    mu = jnp.mean(x, axis=-1, keepdims=True)
    xc = x - mu
    var = jnp.mean(xc * xc, axis=-1, keepdims=True)
    return xc * jax.lax.rsqrt(var + eps) * g + b


def sasrec_reference(params, log_seqs, pos_seqs, neg_seqs, *, num_heads,
                     num_blocks, eps):
    B, S = log_seqs.shape
    D = params['item_emb'].shape[1]
    H, L = num_heads, num_blocks
    hd = D // H
    x = params['item_emb'][log_seqs] * (D ** 0.5) + params['pos_emb'][None, :S, :]
    mask = (log_seqs != 0).astype(jnp.float32)[..., None]
    x = x * mask
    allow = jnp.tril(jnp.ones((S, S), bool))
    for l in range(L):
        q_in = _layernorm_ref(x, params['attn_ln_g'][l], params['attn_ln_b'][l], eps)
        w_in, b_in = params['in_proj_w'][l], params['in_proj_b'][l]
        q = q_in @ w_in[:D].T + b_in[:D]
        k = x @ w_in[D:2 * D].T + b_in[D:2 * D]
        v = x @ w_in[2 * D:].T + b_in[2 * D:]
        heads = []
        for h in range(H):
            sl = slice(h * hd, (h + 1) * hd)
            s = jnp.einsum('bqd,bkd->bqk', q[..., sl] / math.sqrt(hd), k[..., sl])
            s = jnp.where(allow[None], s, -1e30)
            s = s - jnp.max(s, axis=-1, keepdims=True)
            p = jnp.exp(s)
            p = p / jnp.sum(p, axis=-1, keepdims=True)
            heads.append(jnp.einsum('bqk,bkd->bqd', p, v[..., sl]))
        ctx = jnp.concatenate(heads, axis=-1)
        mha = ctx @ params['out_proj_w'][l].T + params['out_proj_b'][l]
        x = q_in + mha
        x_ln = _layernorm_ref(x, params['fwd_ln_g'][l], params['fwd_ln_b'][l], eps)
        h1 = jax.nn.relu(x_ln @ params['conv1_w'][l].T + params['conv1_b'][l])
        y = h1 @ params['conv2_w'][l].T + params['conv2_b'][l]
        x = (y + x_ln) * mask
    feats = _layernorm_ref(x, params['last_ln_g'], params['last_ln_b'], eps)
    pos_logits = jnp.sum(feats * params['item_emb'][pos_seqs], axis=-1)
    neg_logits = jnp.sum(feats * params['item_emb'][neg_seqs], axis=-1)
    return pos_logits, neg_logits


if __name__ == "__main__":
    B, S, D, H, L = 2, 8, 32, 2, 2          # batch, maxlen, embedding_dim, heads, blocks
    item_num = 50
    eps = 1e-8
    key = jax.random.PRNGKey(0)
    kp, kl, kpos, kneg = jax.random.split(key, 4)
    params = init_params(kp, item_num, S, D, L)

    log_seqs = jax.random.randint(kl, (B, S), 1, item_num + 1)
    log_seqs = log_seqs.at[:, :2].set(0)    # padding to exercise the timeline mask
    pos_seqs = jax.random.randint(kpos, (B, S), 1, item_num + 1)
    neg_seqs = jax.random.randint(kneg, (B, S), 1, item_num + 1)

    ref_pos, ref_neg = sasrec_reference(
        params, log_seqs, pos_seqs, neg_seqs,
        num_heads=H, num_blocks=L, eps=eps)

    # --- f32 compute path: tight check against the reference semantics ---
    pos_logits, neg_logits = sasrec_forward(
        params, log_seqs, pos_seqs, neg_seqs,
        num_heads=H, num_blocks=L, eps=eps, compute_dtype=jnp.float32)
    jax.block_until_ready((pos_logits, neg_logits))
    assert pos_logits.shape == (B, S) and neg_logits.shape == (B, S)
    assert jnp.allclose(pos_logits, ref_pos, atol=1e-4, rtol=1e-4)
    assert jnp.allclose(neg_logits, ref_neg, atol=1e-4, rtol=1e-4)

    # --- bf16 MXU path (production default): loose numerical check ---
    pos_bf, neg_bf = sasrec_forward(
        params, log_seqs, pos_seqs, neg_seqs,
        num_heads=H, num_blocks=L, eps=eps, compute_dtype=jnp.bfloat16)
    jax.block_until_ready((pos_bf, neg_bf))
    assert pos_bf.shape == (B, S) and neg_bf.shape == (B, S)
    assert jnp.allclose(pos_bf, ref_pos, atol=0.2, rtol=0.2)
    assert jnp.allclose(neg_bf, ref_neg, atol=0.2, rtol=0.2)

    print("KERNEL_OK")
</pallas_src>

<mosaic_0001>
module attributes {stable_mosaic.version = 11 : i64} {
  func.func @kernel(%arg0: i32, %arg1: memref<2x8x128xf32, #tpu.memory_space<vmem>>, %arg2: memref<8x128xf32, #tpu.memory_space<vmem>>, %arg3: memref<2x8x1xf32, #tpu.memory_space<vmem>>, %arg4: memref<1x128xf32, #tpu.memory_space<vmem>>, %arg5: memref<2x1x128xf32, #tpu.memory_space<vmem>>, %arg6: memref<2x1x128xf32, #tpu.memory_space<vmem>>, %arg7: memref<2x128x256xf32, #tpu.memory_space<vmem>>, %arg8: memref<2x1x256xf32, #tpu.memory_space<vmem>>, %arg9: memref<2x128x512xf32, #tpu.memory_space<vmem>>, %arg10: memref<2x1x512xf32, #tpu.memory_space<vmem>>, %arg11: memref<2x256x128xf32, #tpu.memory_space<vmem>>, %arg12: memref<2x1x128xf32, #tpu.memory_space<vmem>>, %arg13: memref<2x1x128xf32, #tpu.memory_space<vmem>>, %arg14: memref<2x1x128xf32, #tpu.memory_space<vmem>>, %arg15: memref<2x128x128xf32, #tpu.memory_space<vmem>>, %arg16: memref<2x1x128xf32, #tpu.memory_space<vmem>>, %arg17: memref<2x128x128xf32, #tpu.memory_space<vmem>>, %arg18: memref<2x1x128xf32, #tpu.memory_space<vmem>>, %arg19: memref<1x128xf32, #tpu.memory_space<vmem>>, %arg20: memref<1x128xf32, #tpu.memory_space<vmem>>, %arg21: memref<2x8x128xf32, #tpu.memory_space<vmem>>) attributes {dimension_semantics = [#tpu.dimension_semantics<parallel>], iteration_bounds = array<i64: 1>, scalar_prefetch = 0 : i64, scratch_operands = 0 : i64, tpu.core_type = #tpu.core_type<tc>, window_params = [{transform_indices = @transform_0, window_bounds = array<i64: 2, 8, 128>}, {pipeline_mode = #tpu.pipeline_mode<synchronous>, transform_indices = @transform_1, window_bounds = array<i64: 8, 128>}, {transform_indices = @transform_2, window_bounds = array<i64: 2, 8, 1>}, {pipeline_mode = #tpu.pipeline_mode<synchronous>, transform_indices = @transform_3, window_bounds = array<i64: 1, 128>}, {pipeline_mode = #tpu.pipeline_mode<synchronous>, transform_indices = @transform_4, window_bounds = array<i64: 2, 1, 128>}, {pipeline_mode = #tpu.pipeline_mode<synchronous>, transform_indices = @transform_5, window_bounds = array<i64: 2, 1, 128>}, {pipeline_mode = #tpu.pipeline_mode<synchronous>, transform_indices = @transform_6, window_bounds = array<i64: 2, 128, 256>}, {pipeline_mode = #tpu.pipeline_mode<synchronous>, transform_indices = @transform_7, window_bounds = array<i64: 2, 1, 256>}, {pipeline_mode = #tpu.pipeline_mode<synchronous>, transform_indices = @transform_8, window_bounds = array<i64: 2, 128, 512>}, {pipeline_mode = #tpu.pipeline_mode<synchronous>, transform_indices = @transform_9, window_bounds = array<i64: 2, 1, 512>}, {pipeline_mode = #tpu.pipeline_mode<synchronous>, transform_indices = @transform_10, window_bounds = array<i64: 2, 256, 128>}, {pipeline_mode = #tpu.pipeline_mode<synchronous>, transform_indices = @transform_11, window_bounds = array<i64: 2, 1, 128>}, {pipeline_mode = #tpu.pipeline_mode<synchronous>, transform_indices = @transform_12, window_bounds = array<i64: 2, 1, 128>}, {pipeline_mode = #tpu.pipeline_mode<synchronous>, transform_indices = @transform_13, window_bounds = array<i64: 2, 1, 128>}, {pipeline_mode = #tpu.pipeline_mode<synchronous>, transform_indices = @transform_14, window_bounds = array<i64: 2, 128, 128>}, {pipeline_mode = #tpu.pipeline_mode<synchronous>, transform_indices = @transform_15, window_bounds = array<i64: 2, 1, 128>}, {pipeline_mode = #tpu.pipeline_mode<synchronous>, transform_indices = @transform_16, window_bounds = array<i64: 2, 128, 128>}, {pipeline_mode = #tpu.pipeline_mode<synchronous>, transform_indices = @transform_17, window_bounds = array<i64: 2, 1, 128>}, {pipeline_mode = #tpu.pipeline_mode<synchronous>, transform_indices = @transform_18, window_bounds = array<i64: 1, 128>}, {pipeline_mode = #tpu.pipeline_mode<synchronous>, transform_indices = @transform_19, window_bounds = array<i64: 1, 128>}, {transform_indices = @transform_20, window_bounds = array<i64: 2, 8, 128>}]} {
    %c0 = arith.constant 0 : index
    %c0_0 = arith.constant 0 : index
    %0 = vector.load %arg4[%c0, %c0_0] : memref<1x128xf32, #tpu.memory_space<vmem>>, vector<1x128xf32>
    %c0_1 = arith.constant 0 : index
    %c0_2 = arith.constant 0 : index
    %c0_3 = arith.constant 0 : index
    %1 = vector.load %arg3[%c0_1, %c0_2, %c0_3] : memref<2x8x1xf32, #tpu.memory_space<vmem>>, vector<2x8x1xf32>
    %c0_4 = arith.constant 0 : index
    %c0_5 = arith.constant 0 : index
    %c0_6 = arith.constant 0 : index
    %2 = vector.load %arg1[%c0_4, %c0_5, %c0_6] : memref<2x8x128xf32, #tpu.memory_space<vmem>>, vector<2x8x128xf32>
    %cst = arith.constant 5.65685415 : f32
    %3 = vector.broadcast %cst : f32 to vector<2x8x128xf32>
    %4 = arith.mulf %2, %3 : vector<2x8x128xf32>
    %c0_7 = arith.constant 0 : index
    %c0_8 = arith.constant 0 : index
    %5 = vector.load %arg2[%c0_7, %c0_8] : memref<8x128xf32, #tpu.memory_space<vmem>>, vector<8x128xf32>
    %6 = vector.shape_cast %5 : vector<8x128xf32> to vector<1x8x128xf32>
    %7 = vector.broadcast %6 : vector<1x8x128xf32> to vector<2x8x128xf32>
    %8 = arith.addf %4, %7 : vector<2x8x128xf32>
    %9 = vector.broadcast %1 : vector<2x8x1xf32> to vector<2x8x128xf32>
    %10 = arith.mulf %8, %9 : vector<2x8x128xf32>
    %11 = vector.shape_cast %10 : vector<2x8x128xf32> to vector<16x128xf32>
    %12 = vector.shape_cast %1 : vector<2x8x1xf32> to vector<16x1xf32>
    %13 = tpu.iota {dimensions = array<i32: 0>} : vector<8x8xi32>
    %14 = tpu.iota {dimensions = array<i32: 1>} : vector<8x8xi32>
    %15 = arith.cmpi sle, %14, %13 : vector<8x8xi32>
    %cst_9 = arith.constant 0.000000e+00 : f32
    %cst_10 = arith.constant -1.000000e+30 : f32
    %16 = vector.broadcast %cst_9 : f32 to vector<8x8xf32>
    %17 = vector.broadcast %cst_10 : f32 to vector<8x8xf32>
    %18 = arith.select %15, %16, %17 : vector<8x8xi1>, vector<8x8xf32>
    %c0_11 = arith.constant 0 : index
    %c0_12 = arith.constant 0 : index
    %c0_13 = arith.constant 0 : index
    %19 = vector.load %arg5[%c0_11, %c0_12, %c0_13] : memref<2x1x128xf32, #tpu.memory_space<vmem>>, vector<1x1x128xf32>
    %20 = vector.shape_cast %19 : vector<1x1x128xf32> to vector<1x128xf32>
    %c0_14 = arith.constant 0 : index
    %c0_15 = arith.constant 0 : index
    %c0_16 = arith.constant 0 : index
    %21 = vector.load %arg6[%c0_14, %c0_15, %c0_16] : memref<2x1x128xf32, #tpu.memory_space<vmem>>, vector<1x1x128xf32>
    %22 = vector.shape_cast %21 : vector<1x1x128xf32> to vector<1x128xf32>
    %cst_17 = arith.constant dense<0.000000e+00> : vector<16xf32>
    %23 = vector.multi_reduction <add>, %11, %cst_17 [1] : vector<16x128xf32> to vector<16xf32>
    %24 = vector.shape_cast %23 : vector<16xf32> to vector<16x1xf32>
    %cst_18 = arith.constant 3.125000e-02 : f32
    %25 = vector.broadcast %cst_18 : f32 to vector<16x1xf32>
    %26 = arith.mulf %24, %25 : vector<16x1xf32>
    %27 = vector.broadcast %26 : vector<16x1xf32> to vector<16x128xf32>
    %28 = arith.subf %11, %27 : vector<16x128xf32>
    %29 = vector.broadcast %0 : vector<1x128xf32> to vector<16x128xf32>
    %30 = arith.mulf %28, %29 : vector<16x128xf32>
    %31 = arith.mulf %30, %30 : vector<16x128xf32>
    %cst_19 = arith.constant dense<0.000000e+00> : vector<16xf32>
    %32 = vector.multi_reduction <add>, %31, %cst_19 [1] : vector<16x128xf32> to vector<16xf32>
    %33 = vector.shape_cast %32 : vector<16xf32> to vector<16x1xf32>
    %cst_20 = arith.constant 3.125000e-02 : f32
    %34 = vector.broadcast %cst_20 : f32 to vector<16x1xf32>
    %35 = arith.mulf %33, %34 : vector<16x1xf32>
    %cst_21 = arith.constant 9.99999993E-9 : f32
    %36 = vector.broadcast %cst_21 : f32 to vector<16x1xf32>
    %37 = arith.addf %35, %36 : vector<16x1xf32>
    %38 = math.rsqrt %37 : vector<16x1xf32>
    %39 = vector.broadcast %38 : vector<16x1xf32> to vector<16x128xf32>
    %40 = arith.mulf %30, %39 : vector<16x128xf32>
    %41 = vector.broadcast %20 : vector<1x128xf32> to vector<16x128xf32>
    %42 = arith.mulf %40, %41 : vector<16x128xf32>
    %43 = vector.broadcast %22 : vector<1x128xf32> to vector<16x128xf32>
    %44 = arith.addf %42, %43 : vector<16x128xf32>
    %c0_22 = arith.constant 0 : index
    %c0_23 = arith.constant 0 : index
    %c0_24 = arith.constant 0 : index
    %45 = vector.load %arg7[%c0_22, %c0_23, %c0_24] : memref<2x128x256xf32, #tpu.memory_space<vmem>>, vector<1x128x256xf32>
    %46 = vector.shape_cast %45 : vector<1x128x256xf32> to vector<128x256xf32>
    %cst_25 = arith.constant dense<0.000000e+00> : vector<16x256xf32>
    %47 = tpu.matmul %44, %46, %cst_25 {dimension_numbers = #tpu.dot_dimension_numbers<[1], [0], [0], [1], [0, 0, 1, 1], [], []>} : vector<16x128xf32>, vector<128x256xf32>, vector<16x256xf32> -> vector<16x256xf32>
    %c0_26 = arith.constant 0 : index
    %c0_27 = arith.constant 0 : index
    %c0_28 = arith.constant 0 : index
    %48 = vector.load %arg8[%c0_26, %c0_27, %c0_28] : memref<2x1x256xf32, #tpu.memory_space<vmem>>, vector<1x1x256xf32>
    %49 = vector.shape_cast %48 : vector<1x1x256xf32> to vector<1x256xf32>
    %50 = vector.broadcast %49 : vector<1x256xf32> to vector<16x256xf32>
    %51 = arith.addf %47, %50 : vector<16x256xf32>
    %c0_29 = arith.constant 0 : index
    %c0_30 = arith.constant 0 : index
    %c0_31 = arith.constant 0 : index
    %52 = vector.load %arg9[%c0_29, %c0_30, %c0_31] : memref<2x128x512xf32, #tpu.memory_space<vmem>>, vector<1x128x512xf32>
    %53 = vector.shape_cast %52 : vector<1x128x512xf32> to vector<128x512xf32>
    %cst_32 = arith.constant dense<0.000000e+00> : vector<16x512xf32>
    %54 = tpu.matmul %11, %53, %cst_32 {dimension_numbers = #tpu.dot_dimension_numbers<[1], [0], [0], [1], [0, 0, 1, 1], [], []>} : vector<16x128xf32>, vector<128x512xf32>, vector<16x512xf32> -> vector<16x512xf32>
    %c0_33 = arith.constant 0 : index
    %c0_34 = arith.constant 0 : index
    %c0_35 = arith.constant 0 : index
    %55 = vector.load %arg10[%c0_33, %c0_34, %c0_35] : memref<2x1x512xf32, #tpu.memory_space<vmem>>, vector<1x1x512xf32>
    %56 = vector.shape_cast %55 : vector<1x1x512xf32> to vector<1x512xf32>
    %57 = vector.broadcast %56 : vector<1x512xf32> to vector<16x512xf32>
    %58 = arith.addf %54, %57 : vector<16x512xf32>
    %59 = vector.extract_strided_slice %51 {offsets = [0, 0], sizes = [16, 128], strides = [1, 1]} : vector<16x256xf32> to vector<16x128xf32>
    %60 = vector.shape_cast %59 : vector<16x128xf32> to vector<2x8x128xf32>
    %61 = vector.extract_strided_slice %58 {offsets = [0, 0], sizes = [16, 128], strides = [1, 1]} : vector<16x512xf32> to vector<16x128xf32>
    %62 = vector.shape_cast %61 : vector<16x128xf32> to vector<2x8x128xf32>
    %63 = vector.extract_strided_slice %58 {offsets = [0, 256], sizes = [16, 128], strides = [1, 1]} : vector<16x512xf32> to vector<16x128xf32>
    %64 = vector.shape_cast %63 : vector<16x128xf32> to vector<2x8x128xf32>
    "tpu.trace_start"() <{level = 10 : i32, message = "bqd,bkd->bqk"}> : () -> ()
    %cst_36 = arith.constant dense<0.000000e+00> : vector<2x8x8xf32>
    %65 = tpu.matmul %60, %62, %cst_36 {dimension_numbers = #tpu.dot_dimension_numbers<[2], [2], [1], [1], [0, 0, 0, 1, 1, 1], [0], [0]>} : vector<2x8x128xf32>, vector<2x8x128xf32>, vector<2x8x8xf32> -> vector<2x8x8xf32>
    "tpu.trace_stop"() : () -> ()
    %66 = vector.shape_cast %18 : vector<8x8xf32> to vector<1x8x8xf32>
    %67 = vector.broadcast %66 : vector<1x8x8xf32> to vector<2x8x8xf32>
    %68 = arith.addf %65, %67 : vector<2x8x8xf32>
    %cst_37 = arith.constant dense<0xFF800000> : vector<2x8xf32>
    %69 = vector.multi_reduction <maximumf>, %68, %cst_37 [2] : vector<2x8x8xf32> to vector<2x8xf32>
    %70 = vector.shape_cast %69 : vector<2x8xf32> to vector<2x8x1xf32>
    %71 = vector.broadcast %70 : vector<2x8x1xf32> to vector<2x8x8xf32>
    %72 = arith.subf %68, %71 : vector<2x8x8xf32>
    %73 = math.exp %72 : vector<2x8x8xf32>
    %cst_38 = arith.constant dense<0.000000e+00> : vector<2x8xf32>
    %74 = vector.multi_reduction <add>, %73, %cst_38 [2] : vector<2x8x8xf32> to vector<2x8xf32>
    %75 = vector.shape_cast %74 : vector<2x8xf32> to vector<2x8x1xf32>
    %76 = tpu.reciprocal %75 : vector<2x8x1xf32> -> vector<2x8x1xf32>
    %77 = vector.broadcast %76 : vector<2x8x1xf32> to vector<2x8x8xf32>
    %78 = arith.mulf %73, %77 : vector<2x8x8xf32>
    "tpu.trace_start"() <{level = 10 : i32, message = "bqk,bkd->bqd"}> : () -> ()
    %cst_39 = arith.constant dense<0.000000e+00> : vector<2x8x128xf32>
    %79 = tpu.matmul %78, %64, %cst_39 {dimension_numbers = #tpu.dot_dimension_numbers<[2], [1], [1], [2], [0, 0, 0, 1, 1, 2], [0], [0]>} : vector<2x8x8xf32>, vector<2x8x128xf32>, vector<2x8x128xf32> -> vector<2x8x128xf32>
    "tpu.trace_stop"() : () -> ()
    %80 = vector.shape_cast %79 : vector<2x8x128xf32> to vector<16x128xf32>
    %c0_40 = arith.constant 0 : index
    %c0_41 = arith.constant 0 : index
    %c0_42 = arith.constant 0 : index
    %81 = vector.load %arg11[%c0_40, %c0_41, %c0_42] : memref<2x256x128xf32, #tpu.memory_space<vmem>>, vector<1x128x128xf32>
    %82 = vector.shape_cast %81 : vector<1x128x128xf32> to vector<128x128xf32>
    %cst_43 = arith.constant dense<0.000000e+00> : vector<16x128xf32>
    %83 = tpu.matmul %80, %82, %cst_43 {dimension_numbers = #tpu.dot_dimension_numbers<[1], [0], [0], [1], [0, 0, 1, 1], [], []>} : vector<16x128xf32>, vector<128x128xf32>, vector<16x128xf32> -> vector<16x128xf32>
    %84 = vector.extract_strided_slice %51 {offsets = [0, 128], sizes = [16, 128], strides = [1, 1]} : vector<16x256xf32> to vector<16x128xf32>
    %85 = vector.shape_cast %84 : vector<16x128xf32> to vector<2x8x128xf32>
    %86 = vector.extract_strided_slice %58 {offsets = [0, 128], sizes = [16, 128], strides = [1, 1]} : vector<16x512xf32> to vector<16x128xf32>
    %87 = vector.shape_cast %86 : vector<16x128xf32> to vector<2x8x128xf32>
    %88 = vector.extract_strided_slice %58 {offsets = [0, 384], sizes = [16, 128], strides = [1, 1]} : vector<16x512xf32> to vector<16x128xf32>
    %89 = vector.shape_cast %88 : vector<16x128xf32> to vector<2x8x128xf32>
    "tpu.trace_start"() <{level = 10 : i32, message = "bqd,bkd->bqk"}> : () -> ()
    %cst_44 = arith.constant dense<0.000000e+00> : vector<2x8x8xf32>
    %90 = tpu.matmul %85, %87, %cst_44 {dimension_numbers = #tpu.dot_dimension_numbers<[2], [2], [1], [1], [0, 0, 0, 1, 1, 1], [0], [0]>} : vector<2x8x128xf32>, vector<2x8x128xf32>, vector<2x8x8xf32> -> vector<2x8x8xf32>
    "tpu.trace_stop"() : () -> ()
    %91 = vector.shape_cast %18 : vector<8x8xf32> to vector<1x8x8xf32>
    %92 = vector.broadcast %91 : vector<1x8x8xf32> to vector<2x8x8xf32>
    %93 = arith.addf %90, %92 : vector<2x8x8xf32>
    %cst_45 = arith.constant dense<0xFF800000> : vector<2x8xf32>
    %94 = vector.multi_reduction <maximumf>, %93, %cst_45 [2] : vector<2x8x8xf32> to vector<2x8xf32>
    %95 = vector.shape_cast %94 : vector<2x8xf32> to vector<2x8x1xf32>
    %96 = vector.broadcast %95 : vector<2x8x1xf32> to vector<2x8x8xf32>
    %97 = arith.subf %93, %96 : vector<2x8x8xf32>
    %98 = math.exp %97 : vector<2x8x8xf32>
    %cst_46 = arith.constant dense<0.000000e+00> : vector<2x8xf32>
    %99 = vector.multi_reduction <add>, %98, %cst_46 [2] : vector<2x8x8xf32> to vector<2x8xf32>
    %100 = vector.shape_cast %99 : vector<2x8xf32> to vector<2x8x1xf32>
    %101 = tpu.reciprocal %100 : vector<2x8x1xf32> -> vector<2x8x1xf32>
    %102 = vector.broadcast %101 : vector<2x8x1xf32> to vector<2x8x8xf32>
    %103 = arith.mulf %98, %102 : vector<2x8x8xf32>
    "tpu.trace_start"() <{level = 10 : i32, message = "bqk,bkd->bqd"}> : () -> ()
    %cst_47 = arith.constant dense<0.000000e+00> : vector<2x8x128xf32>
    %104 = tpu.matmul %103, %89, %cst_47 {dimension_numbers = #tpu.dot_dimension_numbers<[2], [1], [1], [2], [0, 0, 0, 1, 1, 2], [0], [0]>} : vector<2x8x8xf32>, vector<2x8x128xf32>, vector<2x8x128xf32> -> vector<2x8x128xf32>
    "tpu.trace_stop"() : () -> ()
    %105 = vector.shape_cast %104 : vector<2x8x128xf32> to vector<16x128xf32>
    %c0_48 = arith.constant 0 : index
    %c128 = arith.constant 128 : index
    %c0_49 = arith.constant 0 : index
    %106 = vector.load %arg11[%c0_48, %c128, %c0_49] : memref<2x256x128xf32, #tpu.memory_space<vmem>>, vector<1x128x128xf32>
    %107 = vector.shape_cast %106 : vector<1x128x128xf32> to vector<128x128xf32>
    %cst_50 = arith.constant dense<0.000000e+00> : vector<16x128xf32>
    %108 = tpu.matmul %105, %107, %cst_50 {dimension_numbers = #tpu.dot_dimension_numbers<[1], [0], [0], [1], [0, 0, 1, 1], [], []>} : vector<16x128xf32>, vector<128x128xf32>, vector<16x128xf32> -> vector<16x128xf32>
    %109 = arith.addf %83, %108 : vector<16x128xf32>
    %c0_51 = arith.constant 0 : index
    %c0_52 = arith.constant 0 : index
    %c0_53 = arith.constant 0 : index
    %110 = vector.load %arg12[%c0_51, %c0_52, %c0_53] : memref<2x1x128xf32, #tpu.memory_space<vmem>>, vector<1x1x128xf32>
    %111 = vector.shape_cast %110 : vector<1x1x128xf32> to vector<1x128xf32>
    %112 = vector.broadcast %111 : vector<1x128xf32> to vector<16x128xf32>
    %113 = arith.addf %109, %112 : vector<16x128xf32>
    %114 = arith.addf %44, %113 : vector<16x128xf32>
    %c0_54 = arith.constant 0 : index
    %c0_55 = arith.constant 0 : index
    %c0_56 = arith.constant 0 : index
    %115 = vector.load %arg13[%c0_54, %c0_55, %c0_56] : memref<2x1x128xf32, #tpu.memory_space<vmem>>, vector<1x1x128xf32>
    %116 = vector.shape_cast %115 : vector<1x1x128xf32> to vector<1x128xf32>
    %c0_57 = arith.constant 0 : index
    %c0_58 = arith.constant 0 : index
    %c0_59 = arith.constant 0 : index
    %117 = vector.load %arg14[%c0_57, %c0_58, %c0_59] : memref<2x1x128xf32, #tpu.memory_space<vmem>>, vector<1x1x128xf32>
    %118 = vector.shape_cast %117 : vector<1x1x128xf32> to vector<1x128xf32>
    %cst_60 = arith.constant dense<0.000000e+00> : vector<16xf32>
    %119 = vector.multi_reduction <add>, %114, %cst_60 [1] : vector<16x128xf32> to vector<16xf32>
    %120 = vector.shape_cast %119 : vector<16xf32> to vector<16x1xf32>
    %cst_61 = arith.constant 3.125000e-02 : f32
    %121 = vector.broadcast %cst_61 : f32 to vector<16x1xf32>
    %122 = arith.mulf %120, %121 : vector<16x1xf32>
    %123 = vector.broadcast %122 : vector<16x1xf32> to vector<16x128xf32>
    %124 = arith.subf %114, %123 : vector<16x128xf32>
    %125 = vector.broadcast %0 : vector<1x128xf32> to vector<16x128xf32>
    %126 = arith.mulf %124, %125 : vector<16x128xf32>
    %127 = arith.mulf %126, %126 : vector<16x128xf32>
    %cst_62 = arith.constant dense<0.000000e+00> : vector<16xf32>
    %128 = vector.multi_reduction <add>, %127, %cst_62 [1] : vector<16x128xf32> to vector<16xf32>
    %129 = vector.shape_cast %128 : vector<16xf32> to vector<16x1xf32>
    %cst_63 = arith.constant 3.125000e-02 : f32
    %130 = vector.broadcast %cst_63 : f32 to vector<16x1xf32>
    %131 = arith.mulf %129, %130 : vector<16x1xf32>
    %cst_64 = arith.constant 9.99999993E-9 : f32
    %132 = vector.broadcast %cst_64 : f32 to vector<16x1xf32>
    %133 = arith.addf %131, %132 : vector<16x1xf32>
    %134 = math.rsqrt %133 : vector<16x1xf32>
    %135 = vector.broadcast %134 : vector<16x1xf32> to vector<16x128xf32>
    %136 = arith.mulf %126, %135 : vector<16x128xf32>
    %137 = vector.broadcast %116 : vector<1x128xf32> to vector<16x128xf32>
    %138 = arith.mulf %136, %137 : vector<16x128xf32>
    %139 = vector.broadcast %118 : vector<1x128xf32> to vector<16x128xf32>
    %140 = arith.addf %138, %139 : vector<16x128xf32>
    %c0_65 = arith.constant 0 : index
    %c0_66 = arith.constant 0 : index
    %c0_67 = arith.constant 0 : index
    %141 = vector.load %arg15[%c0_65, %c0_66, %c0_67] : memref<2x128x128xf32, #tpu.memory_space<vmem>>, vector<1x128x128xf32>
    %142 = vector.shape_cast %141 : vector<1x128x128xf32> to vector<128x128xf32>
    %cst_68 = arith.constant dense<0.000000e+00> : vector<16x128xf32>
    %143 = tpu.matmul %140, %142, %cst_68 {dimension_numbers = #tpu.dot_dimension_numbers<[1], [0], [0], [1], [0, 0, 1, 1], [], []>} : vector<16x128xf32>, vector<128x128xf32>, vector<16x128xf32> -> vector<16x128xf32>
    %c0_69 = arith.constant 0 : index
    %c0_70 = arith.constant 0 : index
    %c0_71 = arith.constant 0 : index
    %144 = vector.load %arg16[%c0_69, %c0_70, %c0_71] : memref<2x1x128xf32, #tpu.memory_space<vmem>>, vector<1x1x128xf32>
    %145 = vector.shape_cast %144 : vector<1x1x128xf32> to vector<1x128xf32>
    %146 = vector.broadcast %145 : vector<1x128xf32> to vector<16x128xf32>
    %147 = arith.addf %143, %146 : vector<16x128xf32>
    %cst_72 = arith.constant 0.000000e+00 : f32
    %148 = vector.broadcast %cst_72 : f32 to vector<16x128xf32>
    %149 = arith.maximumf %147, %148 : vector<16x128xf32>
    %c0_73 = arith.constant 0 : index
    %c0_74 = arith.constant 0 : index
    %c0_75 = arith.constant 0 : index
    %150 = vector.load %arg17[%c0_73, %c0_74, %c0_75] : memref<2x128x128xf32, #tpu.memory_space<vmem>>, vector<1x128x128xf32>
    %151 = vector.shape_cast %150 : vector<1x128x128xf32> to vector<128x128xf32>
    %cst_76 = arith.constant dense<0.000000e+00> : vector<16x128xf32>
    %152 = tpu.matmul %149, %151, %cst_76 {dimension_numbers = #tpu.dot_dimension_numbers<[1], [0], [0], [1], [0, 0, 1, 1], [], []>} : vector<16x128xf32>, vector<128x128xf32>, vector<16x128xf32> -> vector<16x128xf32>
    %c0_77 = arith.constant 0 : index
    %c0_78 = arith.constant 0 : index
    %c0_79 = arith.constant 0 : index
    %153 = vector.load %arg18[%c0_77, %c0_78, %c0_79] : memref<2x1x128xf32, #tpu.memory_space<vmem>>, vector<1x1x128xf32>
    %154 = vector.shape_cast %153 : vector<1x1x128xf32> to vector<1x128xf32>
    %155 = vector.broadcast %154 : vector<1x128xf32> to vector<16x128xf32>
    %156 = arith.addf %152, %155 : vector<16x128xf32>
    %157 = arith.addf %156, %140 : vector<16x128xf32>
    %158 = vector.broadcast %12 : vector<16x1xf32> to vector<16x128xf32>
    %159 = arith.mulf %157, %158 : vector<16x128xf32>
    %c1 = arith.constant 1 : index
    %c0_80 = arith.constant 0 : index
    %c0_81 = arith.constant 0 : index
    %160 = vector.load %arg5[%c1, %c0_80, %c0_81] : memref<2x1x128xf32, #tpu.memory_space<vmem>>, vector<1x1x128xf32>
    %161 = vector.shape_cast %160 : vector<1x1x128xf32> to vector<1x128xf32>
    %c1_82 = arith.constant 1 : index
    %c0_83 = arith.constant 0 : index
    %c0_84 = arith.constant 0 : index
    %162 = vector.load %arg6[%c1_82, %c0_83, %c0_84] : memref<2x1x128xf32, #tpu.memory_space<vmem>>, vector<1x1x128xf32>
    %163 = vector.shape_cast %162 : vector<1x1x128xf32> to vector<1x128xf32>
    %cst_85 = arith.constant dense<0.000000e+00> : vector<16xf32>
    %164 = vector.multi_reduction <add>, %159, %cst_85 [1] : vector<16x128xf32> to vector<16xf32>
    %165 = vector.shape_cast %164 : vector<16xf32> to vector<16x1xf32>
    %cst_86 = arith.constant 3.125000e-02 : f32
    %166 = vector.broadcast %cst_86 : f32 to vector<16x1xf32>
    %167 = arith.mulf %165, %166 : vector<16x1xf32>
    %168 = vector.broadcast %167 : vector<16x1xf32> to vector<16x128xf32>
    %169 = arith.subf %159, %168 : vector<16x128xf32>
    %170 = vector.broadcast %0 : vector<1x128xf32> to vector<16x128xf32>
    %171 = arith.mulf %169, %170 : vector<16x128xf32>
    %172 = arith.mulf %171, %171 : vector<16x128xf32>
    %cst_87 = arith.constant dense<0.000000e+00> : vector<16xf32>
    %173 = vector.multi_reduction <add>, %172, %cst_87 [1] : vector<16x128xf32> to vector<16xf32>
    %174 = vector.shape_cast %173 : vector<16xf32> to vector<16x1xf32>
    %cst_88 = arith.constant 3.125000e-02 : f32
    %175 = vector.broadcast %cst_88 : f32 to vector<16x1xf32>
    %176 = arith.mulf %174, %175 : vector<16x1xf32>
    %cst_89 = arith.constant 9.99999993E-9 : f32
    %177 = vector.broadcast %cst_89 : f32 to vector<16x1xf32>
    %178 = arith.addf %176, %177 : vector<16x1xf32>
    %179 = math.rsqrt %178 : vector<16x1xf32>
    %180 = vector.broadcast %179 : vector<16x1xf32> to vector<16x128xf32>
    %181 = arith.mulf %171, %180 : vector<16x128xf32>
    %182 = vector.broadcast %161 : vector<1x128xf32> to vector<16x128xf32>
    %183 = arith.mulf %181, %182 : vector<16x128xf32>
    %184 = vector.broadcast %163 : vector<1x128xf32> to vector<16x128xf32>
    %185 = arith.addf %183, %184 : vector<16x128xf32>
    %c1_90 = arith.constant 1 : index
    %c0_91 = arith.constant 0 : index
    %c0_92 = arith.constant 0 : index
    %186 = vector.load %arg7[%c1_90, %c0_91, %c0_92] : memref<2x128x256xf32, #tpu.memory_space<vmem>>, vector<1x128x256xf32>
    %187 = vector.shape_cast %186 : vector<1x128x256xf32> to vector<128x256xf32>
    %cst_93 = arith.constant dense<0.000000e+00> : vector<16x256xf32>
    %188 = tpu.matmul %185, %187, %cst_93 {dimension_numbers = #tpu.dot_dimension_numbers<[1], [0], [0], [1], [0, 0, 1, 1], [], []>} : vector<16x128xf32>, vector<128x256xf32>, vector<16x256xf32> -> vector<16x256xf32>
    %c1_94 = arith.constant 1 : index
    %c0_95 = arith.constant 0 : index
    %c0_96 = arith.constant 0 : index
    %189 = vector.load %arg8[%c1_94, %c0_95, %c0_96] : memref<2x1x256xf32, #tpu.memory_space<vmem>>, vector<1x1x256xf32>
    %190 = vector.shape_cast %189 : vector<1x1x256xf32> to vector<1x256xf32>
    %191 = vector.broadcast %190 : vector<1x256xf32> to vector<16x256xf32>
    %192 = arith.addf %188, %191 : vector<16x256xf32>
    %c1_97 = arith.constant 1 : index
    %c0_98 = arith.constant 0 : index
    %c0_99 = arith.constant 0 : index
    %193 = vector.load %arg9[%c1_97, %c0_98, %c0_99] : memref<2x128x512xf32, #tpu.memory_space<vmem>>, vector<1x128x512xf32>
    %194 = vector.shape_cast %193 : vector<1x128x512xf32> to vector<128x512xf32>
    %cst_100 = arith.constant dense<0.000000e+00> : vector<16x512xf32>
    %195 = tpu.matmul %159, %194, %cst_100 {dimension_numbers = #tpu.dot_dimension_numbers<[1], [0], [0], [1], [0, 0, 1, 1], [], []>} : vector<16x128xf32>, vector<128x512xf32>, vector<16x512xf32> -> vector<16x512xf32>
    %c1_101 = arith.constant 1 : index
    %c0_102 = arith.constant 0 : index
    %c0_103 = arith.constant 0 : index
    %196 = vector.load %arg10[%c1_101, %c0_102, %c0_103] : memref<2x1x512xf32, #tpu.memory_space<vmem>>, vector<1x1x512xf32>
    %197 = vector.shape_cast %196 : vector<1x1x512xf32> to vector<1x512xf32>
    %198 = vector.broadcast %197 : vector<1x512xf32> to vector<16x512xf32>
    %199 = arith.addf %195, %198 : vector<16x512xf32>
    %200 = vector.extract_strided_slice %192 {offsets = [0, 0], sizes = [16, 128], strides = [1, 1]} : vector<16x256xf32> to vector<16x128xf32>
    %201 = vector.shape_cast %200 : vector<16x128xf32> to vector<2x8x128xf32>
    %202 = vector.extract_strided_slice %199 {offsets = [0, 0], sizes = [16, 128], strides = [1, 1]} : vector<16x512xf32> to vector<16x128xf32>
    %203 = vector.shape_cast %202 : vector<16x128xf32> to vector<2x8x128xf32>
    %204 = vector.extract_strided_slice %199 {offsets = [0, 256], sizes = [16, 128], strides = [1, 1]} : vector<16x512xf32> to vector<16x128xf32>
    %205 = vector.shape_cast %204 : vector<16x128xf32> to vector<2x8x128xf32>
    "tpu.trace_start"() <{level = 10 : i32, message = "bqd,bkd->bqk"}> : () -> ()
    %cst_104 = arith.constant dense<0.000000e+00> : vector<2x8x8xf32>
    %206 = tpu.matmul %201, %203, %cst_104 {dimension_numbers = #tpu.dot_dimension_numbers<[2], [2], [1], [1], [0, 0, 0, 1, 1, 1], [0], [0]>} : vector<2x8x128xf32>, vector<2x8x128xf32>, vector<2x8x8xf32> -> vector<2x8x8xf32>
    "tpu.trace_stop"() : () -> ()
    %207 = vector.shape_cast %18 : vector<8x8xf32> to vector<1x8x8xf32>
    %208 = vector.broadcast %207 : vector<1x8x8xf32> to vector<2x8x8xf32>
    %209 = arith.addf %206, %208 : vector<2x8x8xf32>
    %cst_105 = arith.constant dense<0xFF800000> : vector<2x8xf32>
    %210 = vector.multi_reduction <maximumf>, %209, %cst_105 [2] : vector<2x8x8xf32> to vector<2x8xf32>
    %211 = vector.shape_cast %210 : vector<2x8xf32> to vector<2x8x1xf32>
    %212 = vector.broadcast %211 : vector<2x8x1xf32> to vector<2x8x8xf32>
    %213 = arith.subf %209, %212 : vector<2x8x8xf32>
    %214 = math.exp %213 : vector<2x8x8xf32>
    %cst_106 = arith.constant dense<0.000000e+00> : vector<2x8xf32>
    %215 = vector.multi_reduction <add>, %214, %cst_106 [2] : vector<2x8x8xf32> to vector<2x8xf32>
    %216 = vector.shape_cast %215 : vector<2x8xf32> to vector<2x8x1xf32>
    %217 = tpu.reciprocal %216 : vector<2x8x1xf32> -> vector<2x8x1xf32>
    %218 = vector.broadcast %217 : vector<2x8x1xf32> to vector<2x8x8xf32>
    %219 = arith.mulf %214, %218 : vector<2x8x8xf32>
    "tpu.trace_start"() <{level = 10 : i32, message = "bqk,bkd->bqd"}> : () -> ()
    %cst_107 = arith.constant dense<0.000000e+00> : vector<2x8x128xf32>
    %220 = tpu.matmul %219, %205, %cst_107 {dimension_numbers = #tpu.dot_dimension_numbers<[2], [1], [1], [2], [0, 0, 0, 1, 1, 2], [0], [0]>} : vector<2x8x8xf32>, vector<2x8x128xf32>, vector<2x8x128xf32> -> vector<2x8x128xf32>
    "tpu.trace_stop"() : () -> ()
    %221 = vector.shape_cast %220 : vector<2x8x128xf32> to vector<16x128xf32>
    %c1_108 = arith.constant 1 : index
    %c0_109 = arith.constant 0 : index
    %c0_110 = arith.constant 0 : index
    %222 = vector.load %arg11[%c1_108, %c0_109, %c0_110] : memref<2x256x128xf32, #tpu.memory_space<vmem>>, vector<1x128x128xf32>
    %223 = vector.shape_cast %222 : vector<1x128x128xf32> to vector<128x128xf32>
    %cst_111 = arith.constant dense<0.000000e+00> : vector<16x128xf32>
    %224 = tpu.matmul %221, %223, %cst_111 {dimension_numbers = #tpu.dot_dimension_numbers<[1], [0], [0], [1], [0, 0, 1, 1], [], []>} : vector<16x128xf32>, vector<128x128xf32>, vector<16x128xf32> -> vector<16x128xf32>
    %225 = vector.extract_strided_slice %192 {offsets = [0, 128], sizes = [16, 128], strides = [1, 1]} : vector<16x256xf32> to vector<16x128xf32>
    %226 = vector.shape_cast %225 : vector<16x128xf32> to vector<2x8x128xf32>
    %227 = vector.extract_strided_slice %199 {offsets = [0, 128], sizes = [16, 128], strides = [1, 1]} : vector<16x512xf32> to vector<16x128xf32>
    %228 = vector.shape_cast %227 : vector<16x128xf32> to vector<2x8x128xf32>
    %229 = vector.extract_strided_slice %199 {offsets = [0, 384], sizes = [16, 128], strides = [1, 1]} : vector<16x512xf32> to vector<16x128xf32>
    %230 = vector.shape_cast %229 : vector<16x128xf32> to vector<2x8x128xf32>
    "tpu.trace_start"() <{level = 10 : i32, message = "bqd,bkd->bqk"}> : () -> ()
    %cst_112 = arith.constant dense<0.000000e+00> : vector<2x8x8xf32>
    %231 = tpu.matmul %226, %228, %cst_112 {dimension_numbers = #tpu.dot_dimension_numbers<[2], [2], [1], [1], [0, 0, 0, 1, 1, 1], [0], [0]>} : vector<2x8x128xf32>, vector<2x8x128xf32>, vector<2x8x8xf32> -> vector<2x8x8xf32>
    "tpu.trace_stop"() : () -> ()
    %232 = vector.shape_cast %18 : vector<8x8xf32> to vector<1x8x8xf32>
    %233 = vector.broadcast %232 : vector<1x8x8xf32> to vector<2x8x8xf32>
    %234 = arith.addf %231, %233 : vector<2x8x8xf32>
    %cst_113 = arith.constant dense<0xFF800000> : vector<2x8xf32>
    %235 = vector.multi_reduction <maximumf>, %234, %cst_113 [2] : vector<2x8x8xf32> to vector<2x8xf32>
    %236 = vector.shape_cast %235 : vector<2x8xf32> to vector<2x8x1xf32>
    %237 = vector.broadcast %236 : vector<2x8x1xf32> to vector<2x8x8xf32>
    %238 = arith.subf %234, %237 : vector<2x8x8xf32>
    %239 = math.exp %238 : vector<2x8x8xf32>
    %cst_114 = arith.constant dense<0.000000e+00> : vector<2x8xf32>
    %240 = vector.multi_reduction <add>, %239, %cst_114 [2] : vector<2x8x8xf32> to vector<2x8xf32>
    %241 = vector.shape_cast %240 : vector<2x8xf32> to vector<2x8x1xf32>
    %242 = tpu.reciprocal %241 : vector<2x8x1xf32> -> vector<2x8x1xf32>
    %243 = vector.broadcast %242 : vector<2x8x1xf32> to vector<2x8x8xf32>
    %244 = arith.mulf %239, %243 : vector<2x8x8xf32>
    "tpu.trace_start"() <{level = 10 : i32, message = "bqk,bkd->bqd"}> : () -> ()
    %cst_115 = arith.constant dense<0.000000e+00> : vector<2x8x128xf32>
    %245 = tpu.matmul %244, %230, %cst_115 {dimension_numbers = #tpu.dot_dimension_numbers<[2], [1], [1], [2], [0, 0, 0, 1, 1, 2], [0], [0]>} : vector<2x8x8xf32>, vector<2x8x128xf32>, vector<2x8x128xf32> -> vector<2x8x128xf32>
    "tpu.trace_stop"() : () -> ()
    %246 = vector.shape_cast %245 : vector<2x8x128xf32> to vector<16x128xf32>
    %c1_116 = arith.constant 1 : index
    %c128_117 = arith.constant 128 : index
    %c0_118 = arith.constant 0 : index
    %247 = vector.load %arg11[%c1_116, %c128_117, %c0_118] : memref<2x256x128xf32, #tpu.memory_space<vmem>>, vector<1x128x128xf32>
    %248 = vector.shape_cast %247 : vector<1x128x128xf32> to vector<128x128xf32>
    %cst_119 = arith.constant dense<0.000000e+00> : vector<16x128xf32>
    %249 = tpu.matmul %246, %248, %cst_119 {dimension_numbers = #tpu.dot_dimension_numbers<[1], [0], [0], [1], [0, 0, 1, 1], [], []>} : vector<16x128xf32>, vector<128x128xf32>, vector<16x128xf32> -> vector<16x128xf32>
    %250 = arith.addf %224, %249 : vector<16x128xf32>
    %c1_120 = arith.constant 1 : index
    %c0_121 = arith.constant 0 : index
    %c0_122 = arith.constant 0 : index
    %251 = vector.load %arg12[%c1_120, %c0_121, %c0_122] : memref<2x1x128xf32, #tpu.memory_space<vmem>>, vector<1x1x128xf32>
    %252 = vector.shape_cast %251 : vector<1x1x128xf32> to vector<1x128xf32>
    %253 = vector.broadcast %252 : vector<1x128xf32> to vector<16x128xf32>
    %254 = arith.addf %250, %253 : vector<16x128xf32>
    %255 = arith.addf %185, %254 : vector<16x128xf32>
    %c1_123 = arith.constant 1 : index
    %c0_124 = arith.constant 0 : index
    %c0_125 = arith.constant 0 : index
    %256 = vector.load %arg13[%c1_123, %c0_124, %c0_125] : memref<2x1x128xf32, #tpu.memory_space<vmem>>, vector<1x1x128xf32>
    %257 = vector.shape_cast %256 : vector<1x1x128xf32> to vector<1x128xf32>
    %c1_126 = arith.constant 1 : index
    %c0_127 = arith.constant 0 : index
    %c0_128 = arith.constant 0 : index
    %258 = vector.load %arg14[%c1_126, %c0_127, %c0_128] : memref<2x1x128xf32, #tpu.memory_space<vmem>>, vector<1x1x128xf32>
    %259 = vector.shape_cast %258 : vector<1x1x128xf32> to vector<1x128xf32>
    %cst_129 = arith.constant dense<0.000000e+00> : vector<16xf32>
    %260 = vector.multi_reduction <add>, %255, %cst_129 [1] : vector<16x128xf32> to vector<16xf32>
    %261 = vector.shape_cast %260 : vector<16xf32> to vector<16x1xf32>
    %cst_130 = arith.constant 3.125000e-02 : f32
    %262 = vector.broadcast %cst_130 : f32 to vector<16x1xf32>
    %263 = arith.mulf %261, %262 : vector<16x1xf32>
    %264 = vector.broadcast %263 : vector<16x1xf32> to vector<16x128xf32>
    %265 = arith.subf %255, %264 : vector<16x128xf32>
    %266 = vector.broadcast %0 : vector<1x128xf32> to vector<16x128xf32>
    %267 = arith.mulf %265, %266 : vector<16x128xf32>
    %268 = arith.mulf %267, %267 : vector<16x128xf32>
    %cst_131 = arith.constant dense<0.000000e+00> : vector<16xf32>
    %269 = vector.multi_reduction <add>, %268, %cst_131 [1] : vector<16x128xf32> to vector<16xf32>
    %270 = vector.shape_cast %269 : vector<16xf32> to vector<16x1xf32>
    %cst_132 = arith.constant 3.125000e-02 : f32
    %271 = vector.broadcast %cst_132 : f32 to vector<16x1xf32>
    %272 = arith.mulf %270, %271 : vector<16x1xf32>
    %cst_133 = arith.constant 9.99999993E-9 : f32
    %273 = vector.broadcast %cst_133 : f32 to vector<16x1xf32>
    %274 = arith.addf %272, %273 : vector<16x1xf32>
    %275 = math.rsqrt %274 : vector<16x1xf32>
    %276 = vector.broadcast %275 : vector<16x1xf32> to vector<16x128xf32>
    %277 = arith.mulf %267, %276 : vector<16x128xf32>
    %278 = vector.broadcast %257 : vector<1x128xf32> to vector<16x128xf32>
    %279 = arith.mulf %277, %278 : vector<16x128xf32>
    %280 = vector.broadcast %259 : vector<1x128xf32> to vector<16x128xf32>
    %281 = arith.addf %279, %280 : vector<16x128xf32>
    %c1_134 = arith.constant 1 : index
    %c0_135 = arith.constant 0 : index
    %c0_136 = arith.constant 0 : index
    %282 = vector.load %arg15[%c1_134, %c0_135, %c0_136] : memref<2x128x128xf32, #tpu.memory_space<vmem>>, vector<1x128x128xf32>
    %283 = vector.shape_cast %282 : vector<1x128x128xf32> to vector<128x128xf32>
    %cst_137 = arith.constant dense<0.000000e+00> : vector<16x128xf32>
    %284 = tpu.matmul %281, %283, %cst_137 {dimension_numbers = #tpu.dot_dimension_numbers<[1], [0], [0], [1], [0, 0, 1, 1], [], []>} : vector<16x128xf32>, vector<128x128xf32>, vector<16x128xf32> -> vector<16x128xf32>
    %c1_138 = arith.constant 1 : index
    %c0_139 = arith.constant 0 : index
    %c0_140 = arith.constant 0 : index
    %285 = vector.load %arg16[%c1_138, %c0_139, %c0_140] : memref<2x1x128xf32, #tpu.memory_space<vmem>>, vector<1x1x128xf32>
    %286 = vector.shape_cast %285 : vector<1x1x128xf32> to vector<1x128xf32>
    %287 = vector.broadcast %286 : vector<1x128xf32> to vector<16x128xf32>
    %288 = arith.addf %284, %287 : vector<16x128xf32>
    %cst_141 = arith.constant 0.000000e+00 : f32
    %289 = vector.broadcast %cst_141 : f32 to vector<16x128xf32>
    %290 = arith.maximumf %288, %289 : vector<16x128xf32>
    %c1_142 = arith.constant 1 : index
    %c0_143 = arith.constant 0 : index
    %c0_144 = arith.constant 0 : index
    %291 = vector.load %arg17[%c1_142, %c0_143, %c0_144] : memref<2x128x128xf32, #tpu.memory_space<vmem>>, vector<1x128x128xf32>
    %292 = vector.shape_cast %291 : vector<1x128x128xf32> to vector<128x128xf32>
    %cst_145 = arith.constant dense<0.000000e+00> : vector<16x128xf32>
    %293 = tpu.matmul %290, %292, %cst_145 {dimension_numbers = #tpu.dot_dimension_numbers<[1], [0], [0], [1], [0, 0, 1, 1], [], []>} : vector<16x128xf32>, vector<128x128xf32>, vector<16x128xf32> -> vector<16x128xf32>
    %c1_146 = arith.constant 1 : index
    %c0_147 = arith.constant 0 : index
    %c0_148 = arith.constant 0 : index
    %294 = vector.load %arg18[%c1_146, %c0_147, %c0_148] : memref<2x1x128xf32, #tpu.memory_space<vmem>>, vector<1x1x128xf32>
    %295 = vector.shape_cast %294 : vector<1x1x128xf32> to vector<1x128xf32>
    %296 = vector.broadcast %295 : vector<1x128xf32> to vector<16x128xf32>
    %297 = arith.addf %293, %296 : vector<16x128xf32>
    %298 = arith.addf %297, %281 : vector<16x128xf32>
    %299 = vector.broadcast %12 : vector<16x1xf32> to vector<16x128xf32>
    %300 = arith.mulf %298, %299 : vector<16x128xf32>
    %c0_149 = arith.constant 0 : index
    %c0_150 = arith.constant 0 : index
    %301 = vector.load %arg19[%c0_149, %c0_150] : memref<1x128xf32, #tpu.memory_space<vmem>>, vector<1x128xf32>
    %c0_151 = arith.constant 0 : index
    %c0_152 = arith.constant 0 : index
    %302 = vector.load %arg20[%c0_151, %c0_152] : memref<1x128xf32, #tpu.memory_space<vmem>>, vector<1x128xf32>
    %cst_153 = arith.constant dense<0.000000e+00> : vector<16xf32>
    %303 = vector.multi_reduction <add>, %300, %cst_153 [1] : vector<16x128xf32> to vector<16xf32>
    %304 = vector.shape_cast %303 : vector<16xf32> to vector<16x1xf32>
    %cst_154 = arith.constant 3.125000e-02 : f32
    %305 = vector.broadcast %cst_154 : f32 to vector<16x1xf32>
    %306 = arith.mulf %304, %305 : vector<16x1xf32>
    %307 = vector.broadcast %306 : vector<16x1xf32> to vector<16x128xf32>
    %308 = arith.subf %300, %307 : vector<16x128xf32>
    %309 = vector.broadcast %0 : vector<1x128xf32> to vector<16x128xf32>
    %310 = arith.mulf %308, %309 : vector<16x128xf32>
    %311 = arith.mulf %310, %310 : vector<16x128xf32>
    %cst_155 = arith.constant dense<0.000000e+00> : vector<16xf32>
    %312 = vector.multi_reduction <add>, %311, %cst_155 [1] : vector<16x128xf32> to vector<16xf32>
    %313 = vector.shape_cast %312 : vector<16xf32> to vector<16x1xf32>
    %cst_156 = arith.constant 3.125000e-02 : f32
    %314 = vector.broadcast %cst_156 : f32 to vector<16x1xf32>
    %315 = arith.mulf %313, %314 : vector<16x1xf32>
    %cst_157 = arith.constant 9.99999993E-9 : f32
    %316 = vector.broadcast %cst_157 : f32 to vector<16x1xf32>
    %317 = arith.addf %315, %316 : vector<16x1xf32>
    %318 = math.rsqrt %317 : vector<16x1xf32>
    %319 = vector.broadcast %318 : vector<16x1xf32> to vector<16x128xf32>
    %320 = arith.mulf %310, %319 : vector<16x128xf32>
    %321 = vector.broadcast %301 : vector<1x128xf32> to vector<16x128xf32>
    %322 = arith.mulf %320, %321 : vector<16x128xf32>
    %323 = vector.broadcast %302 : vector<1x128xf32> to vector<16x128xf32>
    %324 = arith.addf %322, %323 : vector<16x128xf32>
    %325 = vector.shape_cast %324 : vector<16x128xf32> to vector<2x8x128xf32>
    %c0_158 = arith.constant 0 : index
    %c0_159 = arith.constant 0 : index
    %c0_160 = arith.constant 0 : index
    %326 = vector.load %arg21[%c0_158, %c0_159, %c0_160] : memref<2x8x128xf32, #tpu.memory_space<vmem>>, vector<2x8x128xf32>
    tpu.vector_store %arg21[%c0_158, %c0_159, %c0_160], %325 {strides = array<i32>} : memref<2x8x128xf32, #tpu.memory_space<vmem>>, vector<2x8x128xf32>,
    return
  }
  func.func @transform_0(%arg0: i32) -> (i32, i32, i32) {
    %c0_i32 = arith.constant 0 : i32
    %c0_i32_0 = arith.constant 0 : i32
    %c0_i32_1 = arith.constant 0 : i32
    return %arg0, %c0_i32, %c0_i32_0 : i32, i32, i32
  }
  func.func @transform_1(%arg0: i32) -> (i32, i32) {
    %c0_i32 = arith.constant 0 : i32
    %c0_i32_0 = arith.constant 0 : i32
    %c0_i32_1 = arith.constant 0 : i32
    return %c0_i32, %c0_i32_0 : i32, i32
  }
  func.func @transform_2(%arg0: i32) -> (i32, i32, i32) {
    %c0_i32 = arith.constant 0 : i32
    %c0_i32_0 = arith.constant 0 : i32
    %c0_i32_1 = arith.constant 0 : i32
    return %arg0, %c0_i32, %c0_i32_0 : i32, i32, i32
  }
  func.func @transform_3(%arg0: i32) -> (i32, i32) {
    %c0_i32 = arith.constant 0 : i32
    %c0_i32_0 = arith.constant 0 : i32
    %c0_i32_1 = arith.constant 0 : i32
    return %c0_i32, %c0_i32_0 : i32, i32
  }
  func.func @transform_4(%arg0: i32) -> (i32, i32, i32) {
    %c0_i32 = arith.constant 0 : i32
    %c0_i32_0 = arith.constant 0 : i32
    %c0_i32_1 = arith.constant 0 : i32
    %c0_i32_2 = arith.constant 0 : i32
    return %c0_i32, %c0_i32_0, %c0_i32_1 : i32, i32, i32
  }
  func.func @transform_5(%arg0: i32) -> (i32, i32, i32) {
    %c0_i32 = arith.constant 0 : i32
    %c0_i32_0 = arith.constant 0 : i32
    %c0_i32_1 = arith.constant 0 : i32
    %c0_i32_2 = arith.constant 0 : i32
    return %c0_i32, %c0_i32_0, %c0_i32_1 : i32, i32, i32
  }
  func.func @transform_6(%arg0: i32) -> (i32, i32, i32) {
    %c0_i32 = arith.constant 0 : i32
    %c0_i32_0 = arith.constant 0 : i32
    %c0_i32_1 = arith.constant 0 : i32
    %c0_i32_2 = arith.constant 0 : i32
    return %c0_i32, %c0_i32_0, %c0_i32_1 : i32, i32, i32
  }
  func.func @transform_7(%arg0: i32) -> (i32, i32, i32) {
    %c0_i32 = arith.constant 0 : i32
    %c0_i32_0 = arith.constant 0 : i32
    %c0_i32_1 = arith.constant 0 : i32
    %c0_i32_2 = arith.constant 0 : i32
    return %c0_i32, %c0_i32_0, %c0_i32_1 : i32, i32, i32
  }
  func.func @transform_8(%arg0: i32) -> (i32, i32, i32) {
    %c0_i32 = arith.constant 0 : i32
    %c0_i32_0 = arith.constant 0 : i32
    %c0_i32_1 = arith.constant 0 : i32
    %c0_i32_2 = arith.constant 0 : i32
    return %c0_i32, %c0_i32_0, %c0_i32_1 : i32, i32, i32
  }
  func.func @transform_9(%arg0: i32) -> (i32, i32, i32) {
    %c0_i32 = arith.constant 0 : i32
    %c0_i32_0 = arith.constant 0 : i32
    %c0_i32_1 = arith.constant 0 : i32
    %c0_i32_2 = arith.constant 0 : i32
    return %c0_i32, %c0_i32_0, %c0_i32_1 : i32, i32, i32
  }
  func.func @transform_10(%arg0: i32) -> (i32, i32, i32) {
    %c0_i32 = arith.constant 0 : i32
    %c0_i32_0 = arith.constant 0 : i32
    %c0_i32_1 = arith.constant 0 : i32
    %c0_i32_2 = arith.constant 0 : i32
    return %c0_i32, %c0_i32_0, %c0_i32_1 : i32, i32, i32
  }
  func.func @transform_11(%arg0: i32) -> (i32, i32, i32) {
    %c0_i32 = arith.constant 0 : i32
    %c0_i32_0 = arith.constant 0 : i32
    %c0_i32_1 = arith.constant 0 : i32
    %c0_i32_2 = arith.constant 0 : i32
    return %c0_i32, %c0_i32_0, %c0_i32_1 : i32, i32, i32
  }
  func.func @transform_12(%arg0: i32) -> (i32, i32, i32) {
    %c0_i32 = arith.constant 0 : i32
    %c0_i32_0 = arith.constant 0 : i32
    %c0_i32_1 = arith.constant 0 : i32
    %c0_i32_2 = arith.constant 0 : i32
    return %c0_i32, %c0_i32_0, %c0_i32_1 : i32, i32, i32
  }
  func.func @transform_13(%arg0: i32) -> (i32, i32, i32) {
    %c0_i32 = arith.constant 0 : i32
    %c0_i32_0 = arith.constant 0 : i32
    %c0_i32_1 = arith.constant 0 : i32
    %c0_i32_2 = arith.constant 0 : i32
    return %c0_i32, %c0_i32_0, %c0_i32_1 : i32, i32, i32
  }
  func.func @transform_14(%arg0: i32) -> (i32, i32, i32) {
    %c0_i32 = arith.constant 0 : i32
    %c0_i32_0 = arith.constant 0 : i32
    %c0_i32_1 = arith.constant 0 : i32
    %c0_i32_2 = arith.constant 0 : i32
    return %c0_i32, %c0_i32_0, %c0_i32_1 : i32, i32, i32
  }
  func.func @transform_15(%arg0: i32) -> (i32, i32, i32) {
    %c0_i32 = arith.constant 0 : i32
    %c0_i32_0 = arith.constant 0 : i32
    %c0_i32_1 = arith.constant 0 : i32
    %c0_i32_2 = arith.constant 0 : i32
    return %c0_i32, %c0_i32_0, %c0_i32_1 : i32, i32, i32
  }
  func.func @transform_16(%arg0: i32) -> (i32, i32, i32) {
    %c0_i32 = arith.constant 0 : i32
    %c0_i32_0 = arith.constant 0 : i32
    %c0_i32_1 = arith.constant 0 : i32
    %c0_i32_2 = arith.constant 0 : i32
    return %c0_i32, %c0_i32_0, %c0_i32_1 : i32, i32, i32
  }
  func.func @transform_17(%arg0: i32) -> (i32, i32, i32) {
    %c0_i32 = arith.constant 0 : i32
    %c0_i32_0 = arith.constant 0 : i32
    %c0_i32_1 = arith.constant 0 : i32
    %c0_i32_2 = arith.constant 0 : i32
    return %c0_i32, %c0_i32_0, %c0_i32_1 : i32, i32, i32
  }
  func.func @transform_18(%arg0: i32) -> (i32, i32) {
    %c0_i32 = arith.constant 0 : i32
    %c0_i32_0 = arith.constant 0 : i32
    %c0_i32_1 = arith.constant 0 : i32
    return %c0_i32, %c0_i32_0 : i32, i32
  }
  func.func @transform_19(%arg0: i32) -> (i32, i32) {
    %c0_i32 = arith.constant 0 : i32
    %c0_i32_0 = arith.constant 0 : i32
    %c0_i32_1 = arith.constant 0 : i32
    return %c0_i32, %c0_i32_0 : i32, i32
  }
  func.func @transform_20(%arg0: i32) -> (i32, i32, i32) {
    %c0_i32 = arith.constant 0 : i32
    %c0_i32_0 = arith.constant 0 : i32
    %c0_i32_1 = arith.constant 0 : i32
    return %arg0, %c0_i32, %c0_i32_0 : i32, i32, i32
  }
}

</mosaic_0001>

<bundles_post_ra>
// kernel: tpu_custom_call.1
= control target key start
LH: loop header
LB: loop body
LE: loop exit
PB: predicated region body
PF: predicated region fallthrough
CT: control target
= control target key end

     0   :  { %s4590_s0 = inlined_call_operand.vmem [shape: f32[2,8,128], index: 0, kind: input, shape index: {}]   ;;  %s4591_s1 = inlined_call_operand.hbm [shape: f32[8,128], index: 1, kind: input, shape index: {}]   ;;  %s4592_s2 = inlined_call_operand.vmem [shape: f32[2,8,1], index: 2, kind: input, shape index: {}]   ;;  %s4593_s3 = inlined_call_operand.hbm [shape: f32[1,128], index: 3, kind: input, shape index: {}]   ;;  %s4594_s4 = inlined_call_operand.hbm [shape: f32[2,1,128], index: 4, kind: input, shape index: {}]   ;;  %s4595_s5 = inlined_call_operand.hbm [shape: f32[2,1,128], index: 5, kind: input, shape index: {}]   ;;  %s4596_s6 = inlined_call_operand.hbm [shape: f32[2,128,256], index: 6, kind: input, shape index: {}]   ;;  %s4597_s7 = inlined_call_operand.vmem [shape: f32[2,1,256], index: 7, kind: input, shape index: {}]   ;;  %s4598_s8 = inlined_call_operand.hbm [shape: f32[2,128,512], index: 8, kind: input, shape index: {}]   ;;  %s4599_s9 = inlined_call_operand.vmem [shape: f32[2,1,512], index: 9, kind: input, shape index: {}]   ;;  %s4600_s10 = inlined_call_operand.hbm [shape: f32[2,256,128], index: 10, kind: input, shape index: {}]   ;;  %s4601_s11 = inlined_call_operand.vmem [shape: f32[2,1,128], index: 11, kind: input, shape index: {}]   ;;  %s4602_s12 = inlined_call_operand.vmem [shape: f32[2,1,128], index: 12, kind: input, shape index: {}]   ;;  %s4603_s13 = inlined_call_operand.vmem [shape: f32[2,1,128], index: 13, kind: input, shape index: {}]   ;;  %s4604_s14 = inlined_call_operand.hbm [shape: f32[2,128,128], index: 14, kind: input, shape index: {}]   ;;  %s4605_s15 = inlined_call_operand.vmem [shape: f32[2,1,128], index: 15, kind: input, shape index: {}]   ;;  %s4606_s16 = inlined_call_operand.hbm [shape: f32[2,128,128], index: 16, kind: input, shape index: {}]   ;;  %s4607_s17 = inlined_call_operand.vmem [shape: f32[2,1,128], index: 17, kind: input, shape index: {}]   ;;  %s4608_s18 = inlined_call_operand.vmem [shape: f32[1,128], index: 18, kind: input, shape index: {}]   ;;  %s4609_s19 = inlined_call_operand.vmem [shape: f32[1,128], index: 19, kind: input, shape index: {}]   ;;  %s4610_s20 = inlined_call_operand.hbm [shape: f32[2,8,128], index: 20, kind: output, shape index: {}]  }
   0x1   :  { %4613 = sst [smem:[#allocation24_spill]] %s4590_s0 }
   0x2   :  { %4614 = sst [smem:[#allocation25_spill]] %s4591_s1 }
   0x3   :  { %4615 = sst [smem:[#allocation26_spill]] %s4592_s2 }
   0x4   :  { %4616 = sst [smem:[#allocation27_spill]] %s4593_s3 }
   0x5   :  { %4617 = sst [smem:[#allocation28_spill]] %s4594_s4 }
   0x6   :  { %25 = vsyncpa [#allocation3], 0 }
   0x7   :  { %26 = vsyncpa [#allocation6], 0 }
   0x8   :  { %27 = vsyncpa [#allocation9], 0 }
   0x9   :  { %28 = vsyncpa [#allocation12], 0 }
   0xa   :  { %29 = vsyncpa [#allocation15], 0 }
   0xb   :  { %30 = vsyncpa [#allocation4], 0  ;;  %s4066_s1 = smov [#allocation5]  }
   0xc   :  { %s51_s22 = sshll.u32 %s4066_s1, 4  ;;  %s52_s22 = int_to_ptr.vmem [resolvable:$true] %s51_s22 }
   0xd   :  { %s3862_s23 = scalar_lea.vmem %s52_s22, 16  ;;  %s3866_s24 = scalar_lea.vmem %s52_s22, 32 }
   0xe   :  { %p3863_p0 = scmp.ne.s32.totalorder %s52_s22, %s3862_s23  ;;  %p3867_p1 = scmp.lt.s32.totalorder %s52_s22, %s52_s22 }
   0xf   :  { %p3868_p2 = scmp.lt.s32.totalorder %s3866_s24, %s3862_s23 }
  0x11   :  { %p3869_p3 = por %p3868_p2, %p3867_p1 }
  0x13   :  { %p3870_p4 = pnand %p3869_p3, %p3863_p0 }
  0x15   :  { %3873 = shalt.err (!%p3870_p4)
}
  0x16   :  { %s4618_s3 = sld [smem:[#allocation27_spill]]  ;;  %s4067_s26 = smov [#allocation8]  }
  0x17   :  { %s72_s27 = sshll.u32 %s4067_s26, 4  ;;  %s4068_s28 = smov [#allocation11]   ;;  %s73_s27 = int_to_ptr.vmem [resolvable:$true] %s72_s27 }
  0x18   :  { %s98_s4 = sshll.u32 %s4068_s28, 4  ;;  %s3882_s29 = scalar_lea.vmem %s73_s27, 32  ;;  %s99_s4 = int_to_ptr.vmem [resolvable:$true] %s98_s4 }
  0x19   :  { %p3883_p5 = scmp.ne.s32.totalorder %s73_s27, %s3882_s29  ;;  %p3887_p6 = scmp.lt.s32.totalorder %s73_s27, %s73_s27 }
  0x1a   :  { %p3888_p7 = scmp.lt.s32.totalorder %s3882_s29, %s3882_s29 }
  0x1c   :  { %54 = dma.hbm_to_vmem [thread:$0]  %s4618_s3, 16, %s52_s22, [#allocation6]  }
  0x1d   :  { %p3889_p8 = por %p3888_p7, %p3887_p6 }
  0x1f   :  { %p3890_p9 = pnand %p3889_p8, %p3883_p5 }
  0x21   :  { %3893 = shalt.err (!%p3890_p9)
}
  0x22   :  { %s4069_s30 = smov 16   ;;  %s4070_s0 = smov 1  }
  0x23   :  { %78 = dma.hbm_to_vmem [thread:$0]  %s4595_s5, 32, %s73_s27, [#allocation9], %s4069_s30, %s4069_s30, %s4070_s0  }
  0x24   :  { %s3902_s22 = scalar_lea.vmem %s99_s4, 16384  ;;  %p3907_p11 = scmp.lt.s32.totalorder %s99_s4, %s99_s4 }
  0x25   :  { %p3903_p10 = scmp.ne.s32.totalorder %s99_s4, %s3902_s22  ;;  %p3908_p12 = scmp.lt.s32.totalorder %s3902_s22, %s3902_s22 }
  0x27   :  { %p3909_p13 = por %p3908_p12, %p3907_p11 }
  0x29   :  { %p3910_p0 = pnand %p3909_p13, %p3903_p10 }
  0x2b   :  { %3913 = shalt.err (!%p3910_p0)
}
  0x2c   :  { %s4071_s23 = smov 512   ;;  %s4072_s24 = smov 32  }
  0x2d   :  { %104 = dma.hbm_to_vmem [thread:$0]  %s4598_s8, 16384, %s99_s4, [#allocation12], %s4071_s23, %s4071_s23, %s4072_s24  }
  0x2e   :  { %s4073_s3 = smov [#allocation14]   ;;  %s4074_s28 = smov [#allocation2]  }
  0x2f   :  { %s130_s26 = sshll.u32 %s4073_s3, 4  ;;  %s39_s29 = sshll.u32 %s4074_s28, 4  ;;  %s131_s26 = int_to_ptr.vmem [resolvable:$true] %s130_s26  ;;  %s40_s29 = int_to_ptr.vmem [resolvable:$true] %s39_s29 }
  0x30   :  { %s3922_s5 = scalar_lea.vmem %s131_s26, 4096  ;;  %p3927_p2 = scmp.lt.s32.totalorder %s131_s26, %s131_s26 }
  0x31   :  { %p3923_p1 = scmp.ne.s32.totalorder %s131_s26, %s3922_s5  ;;  %p3928_p3 = scmp.lt.s32.totalorder %s3922_s5, %s3922_s5 }
  0x33   :  { %p3929_p4 = por %p3928_p3, %p3927_p2 }
  0x35   :  { %p3930_p5 = pnand %p3929_p4, %p3923_p1 }
  0x37   :  { %3933 = shalt.err (!%p3930_p5)
}
  0x38   :  { %s4075_s27 = smov 128   ;;  %s4076_s21 = smov 8  }
  0x39   :  { %136 = dma.hbm_to_vmem [thread:$0]  %s4604_s14, 4096, %s131_s26, [#allocation15], %s4075_s27, %s4075_s27, %s4076_s21  }
  0x3a   :  { %s3942_s8 = scalar_lea.vmem %s40_s29, 128  ;;  %p3947_p7 = scmp.lt.s32.totalorder %s40_s29, %s40_s29 }
  0x3b   :  { %p3943_p6 = scmp.ne.s32.totalorder %s40_s29, %s3942_s8  ;;  %p3948_p8 = scmp.lt.s32.totalorder %s3942_s8, %s3942_s8 }
  0x3d   :  { %p3949_p9 = por %p3948_p8, %p3947_p7 }
  0x3f   :  { %p3950_p10 = pnand %p3949_p9, %p3943_p6 }
  0x41   :  { %3953 = shalt.err (!%p3950_p10)
}
  0x42   :  { %s4619_s24 = sld [smem:[#allocation25_spill]]  ;;  %s4077_s2 = smov [#allocation7]  }
  0x43   :  { %s60_s25 = sshll.u32 %s4077_s2, 4  ;;  %s4078_s3 = smov [#allocation10]   ;;  %s61_s25 = int_to_ptr.vmem [resolvable:$true] %s60_s25 }
  0x44   :  { %s84_s28 = sshll.u32 %s4078_s3, 4  ;;  %s3962_s5 = scalar_lea.vmem %s61_s25, 32  ;;  %s85_s28 = int_to_ptr.vmem [resolvable:$true] %s84_s28 }
  0x45   :  { %p3963_p11 = scmp.ne.s32.totalorder %s61_s25, %s3962_s5  ;;  %p3967_p12 = scmp.lt.s32.totalorder %s61_s25, %s61_s25 }
  0x46   :  { %p3968_p13 = scmp.lt.s32.totalorder %s3962_s5, %s3962_s5 }
  0x48   :  { %42 = dma.hbm_to_vmem [thread:$0]  %s4619_s24, 128, %s40_s29, [#allocation3]  }
  0x49   :  { %p3969_p0 = por %p3968_p13, %p3967_p12 }
  0x4b   :  { %p3970_p1 = pnand %p3969_p0, %p3963_p11 }
  0x4d   :  { %3973 = shalt.err (!%p3970_p1)
}
  0x4e   :  { %s4620_s1 = sld [smem:[#allocation28_spill]]  ;;  %s3982_s29 = scalar_lea.vmem %s85_s28, 8192 }
  0x4f   :  { %p3983_p2 = scmp.ne.s32.totalorder %s85_s28, %s3982_s29  ;;  %p3987_p3 = scmp.lt.s32.totalorder %s85_s28, %s85_s28 }
  0x50   :  { %p3988_p4 = scmp.lt.s32.totalorder %s3982_s29, %s3982_s29 }
  0x52   :  { %p3989_p5 = por %p3988_p4, %p3987_p3 }
  0x54   :  { %66 = dma.hbm_to_vmem [thread:$0]  %s4620_s1, 32, %s61_s25, [#allocation6], %s4069_s30, %s4069_s30, %s4070_s0  }
  0x55   :  { %p3990_p6 = pnand %p3989_p5, %p3983_p2 }
  0x57   :  { %3993 = shalt.err (!%p3990_p6)
}
  0x58   :  { %s4079_s22 = smov 256   ;;  %s4080_s23 = smov [#allocation13]  }
  0x59   :  { %90 = dma.hbm_to_vmem [thread:$0]  %s4596_s6, 8192, %s85_s28, [#allocation9], %s4079_s22, %s4079_s22, %s4069_s30  }
  0x5a   :  { %s112_s24 = sshll.u32 %s4080_s23, 4  ;;  %s4081_s2 = smov [#allocation16]   ;;  %s113_s24 = int_to_ptr.vmem [resolvable:$true] %s112_s24 }
  0x5b   :  { %s144_s3 = sshll.u32 %s4081_s2, 4  ;;  %s4002_s0 = scalar_lea.vmem %s113_s24, 8192  ;;  %s145_s3 = int_to_ptr.vmem [resolvable:$true] %s144_s3 }
  0x5c   :  { %p4003_p7 = scmp.ne.s32.totalorder %s113_s24, %s4002_s0  ;;  %p4007_p8 = scmp.lt.s32.totalorder %s113_s24, %s113_s24 }
  0x5d   :  { %p4008_p9 = scmp.lt.s32.totalorder %s4002_s0, %s4002_s0 }
  0x5f   :  { %p4009_p10 = por %p4008_p9, %p4007_p8 }
  0x61   :  { %p4010_p11 = pnand %p4009_p10, %p4003_p7 }
  0x63   :  { %4013 = shalt.err (!%p4010_p11)
}
  0x64   :  { %118 = dma.hbm_to_vmem [thread:$0]  %s4600_s10, 8192, %s113_s24, [#allocation12], %s4075_s27, %s4075_s27, %s4076_s21  }
  0x65   :  { %s4022_s6 = scalar_lea.vmem %s145_s3, 4096  ;;  %p4027_p13 = scmp.lt.s32.totalorder %s145_s3, %s145_s3 }
  0x66   :  { %p4023_p12 = scmp.ne.s32.totalorder %s145_s3, %s4022_s6  ;;  %p4028_p0 = scmp.lt.s32.totalorder %s4022_s6, %s4022_s6 }
  0x68   :  { %p4029_p1 = por %p4028_p0, %p4027_p13 }
  0x6a   :  { %p4030_p2 = pnand %p4029_p1, %p4023_p12 }
  0x6c   :  { %4033 = shalt.err (!%p4030_p2)
}
  0x6d   :  { %150 = dma.hbm_to_vmem [thread:$0]  %s4606_s16, 4096, %s145_s3, [#allocation15], %s4075_s27, %s4075_s27, %s4076_s21  }
  0x6e   :  { %4054 = dma.done.wait [#allocation3], 128  }
  0x6f   :  { %4055 = vsyncadd [#allocation3], 4294967168 }
  0x70   :  { %4056 = dma.done.wait [#allocation6], 48  }
  0x71   :  { %4057 = vsyncadd [#allocation6], 4294967248 }
  0x72   :  { %4058 = dma.done.wait [#allocation9], 8224  }
  0x73   :  { %4059 = vsyncadd [#allocation9], 4294959072 }
  0x74   :  { %4060 = dma.done.wait [#allocation12], 24576  }
  0x75   :  { %4061 = vsyncadd [#allocation12], 4294942720 }
  0x76   :  { %4062 = dma.done.wait [#allocation15], 8192  }
  0x77   :  { %4063 = vsyncadd [#allocation15], 4294959104  ;;  %v4082_v0 = vmov 0   ;;  %v4083_v1 = vmov 0.0   ;;  %s4621_s16 = sld [smem:[#allocation26_spill]]  ;;  %v442_v3 = vld [vmem:[#allocation11 + $0x1e8] sm:$0xff] }
  0x78   :  { %3799 = vset.pattern.permute.xlu0 %v4082_v0  ;;  %531 = vmatprep.mubr.f32.mxu1 %v4083_v1  ;;  %v441_v4 = vld [vmem:[#allocation11 + $0x1e0] sm:$0xff]  ;;  %v438_v5 = vld [vmem:[#allocation11 + $0x1c8] sm:$0xff]  ;;  %s4622_s8 = sld [smem:[#allocation24_spill]]  ;;  %v191_v38 = vld [vmem:[#allocation2] sm:$0xff]  ;;  %vm4084_vm0 = vmmov 0   ;;  %vm761_vm2 = vcmask 64512  }
  0x79   :  { %368 = vmatprep.mubr.f32.mxu0 %v4083_v1  ;;  %467 = vmatprep.subr.mxu1 %v442_v3  ;;  %v437_v6 = vld [vmem:[#allocation11 + $0x1c0] sm:$0xff]  ;;  %v434_v8 = vld [vmem:[#allocation11 + $0x1a8] sm:$0xff]  ;;  %v291_v47 = vld [vmem:[#allocation10 + $0xf8] sm:$0xff]  ;;  %s4086_s6 = smov [#allocation17]  }
  0x7a   :  { %468 = vmatpush1.msra.mxu1 %v441_v4  ;;  %v433_v9 = vld [vmem:[#allocation11 + $0x1a0] sm:$0xff]  ;;  %v430_v10 = vld [vmem:[#allocation11 + $0x188] sm:$0xff]  ;;  %v290_v48 = vld [vmem:[#allocation10 + $0xf0] sm:$0xff]  ;;  %304 = vmatprep.subr.mxu0 %v291_v47  ;;  %s3194_s30 = sshll.u32 %s4086_s6, 4  ;;  %s3195_s30 = int_to_ptr.vmem [resolvable:$true] %s3194_s30 }
  0x7b   :  { %469 = vmatprep.subr.mxu1 %v438_v5  ;;  %v429_v11 = vld [vmem:[#allocation11 + $0x180] sm:$0xff]  ;;  %v426_v12 = vld [vmem:[#allocation11 + $0x168] sm:$0xff]  ;;  %305 = vmatpush1.msra.mxu0 %v290_v48  ;;  %v287_v51 = vld [vmem:[#allocation10 + $0xd8] sm:$0xff]  ;;  %s4034_s28 = scalar_lea.vmem %s3195_s30, 256  ;;  %p4039_p4 = scmp.lt.s32.totalorder %s3195_s30, %s3195_s30 }
  0x7c   :  { %470 = vmatpush1.msra.mxu1 %v437_v6  ;;  %v425_v13 = vld [vmem:[#allocation11 + $0x160] sm:$0xff]  ;;  %v422_v14 = vld [vmem:[#allocation11 + $0x148] sm:$0xff]  ;;  %v286_v52 = vld [vmem:[#allocation10 + $0xd0] sm:$0xff]  ;;  %p4035_p3 = scmp.ne.s32.totalorder %s3195_s30, %s4034_s28  ;;  %p4040_p5 = scmp.lt.s32.totalorder %s4034_s28, %s4034_s28 }
  0x7d   :  { %v185_v2 = vld [vmem:[%s4621_s16] sm:$0xff]  ;;  %v186_v7 = vld [vmem:[%s4621_s16 + $0x8] sm:$0xff]  ;;  %471 = vmatprep.subr.mxu1 %v434_v8  ;;  %v418_v16 = vld [vmem:[#allocation11 + $0x128] sm:$0xff] }
  0x7e   :  { %196 = vperm.xlu0 %3799, %v185_v2   ;;  %472 = vmatpush1.msra.mxu1 %v433_v9  ;;  %v421_v15 = vld [vmem:[#allocation11 + $0x140] sm:$0xff]  ;;  %v414_v18 = vld [vmem:[#allocation11 + $0x108] sm:$0xff]  ;;  %v187_v36 = vld [vmem:[%s4622_s8] sm:$0xff]  ;;  %p4041_p6 = por %p4040_p5, %p4039_p4 }
  0x7f   :  { %473 = vmatprep.subr.mxu1 %v430_v10  ;;  %v417_v17 = vld [vmem:[#allocation11 + $0x120] sm:$0xff]  ;;  %v410_v20 = vld [vmem:[#allocation11 + $0xe8] sm:$0xff]  ;;  %v189_v37 = vmul.f32 5.656854, %v187_v36  ;;  %v283_v55 = vld [vmem:[#allocation10 + $0xb8] sm:$0xff] }
  0x80   :  { %474 = vmatpush1.msra.mxu1 %v429_v11  ;;  %v413_v19 = vld [vmem:[#allocation11 + $0x100] sm:$0xff]  ;;  %v406_v22 = vld [vmem:[#allocation11 + $0xc8] sm:$0xff]  ;;  %v4265_v58 = vld [vmem:[#allocation5] ss:$0 sm:$0xff]  ;;  %p4042_p7 = pnand %p4041_p6, %p4035_p3 }
  0x81   :  { %475 = vmatprep.subr.mxu1 %v426_v12  ;;  %v409_v21 = vld [vmem:[#allocation11 + $0xe0] sm:$0xff]  ;;  %v402_v24 = vld [vmem:[#allocation11 + $0xa8] sm:$0xff]  ;;  %v192_v40 = vadd.f32 %v191_v38, %v189_v37  ;;  %v282_v4 = vld [vmem:[#allocation10 + $0xb0] sm:$0xff] }
  0x82   :  { %201 = vperm.xlu0 %3799, %v186_v7   ;;  %476 = vmatpush1.msra.mxu1 %v425_v13  ;;  %v405_v23 = vld [vmem:[#allocation11 + $0xc0] sm:$0xff]  ;;  %v398_v26 = vld [vmem:[#allocation11 + $0x88] sm:$0xff]  ;;  %v279_v7 = vld [vmem:[#allocation10 + $0x98] sm:$0xff] }
  0x83   :  { %477 = vmatprep.subr.mxu1 %v422_v14  ;;  %v401_v25 = vld [vmem:[#allocation11 + $0xa0] sm:$0xff]  ;;  %v394_v28 = vld [vmem:[#allocation11 + $0x68] sm:$0xff]  ;;  %v278_v8 = vld [vmem:[#allocation10 + $0x90] sm:$0xff] }
  0x84   :  { %478 = vmatpush1.msra.mxu1 %v421_v15  ;;  %v397_v27 = vld [vmem:[#allocation11 + $0x80] sm:$0xff]  ;;  %v390_v30 = vld [vmem:[#allocation11 + $0x48] sm:$0xff]  ;;  %v275_v11 = vld [vmem:[#allocation10 + $0x78] sm:$0xff] }
  0x85   :  { %479 = vmatprep.subr.mxu1 %v418_v16  ;;  %v393_v29 = vld [vmem:[#allocation11 + $0x60] sm:$0xff]  ;;  %v386_v32 = vld [vmem:[#allocation11 + $0x28] sm:$0xff]  ;;  %v274_v12 = vld [vmem:[#allocation10 + $0x70] sm:$0xff] }
  0x86   :  { %480 = vmatpush1.msra.mxu1 %v417_v17  ;;  %v389_v31 = vld [vmem:[#allocation11 + $0x40] sm:$0xff]  ;;  %v382_v34 = vld [vmem:[#allocation11 + $0x8] sm:$0xff]  ;;  %v271_v15 = vld [vmem:[#allocation10 + $0x58] sm:$0xff] }
  0x87   :  { %481 = vmatprep.subr.mxu1 %v414_v18  ;;  %v385_v33 = vld [vmem:[#allocation11 + $0x20] sm:$0xff]  ;;  %v289_v49 = vld [vmem:[#allocation10 + $0xe8] sm:$0xff]  ;;  %v270_v16 = vld [vmem:[#allocation10 + $0x50] sm:$0xff] }
  0x88   :  { %482 = vmatpush1.msra.mxu1 %v413_v19  ;;  %v381_v35 = vld [vmem:[#allocation11] sm:$0xff]  ;;  %306 = vmatprep.subr.mxu0 %v289_v49  ;;  %v285_v53 = vld [vmem:[#allocation10 + $0xc8] sm:$0xff]  ;;  %v267_v19 = vld [vmem:[#allocation10 + $0x38] sm:$0xff] }
  0x89   :  { %483 = vmatprep.subr.mxu1 %v410_v20  ;;  %v188_v39 = vld [vmem:[%s4622_s8 + $0x8] sm:$0xff]  ;;  %v281_v5 = vld [vmem:[#allocation10 + $0xa8] sm:$0xff]  ;;  %v266_v20 = vld [vmem:[#allocation10 + $0x30] sm:$0xff] }
  0x8a   :  { %484 = vmatpush1.msra.mxu1 %v409_v21  ;;  %v190_v41 = vmul.f32 5.656854, %v188_v39  ;;  %v288_v50 = vld [vmem:[#allocation10 + $0xe0] sm:$0xff]  ;;  %v277_v9 = vld [vmem:[#allocation10 + $0x88] sm:$0xff]  ;;  %v3212_v48 = vld [vmem:[#allocation8] ss:$0 sm:$0xff] }
  0x8b   :  { %485 = vmatprep.subr.mxu1 %v406_v22  ;;  %307 = vmatpush1.msra.mxu0 %v288_v50  ;;  %v284_v54 = vld [vmem:[#allocation10 + $0xc0] sm:$0xff]  ;;  %v273_v13 = vld [vmem:[#allocation10 + $0x68] sm:$0xff] }
  0x8c   :  { %486 = vmatpush1.msra.mxu1 %v405_v23  ;;  %v193_v44 = vadd.f32 %v191_v38, %v190_v41  ;;  %308 = vmatprep.subr.mxu0 %v287_v51  ;;  %v280_v6 = vld [vmem:[#allocation10 + $0xa0] sm:$0xff]  ;;  %v269_v17 = vld [vmem:[#allocation10 + $0x48] sm:$0xff]  ;;  %v263_v23 = vld [vmem:[#allocation10 + $0x18] sm:$0xff] }
  0x8d   :  { %487 = vmatprep.subr.mxu1 %v402_v24  ;;  %309 = vmatpush1.msra.mxu0 %v286_v52  ;;  %v276_v10 = vld [vmem:[#allocation10 + $0x80] sm:$0xff]  ;;  %v265_v21 = vld [vmem:[#allocation10 + $0x28] sm:$0xff]  ;;  %v262_v24 = vld [vmem:[#allocation10 + $0x10] sm:$0xff] }
  0x8e   :  { %488 = vmatpush1.msra.mxu1 %v401_v25  ;;  %310 = vmatprep.subr.mxu0 %v285_v53  ;;  %v272_v14 = vld [vmem:[#allocation10 + $0x60] sm:$0xff]  ;;  %v261_v25 = vld [vmem:[#allocation10 + $0x8] sm:$0xff]  ;;  %v443_v52 = vld [vmem:[#allocation11 + $0x1f0] sm:$0xff] }
  0x8f   :  { %489 = vmatprep.subr.mxu1 %v398_v26  ;;  %311 = vmatpush1.msra.mxu0 %v284_v54  ;;  %v268_v18 = vld [vmem:[#allocation10 + $0x40] sm:$0xff]  ;;  %v440_v54 = vld [vmem:[#allocation11 + $0x1d8] sm:$0xff] }
  0x90   :  { %490 = vmatpush1.msra.mxu1 %v397_v27  ;;  %312 = vmatprep.subr.mxu0 %v283_v55  ;;  %v264_v22 = vld [vmem:[#allocation10 + $0x20] sm:$0xff]  ;;  %v444_v27 = vld [vmem:[#allocation11 + $0x1f8] sm:$0xff]  ;;  %v439_v55 = vld [vmem:[#allocation11 + $0x1d0] sm:$0xff] }
  0x91   :  { %491 = vmatprep.subr.mxu1 %v394_v28  ;;  %313 = vmatpush1.msra.mxu0 %v282_v4  ;;  %v260_v26 = vld [vmem:[#allocation10] sm:$0xff]  ;;  %v206_v28 = vlaneseq  ;;  %v420_v4 = vld [vmem:[#allocation11 + $0x138] sm:$0xff] }
  0x92   :  { %492 = vmatpush1.msra.mxu1 %v393_v29  ;;  %314 = vmatprep.subr.mxu0 %v281_v5  ;;  %v419_v5 = vld [vmem:[#allocation11 + $0x130] sm:$0xff] }
  0x93   :  { %493 = vmatprep.subr.mxu1 %v390_v30  ;;  %315 = vmatpush1.msra.mxu0 %v280_v6  ;;  %v4280_v29 = vshrl.u32 %v206_v28, 7  ;;  %v416_v6 = vld [vmem:[#allocation11 + $0x118] sm:$0xff] }
  0x94   :  { %494 = vmatpush1.msra.mxu1 %v389_v31  ;;  %316 = vmatprep.subr.mxu0 %v279_v7  ;;  %v4288_v31 = vld [vmem:[%s4599_s9] sm:$0xf] }
  0x95   :  { %495 = vmatprep.subr.mxu1 %v386_v32  ;;  %317 = vmatpush1.msra.mxu0 %v278_v8  ;;  %v4283_v30 = vsub.s32 0, %v4280_v29  ;;  %v415_v7 = vld [vmem:[#allocation11 + $0x110] sm:$0xff]  ;;  %v412_v8 = vld [vmem:[#allocation11 + $0xf8] sm:$0xff] }
  0x96   :  { %496 = vmatpush1.msra.mxu1 %v385_v33  ;;  %318 = vmatprep.subr.mxu0 %v277_v9  ;;  %v411_v9 = vld [vmem:[#allocation11 + $0xf0] sm:$0xff] }
  0x97   :  { %497 = vmatprep.subr.mxu1 %v382_v34  ;;  %319 = vmatpush1.msra.mxu0 %v276_v10  ;;  %v4292_v32 = vrot.slane %v4288_v31, %v4283_v30  ;;  %v408_v10 = vld [vmem:[#allocation11 + $0xd8] sm:$0xff] }
  0x98   :  { %498 = vmatpush1.msra.mxu1 %v381_v35  ;;  %320 = vmatprep.subr.mxu0 %v275_v11  ;;  %v407_v11 = vld [vmem:[#allocation11 + $0xd0] sm:$0xff] }
  0x99   :  { %3418 = vmatprep.subr.mxu1 %v4083_v1  ;;  %321 = vmatpush1.msra.mxu0 %v274_v12  ;;  %v404_v12 = vld [vmem:[#allocation11 + $0xb8] sm:$0xff] }
  0x9a   :  { %322 = vmatprep.subr.mxu0 %v273_v13  ;;  %v403_v13 = vld [vmem:[#allocation11 + $0xb0] sm:$0xff] }
  0x9b   :  { %323 = vmatpush1.msra.mxu0 %v272_v14  ;;  %v400_v14 = vld [vmem:[#allocation11 + $0x98] sm:$0xff] }
  0x9c   :  { %324 = vmatprep.subr.mxu0 %v271_v15  ;;  %v399_v15 = vld [vmem:[#allocation11 + $0x90] sm:$0xff] }
  0x9d   :  { %325 = vmatpush1.msra.mxu0 %v270_v16  ;;  %v396_v16 = vld [vmem:[#allocation11 + $0x78] sm:$0xff] }
  0x9e   :  { %326 = vmatprep.subr.mxu0 %v269_v17  ;;  %v395_v17 = vld [vmem:[#allocation11 + $0x70] sm:$0xff] }
  0x9f   :  { %327 = vmatpush1.msra.mxu0 %v268_v18  ;;  %v392_v18 = vld [vmem:[#allocation11 + $0x58] sm:$0xff] }
  0xa0   :  { %328 = vmatprep.subr.mxu0 %v267_v19  ;;  %v391_v19 = vld [vmem:[#allocation11 + $0x50] sm:$0xff] }
  0xa1   :  { %329 = vmatpush1.msra.mxu0 %v266_v20  ;;  %v388_v20 = vld [vmem:[#allocation11 + $0x38] sm:$0xff] }
  0xa2   :  { %330 = vmatprep.subr.mxu0 %v265_v21  ;;  %v387_v21 = vld [vmem:[#allocation11 + $0x30] sm:$0xff] }
  0xa3   :  { %331 = vmatpush1.msra.mxu0 %v264_v22  ;;  %v384_v22 = vld [vmem:[#allocation11 + $0x18] sm:$0xff] }
  0xa4   :  { %332 = vmatprep.subr.mxu0 %v263_v23  ;;  %v383_v23 = vld [vmem:[#allocation11 + $0x10] sm:$0xff] }
  0xa5   :  { %333 = vmatpush1.msra.mxu0 %v262_v24  ;;  %v4314_v24 = vld [vmem:[%s4597_s7] sm:$0x3] }
  0xa6   :  { %334 = vmatprep.subr.mxu0 %v261_v25 }
  0xa7   :  { %335 = vmatpush1.msra.mxu0 %v260_v26  ;;  %v297_v26 = vrot.slane %v4314_v24, %v4283_v30 }
  0xa8   :  { %544 = vmatprep.subr.mxu0 %v444_v27 }
  0xf9   :  { %v4250_v42 = vpop.permute.xlu0 %196 }
  0xfa   :  { %v4253_v43 = vmul.f32 %v4250_v42, %v192_v40 }
  0xfc   :  { %214 = vadd.xlane.f32.xlu1 %v4253_v43  ;;  %532 = vmatmul.mubr.f32.vlgmr.msra.gmra.mxu1 %v4253_v43 }
  0xfd   :  { %v4257_v45 = vpop.permute.xlu0 %201  ;;  %537 = vmatprep.mubr.f32.mxu1 %v4083_v1 }
  0xfe   :  { %v4261_v46 = vmul.f32 %v4257_v45, %v193_v44  ;;  %v3211_v44 = vld [vmem:[#allocation7] ss:$0 sm:$0xff] }
 0x100   :  { %216 = vadd.xlane.f32.xlu1 %v4261_v46  ;;  %538 = vmatmul.mubr.f32.gmra.mxu1 %v4261_v46 }
 0x101   :  { %3420 = vmatprep.mubr.msk.f32.mxu1 %vm4084_vm0, %v4083_v1 }
 0x185   :  { %v215_v56 = vpop.xlane.xlu1 %214 }
 0x186   :  { %v218_v57 = vmul.f32 0.03125, %v215_v56 }
 0x188   :  { %v220_v59 = vsub.f32 %v4253_v43, %v218_v57  ;;  %v436_v57 = vld [vmem:[#allocation11 + $0x1b8] sm:$0xff] }
 0x189   :  { %v217_v60 = vpop.xlane.xlu1 %216 }
 0x18a   :  { %v219_v61 = vmul.f32 0.03125, %v217_v60  ;;  %v4269_v62 = vmul.f32 %v4265_v58, %v220_v59  ;;  %v435_v60 = vld [vmem:[#allocation11 + $0x1b0] sm:$0xff] }
 0x18c   :  { %v221_v63 = vsub.f32 %v4261_v46, %v219_v61  ;;  %v230_v0 = vmul.f32 %v4269_v62, %v4269_v62  ;;  %v432_v61 = vld [vmem:[#allocation11 + $0x198] sm:$0xff] }
 0x18e   :  { %232 = vadd.xlane.f32.xlu0 %v230_v0  ;;  %v4275_v2 = vmul.f32 %v4265_v58, %v221_v63  ;;  %v428_v63 = vld [vmem:[#allocation11 + $0x178] sm:$0xff]  ;;  %v427_v0 = vld [vmem:[#allocation11 + $0x170] sm:$0xff] }
 0x190   :  { %v231_v3 = vmul.f32 %v4275_v2, %v4275_v2 }
 0x192   :  { %234 = vadd.xlane.f32.xlu1 %v231_v3  ;;  %v423_v3 = vld [vmem:[#allocation11 + $0x150] sm:$0xff] }
 0x1bc   :  { %v533_v33 = vpop.f32.mrf.mxu1 }
 0x1bd   :  { %v534_v34 = vadd.f32 %v533_v33, %v4292_v32 }
 0x1be   :  { %v4316_v25 = vpop.f32.mrf.mxu1 }
 0x1bf   :  { %3419 = vmatpush3.xpose.msra.mxu1 %v534_v34 }
 0x1c0   :  { %3423 = vmatprep.subr.mxu1 %v4083_v1  ;;  %v539_v27 = vpop.f32.mrf.mxu1 }
 0x1c1   :  { %v540_v34 = vadd.f32 %v539_v27, %v4292_v32 }
 0x217   :  { %v233_v35 = vpop.xlane.xlu0 %232 }
 0x218   :  { %v236_v36 = vmul.f32 0.03125, %v233_v35 }
 0x21a   :  { %v238_v37 = vadd.f32 1e-08, %v236_v36 }
 0x21b   :  { %v235_v38 = vpop.xlane.xlu1 %234 }
 0x21c   :  { %3800 = vrsqrt.f32 %v238_v37  ;;  %v237_v39 = vmul.f32 0.03125, %v235_v38  ;;  %v457_v37 = vsub.s32 2, %v4280_v29 }
 0x21e   :  { %v239_v40 = vadd.f32 1e-08, %v237_v39  ;;  %v458_v32 = vrot.slane %v4288_v31, %v457_v37 }
 0x220   :  { %3802 = vrsqrt.f32 %v239_v40 }
 0x229   :  { %v3801_v41 = vpop.eup %3800 }
 0x22a   :  { %v242_v47 = vmul.f32 %v3801_v41, %v4269_v62  ;;  %v431_v62 = vld [vmem:[#allocation11 + $0x190] sm:$0xff]  ;;  %v209_v41 = vand.u32 127, %v206_v28 }
 0x22c   :  { %v250_v49 = vmul.f32 %v3211_v44, %v242_v47  ;;  %vm210_vm1 = vcmp.le.s32.totalorder %v209_v41, %v4280_v29  ;;  %v4085_v47 = vmov -1e+30  }
 0x22d   :  { %v3803_v50 = vpop.eup %3802 }
 0x22e   :  { %v4297_v51 = vadd.f32 %v3212_v48, %v250_v49  ;;  %v243_v53 = vmul.f32 %v3803_v50, %v4275_v2  ;;  %v424_v2 = vld [vmem:[#allocation11 + $0x158] sm:$0xff] }
 0x230   :  { %369 = vmatmul.mubr.f32.vlgmr.msra.gmra.mxu0 %v4297_v51  ;;  %v251_v56 = vmul.f32 %v3211_v44, %v243_v53  ;;  %v541_v44 = vpop.f32.mrf.mxu1 }
 0x231   :  { %545 = vmatpush1.msra.mxu0 %v443_v52  ;;  %374 = vmatprep.mubr.f32.mxu0 %v4083_v1 }
 0x232   :  { %546 = vmatprep.subr.mxu0 %v440_v54  ;;  %v4302_v59 = vadd.f32 %v3212_v48, %v251_v56  ;;  %v4337_v48 = vsel %vm210_vm1, 0.0, %v4085_v47 }
 0x233   :  { %547 = vmatpush1.msra.mxu0 %v439_v55 }
 0x234   :  { %548 = vmatprep.subr.mxu0 %v436_v57  ;;  %375 = vmatmul.mubr.f32.gmra.mxu0 %v4302_v59 }
 0x235   :  { %549 = vmatpush1.msra.mxu0 %v435_v60  ;;  %608 = vmatprep.mubr.f32.mxu0 %v4083_v1 }
 0x236   :  { %550 = vmatprep.subr.mxu0 %v432_v61 }
 0x237   :  { %551 = vmatpush1.msra.mxu0 %v431_v62 }
 0x238   :  { %552 = vmatprep.subr.mxu0 %v428_v63 }
 0x239   :  { %553 = vmatpush1.msra.mxu0 %v427_v0 }
 0x23a   :  { %554 = vmatprep.subr.mxu0 %v424_v2 }
 0x23b   :  { %555 = vmatpush1.msra.mxu0 %v423_v3 }
 0x23c   :  { %556 = vmatprep.subr.mxu0 %v420_v4 }
 0x23d   :  { %557 = vmatpush1.msra.mxu0 %v419_v5 }
 0x23e   :  { %558 = vmatprep.subr.mxu0 %v416_v6 }
 0x23f   :  { %559 = vmatpush1.msra.mxu0 %v415_v7 }
 0x240   :  { %560 = vmatprep.subr.mxu0 %v412_v8 }
 0x241   :  { %561 = vmatpush1.msra.mxu0 %v411_v9  ;;  %v4346_v9 = vsub.s32 1, %v4280_v29 }
 0x242   :  { %562 = vmatprep.subr.mxu0 %v408_v10 }
 0x243   :  { %563 = vmatpush1.msra.mxu0 %v407_v11 }
 0x244   :  { %564 = vmatprep.subr.mxu0 %v404_v12 }
 0x245   :  { %565 = vmatpush1.msra.mxu0 %v403_v13  ;;  %v454_v13 = vrot.slane %v4288_v31, %v4346_v9 }
 0x246   :  { %566 = vmatprep.subr.mxu0 %v400_v14 }
 0x247   :  { %567 = vmatpush1.msra.mxu0 %v399_v15 }
 0x248   :  { %568 = vmatprep.subr.mxu0 %v396_v16  ;;  %v301_v16 = vrot.slane %v4314_v24, %v4346_v9 }
 0x249   :  { %569 = vmatpush1.msra.mxu0 %v395_v17 }
 0x24a   :  { %570 = vmatprep.subr.mxu0 %v392_v18  ;;  %v536_v18 = vadd.f32 %v4316_v25, %v454_v13 }
 0x24b   :  { %571 = vmatpush1.msra.mxu0 %v391_v19  ;;  %v461_v19 = vsub.s32 3, %v4280_v29 }
 0x24c   :  { %572 = vmatprep.subr.mxu0 %v388_v20 }
 0x24d   :  { %573 = vmatpush1.msra.mxu0 %v387_v21  ;;  %v542_v21 = vadd.f32 %v541_v44, %v454_v13 }
 0x24e   :  { %574 = vmatprep.subr.mxu0 %v384_v22  ;;  %v4366_v22 = vrot.slane %v4288_v31, %v461_v19 }
 0x24f   :  { %575 = vmatpush1.msra.mxu0 %v383_v23 }
 0x250   :  { %609 = vmatmul.mubr.f32.vlgmr.msra.gmra.mxu0 %v4253_v43 }
 0x251   :  { %614 = vmatprep.mubr.f32.mxu0 %v4083_v1 }
 0x254   :  { %615 = vmatmul.mubr.f32.gmra.mxu0 %v4261_v46 }
 0x2f0   :  { %v370_v43 = vpop.f32.mrf.mxu0 }
 0x2f1   :  { %v371_v33 = vadd.f32 %v370_v43, %v297_v26 }
 0x2f2   :  { %v4321_v46 = vpop.f32.mrf.mxu0 }
 0x2f3   :  { %3421 = vmatmul.mubr.f32.vlgmr.msra.gmra.mxu1 %v371_v33  ;;  %v373_v20 = vadd.f32 %v4321_v46, %v301_v16 }
 0x2f4   :  { %3424 = vmatpush3.xpose.msra.mxu1 %v540_v34  ;;  %v376_v35 = vpop.f32.mrf.mxu0  ;;  %3425 = vmatprep.mubr.msk.f32.mxu1 %vm4084_vm0, %v4083_v1 }
 0x2f5   :  { %v377_v36 = vadd.f32 %v376_v35, %v297_v26  ;;  %3428 = vmatprep.subr.mxu1 %v4083_v1 }
 0x2f6   :  { %v4332_v38 = vpop.f32.mrf.mxu0 }
 0x2f7   :  { %3426 = vmatmul.mubr.f32.vlgmr.msra.gmra.mxu1 %v377_v36  ;;  %v379_v23 = vadd.f32 %v4332_v38, %v301_v16 }
 0x2f8   :  { %3430 = vmatprep.mubr.msk.f32.mxu1 %vm4084_vm0, %v4083_v1 }
 0x310   :  { %v610_v39 = vpop.f32.mrf.mxu0 }
 0x311   :  { %v611_v40 = vadd.f32 %v610_v39, %v458_v32 }
 0x312   :  { %v612_v8 = vpop.f32.mrf.mxu0 }
 0x313   :  { %3429 = vmatpush3.msra.mxu1 %v611_v40  ;;  %v613_v24 = vadd.f32 %v612_v8, %v4366_v22 }
 0x314   :  { %3433 = vmatprep.subr.mxu1 %v4083_v1  ;;  %v616_v10 = vpop.f32.mrf.mxu0 }
 0x315   :  { %v617_v14 = vadd.f32 %v616_v10, %v458_v32 }
 0x316   :  { %v618_v10 = vpop.f32.mrf.mxu0 }
 0x317   :  { %v619_v13 = vadd.f32 %v618_v10, %v4366_v22  ;;  %v940_v22 = vld [vmem:[#allocation13 + $0x50] sm:$0xff] }
 0x318   :  { %v1483_v10 = vld [vmem:[#allocation14 + $0x50] sm:$0xff] }
 0x3b3   :  { %v687_v49 = vpop.f32.mrf.mxu1 }
 0x3b4   :  { %v688_v50 = vadd.f32 %v687_v49, %v4337_v48 }
 0x3b5   :  { %v3422_v52 = vpop.f32.mrf.mxu1 }
 0x3b6   :  { %v762_v53 = vsel %vm761_vm2, %v688_v50, -inf }
 0x3b7   :  { %763 = vmax.xlane.f32.xlu1 %v762_v53  ;;  %v757_v54 = vpop.f32.mrf.mxu1 }
 0x3b8   :  { %v758_v55 = vadd.f32 %v757_v54, %v4337_v48 }
 0x3b9   :  { %v3427_v56 = vpop.f32.mrf.mxu1 }
 0x3ba   :  { %v765_v28 = vsel %vm761_vm2, %v758_v55, -inf  ;;  %v1268_v56 = vld [vmem:[#allocation13 + $0xf0] sm:$0xff] }
 0x3bb   :  { %766 = vmax.xlane.f32.xlu1 %v765_v28  ;;  %v1267_v28 = vld [vmem:[#allocation13 + $0xe8] sm:$0xff] }
 0x440   :  { %v764_v57 = vpop.xlane.xlu1 %763 }
 0x441   :  { %v768_v60 = vsub.f32 %v688_v50, %v764_v57  ;;  %v1266_v57 = vld [vmem:[#allocation13 + $0xe0] sm:$0xff] }
 0x443   :  { %v770_v61 = vmul.f32 1.442695, %v768_v60  ;;  %v1265_v60 = vld [vmem:[#allocation13 + $0xd8] sm:$0xff] }
 0x444   :  { %v767_v62 = vpop.xlane.xlu1 %766 }
 0x445   :  { %3804 = vpow2.f32 %v770_v61  ;;  %v769_v63 = vsub.f32 %v758_v55, %v767_v62  ;;  %v1269_v55 = vld [vmem:[#allocation13 + $0xf8] sm:$0xff]  ;;  %v1264_v61 = vld [vmem:[#allocation13 + $0xd0] sm:$0xff]  ;;  %v1263_v62 = vld [vmem:[#allocation13 + $0xc8] sm:$0xff] }
 0x446   :  { %3458 = vmatprep.subr.mxu0 %v1269_v55 }
 0x447   :  { %v772_v0 = vmul.f32 1.442695, %v769_v63  ;;  %3459 = vmatpush3.msra.mxu0 %v1269_v55  ;;  %v1262_v63 = vld [vmem:[#allocation13 + $0xc0] sm:$0xff] }
 0x448   :  { %3460 = vmatprep.subr.mxu0 %v1268_v56 }
 0x449   :  { %3806 = vpow2.f32 %v772_v0  ;;  %3461 = vmatpush3.msra.mxu0 %v1268_v56  ;;  %v1261_v0 = vld [vmem:[#allocation13 + $0xb8] sm:$0xff] }
 0x44a   :  { %3462 = vmatprep.subr.mxu0 %v1267_v28 }
 0x44b   :  { %3463 = vmatpush3.msra.mxu0 %v1267_v28 }
 0x44c   :  { %3464 = vmatprep.subr.mxu0 %v1266_v57 }
 0x44d   :  { %3465 = vmatpush3.msra.mxu0 %v1266_v57  ;;  %v1488_v57 = vld [vmem:[#allocation14 + $0x78] sm:$0xff] }
 0x44e   :  { %3466 = vmatprep.subr.mxu0 %v1265_v60 }
 0x44f   :  { %3467 = vmatpush3.msra.mxu0 %v1265_v60  ;;  %v1487_v60 = vld [vmem:[#allocation14 + $0x70] sm:$0xff] }
 0x450   :  { %3468 = vmatprep.subr.mxu0 %v1264_v61 }
 0x451   :  { %3469 = vmatpush3.msra.mxu0 %v1264_v61  ;;  %v1486_v61 = vld [vmem:[#allocation14 + $0x68] sm:$0xff] }
 0x452   :  { %v3805_v2 = vpop.eup %3804  ;;  %3470 = vmatprep.subr.mxu0 %v1263_v62 }
 0x453   :  { %v774_v3 = vsel %vm761_vm2, %v3805_v2, 0.0  ;;  %3471 = vmatpush3.msra.mxu0 %v1263_v62 }
 0x454   :  { %775 = vadd.xlane.f32.xlu1 %v774_v3  ;;  %3472 = vmatprep.subr.mxu0 %v1262_v63  ;;  %v1259_v3 = vld [vmem:[#allocation13 + $0xa8] sm:$0xff] }
 0x455   :  { %3473 = vmatpush3.msra.mxu0 %v1262_v63 }
 0x456   :  { %v3807_v4 = vpop.eup %3806  ;;  %3474 = vmatprep.subr.mxu0 %v1261_v0 }
 0x457   :  { %v777_v5 = vsel %vm761_vm2, %v3807_v4, 0.0  ;;  %3475 = vmatpush3.msra.mxu0 %v1261_v0 }
 0x458   :  { %778 = vadd.xlane.f32.xlu1 %v777_v5  ;;  %v1257_v5 = vld [vmem:[#allocation13 + $0x98] sm:$0xff] }
 0x4dd   :  { %v776_v6 = vpop.xlane.xlu1 %775 }
 0x4de   :  { %3808 = vrcp.f32 %v776_v6  ;;  %v1256_v6 = vld [vmem:[#allocation13 + $0x90] sm:$0xff] }
 0x4e1   :  { %v779_v7 = vpop.xlane.xlu1 %778 }
 0x4e2   :  { %3810 = vrcp.f32 %v779_v7 }
 0x4eb   :  { %v3809_v11 = vpop.eup %3808 }
 0x4ec   :  { %v782_v12 = vmul.f32 %v3809_v11, %v3805_v2  ;;  %v1260_v2 = vld [vmem:[#allocation13 + $0xb0] sm:$0xff] }
 0x4ed   :  { %3476 = vmatprep.subr.mxu0 %v1260_v2 }
 0x4ee   :  { %3431 = vmatmul.mubr.msk.f32.vlgmr.msra.gmra.mxu1 %vm761_vm2, %v782_v12  ;;  %3477 = vmatpush3.msra.mxu0 %v1260_v2 }
 0x4ef   :  { %v3811_v15 = vpop.eup %3810  ;;  %3434 = vmatpush3.msra.mxu1 %v617_v14  ;;  %3435 = vmatprep.mubr.msk.f32.mxu1 %vm4084_vm0, %v4083_v1  ;;  %v945_v14 = vld [vmem:[#allocation13 + $0x78] sm:$0xff] }
 0x4f0   :  { %3438 = vmatprep.subr.mxu1 %v4083_v1  ;;  %v783_v17 = vmul.f32 %v3811_v15, %v3807_v4  ;;  %v1258_v4 = vld [vmem:[#allocation13 + $0xa0] sm:$0xff]  ;;  %3478 = vmatprep.subr.mxu0 %v1259_v3 }
 0x4f1   :  { %3479 = vmatpush3.msra.mxu0 %v1259_v3 }
 0x4f2   :  { %3436 = vmatmul.mubr.msk.f32.vlgmr.msra.gmra.mxu1 %vm761_vm2, %v783_v17  ;;  %3480 = vmatprep.subr.mxu0 %v1258_v4  ;;  %v944_v17 = vld [vmem:[#allocation13 + $0x70] sm:$0xff] }
 0x4f3   :  { %3439 = vmatpush3.xpose.msra.mxu1 %v536_v18  ;;  %3440 = vmatprep.mubr.msk.f32.mxu1 %vm4084_vm0, %v4083_v1  ;;  %v943_v18 = vld [vmem:[#allocation13 + $0x68] sm:$0xff] }
 0x4f4   :  { %3443 = vmatprep.subr.mxu1 %v4083_v1  ;;  %3481 = vmatpush3.msra.mxu0 %v1258_v4 }
 0x4f5   :  { %3482 = vmatprep.subr.mxu0 %v1257_v5 }
 0x4f6   :  { %3441 = vmatmul.mubr.f32.vlgmr.msra.gmra.mxu1 %v373_v20  ;;  %3483 = vmatpush3.msra.mxu0 %v1257_v5  ;;  %v942_v20 = vld [vmem:[#allocation13 + $0x60] sm:$0xff] }
 0x4f7   :  { %3444 = vmatpush3.xpose.msra.mxu1 %v542_v21  ;;  %3445 = vmatprep.mubr.msk.f32.mxu1 %vm4084_vm0, %v4083_v1  ;;  %v941_v21 = vld [vmem:[#allocation13 + $0x58] sm:$0xff] }
 0x4f8   :  { %3448 = vmatprep.subr.mxu1 %v4083_v1  ;;  %3484 = vmatprep.subr.mxu0 %v1256_v6 }
 0x4f9   :  { %3485 = vmatpush3.msra.mxu0 %v1256_v6 }
 0x4fa   :  { %3446 = vmatmul.mubr.f32.vlgmr.msra.gmra.mxu1 %v379_v23  ;;  %v939_v23 = vld [vmem:[#allocation13 + $0x48] sm:$0xff] }
 0x4fb   :  { %3449 = vmatpush3.msra.mxu1 %v613_v24  ;;  %3450 = vmatprep.mubr.msk.f32.mxu1 %vm4084_vm0, %v4083_v1  ;;  %v938_v24 = vld [vmem:[#allocation13 + $0x40] sm:$0xff] }
 0x4fc   :  { %3453 = vmatprep.subr.mxu1 %v4083_v1 }
 0x5ae   :  { %v4376_v31 = vpop.f32.mrf.mxu1 }
 0x5b0   :  { %v3432_v25 = vpop.f32.mrf.mxu1 }
 0x5b1   :  { %v937_v25 = vld [vmem:[#allocation13 + $0x38] sm:$0xff] }
 0x5b2   :  { %v4378_v26 = vpop.f32.mrf.mxu1 }
 0x5b4   :  { %v3437_v27 = vpop.f32.mrf.mxu1 }
 0x5b5   :  { %v935_v27 = vld [vmem:[#allocation13 + $0x28] sm:$0xff] }
 0x5b6   :  { %v1012_v43 = vpop.f32.mrf.mxu1 }
 0x5b7   :  { %v1013_v33 = vadd.f32 %v1012_v43, %v4337_v48  ;;  %v934_v43 = vld [vmem:[#allocation13 + $0x20] sm:$0xff] }
 0x5b8   :  { %v3442_v34 = vpop.f32.mrf.mxu1 }
 0x5b9   :  { %v1086_v46 = vsel %vm761_vm2, %v1013_v33, -inf  ;;  %v932_v34 = vld [vmem:[#allocation13 + $0x10] sm:$0xff] }
 0x5ba   :  { %1087 = vmax.xlane.f32.xlu1 %v1086_v46  ;;  %v1082_v35 = vpop.f32.mrf.mxu1  ;;  %v931_v46 = vld [vmem:[#allocation13 + $0x8] sm:$0xff] }
 0x5bb   :  { %v1083_v36 = vadd.f32 %v1082_v35, %v4337_v48  ;;  %v930_v35 = vld [vmem:[#allocation13] sm:$0xff] }
 0x5bc   :  { %v3447_v32 = vpop.f32.mrf.mxu1 }
 0x5bd   :  { %v1089_v38 = vsel %vm761_vm2, %v1083_v36, -inf  ;;  %v1254_v32 = vld [vmem:[#allocation13 + $0x80] sm:$0xff] }
 0x5be   :  { %1090 = vmax.xlane.f32.xlu1 %v1089_v38 }
 0x643   :  { %v1088_v39 = vpop.xlane.xlu1 %1087 }
 0x644   :  { %v1092_v40 = vsub.f32 %v1013_v33, %v1088_v39  ;;  %v933_v33 = vld [vmem:[#allocation13 + $0x18] sm:$0xff] }
 0x646   :  { %v1094_v41 = vmul.f32 1.442695, %v1092_v40 }
 0x647   :  { %v1091_v44 = vpop.xlane.xlu1 %1090 }
 0x648   :  { %3812 = vpow2.f32 %v1094_v41  ;;  %v1093_v47 = vsub.f32 %v1083_v36, %v1091_v44  ;;  %v1255_v36 = vld [vmem:[#allocation13 + $0x88] sm:$0xff] }
 0x649   :  { %3486 = vmatprep.subr.mxu0 %v1255_v36 }
 0x64a   :  { %v1096_v49 = vmul.f32 1.442695, %v1093_v47  ;;  %3487 = vmatpush3.msra.mxu0 %v1255_v36 }
 0x64b   :  { %3488 = vmatprep.subr.mxu0 %v1254_v32 }
 0x64c   :  { %3814 = vpow2.f32 %v1096_v49  ;;  %3489 = vmatpush3.msra.mxu0 %v1254_v32  ;;  %v3217_v49 = vld [vmem:[%s4601_s11] ss:$0 sm:$0xff] }
 0x64d   :  { %3528 = vmatprep.subr.mxu0 %v1488_v57 }
 0x655   :  { %v3813_v50 = vpop.eup %3812 }
 0x656   :  { %v1098_v52 = vsel %vm761_vm2, %v3813_v50, 0.0 }
 0x657   :  { %1099 = vadd.xlane.f32.xlu1 %v1098_v52 }
 0x659   :  { %v3815_v53 = vpop.eup %3814 }
 0x65a   :  { %v1101_v54 = vsel %vm761_vm2, %v3815_v53, 0.0 }
 0x65b   :  { %1102 = vadd.xlane.f32.xlu0 %v1101_v54 }
 0x6e0   :  { %v1100_v7 = vpop.xlane.xlu1 %1099 }
 0x6e1   :  { %3816 = vrcp.f32 %v1100_v7  ;;  %v1485_v7 = vld [vmem:[#allocation14 + $0x60] sm:$0xff] }
 0x6e4   :  { %v1103_v8 = vpop.xlane.xlu0 %1102 }
 0x6e5   :  { %3818 = vrcp.f32 %v1103_v8  ;;  %v1484_v8 = vld [vmem:[#allocation14 + $0x58] sm:$0xff] }
 0x6ee   :  { %v3817_v11 = vpop.eup %3816 }
 0x6ef   :  { %v1106_v12 = vmul.f32 %v3817_v11, %v3813_v50  ;;  %v1482_v11 = vld [vmem:[#allocation14 + $0x48] sm:$0xff] }
 0x6f1   :  { %3451 = vmatmul.mubr.msk.f32.vlgmr.msra.gmra.mxu1 %vm761_vm2, %v1106_v12  ;;  %v1481_v12 = vld [vmem:[#allocation14 + $0x40] sm:$0xff] }
 0x6f2   :  { %v3819_v15 = vpop.eup %3818  ;;  %3454 = vmatpush3.msra.mxu1 %v619_v13  ;;  %3455 = vmatprep.mubr.msk.f32.mxu1 %vm4084_vm0, %v4083_v1  ;;  %v1479_v13 = vld [vmem:[#allocation14 + $0x30] sm:$0xff] }
 0x6f3   :  { %3493 = vmatprep.subr.mxu1 %v945_v14  ;;  %v1107_v16 = vmul.f32 %v3819_v15, %v3815_v53  ;;  %v1477_v15 = vld [vmem:[#allocation14 + $0x20] sm:$0xff] }
 0x6f5   :  { %3456 = vmatmul.mubr.msk.f32.vlgmr.msra.gmra.mxu1 %vm761_vm2, %v1107_v16  ;;  %v1476_v16 = vld [vmem:[#allocation14 + $0x18] sm:$0xff] }
 0x6f6   :  { %3494 = vmatpush3.msra.mxu1 %v945_v14  ;;  %3525 = vmatprep.mubr.f32.mxu1 %v4376_v31  ;;  %v936_v31 = vld [vmem:[#allocation13 + $0x30] sm:$0xff]  ;;  %v1478_v14 = vld [vmem:[#allocation14 + $0x28] sm:$0xff] }
 0x6f7   :  { %3495 = vmatprep.subr.mxu1 %v944_v17 }
 0x6f8   :  { %3496 = vmatpush3.msra.mxu1 %v944_v17  ;;  %v1475_v17 = vld [vmem:[#allocation14 + $0x10] sm:$0xff] }
 0x6f9   :  { %3497 = vmatprep.subr.mxu1 %v943_v18 }
 0x6fa   :  { %3498 = vmatpush3.msra.mxu1 %v943_v18  ;;  %v1474_v18 = vld [vmem:[#allocation14 + $0x8] sm:$0xff] }
 0x6fb   :  { %3499 = vmatprep.subr.mxu1 %v942_v20 }
 0x6fc   :  { %3500 = vmatpush3.msra.mxu1 %v942_v20  ;;  %v1473_v20 = vld [vmem:[#allocation14] sm:$0xff] }
 0x6fd   :  { %3501 = vmatprep.subr.mxu1 %v941_v21 }
 0x6fe   :  { %3502 = vmatpush3.msra.mxu1 %v941_v21  ;;  %v1588_v21 = vld [vmem:[#allocation16 + $0x78] sm:$0xff] }
 0x6ff   :  { %3503 = vmatprep.subr.mxu1 %v940_v22 }
 0x700   :  { %3504 = vmatpush3.msra.mxu1 %v940_v22  ;;  %v1587_v22 = vld [vmem:[#allocation16 + $0x70] sm:$0xff] }
 0x701   :  { %3505 = vmatprep.subr.mxu1 %v939_v23 }
 0x702   :  { %3506 = vmatpush3.msra.mxu1 %v939_v23  ;;  %v1586_v23 = vld [vmem:[#allocation16 + $0x68] sm:$0xff] }
 0x703   :  { %3507 = vmatprep.subr.mxu1 %v938_v24 }
 0x704   :  { %3508 = vmatpush3.msra.mxu1 %v938_v24  ;;  %v1585_v24 = vld [vmem:[#allocation16 + $0x60] sm:$0xff] }
 0x705   :  { %3509 = vmatprep.subr.mxu1 %v937_v25 }
 0x706   :  { %3510 = vmatpush3.msra.mxu1 %v937_v25  ;;  %v1584_v25 = vld [vmem:[#allocation16 + $0x58] sm:$0xff] }
 0x707   :  { %3511 = vmatprep.subr.mxu1 %v936_v31 }
 0x708   :  { %3512 = vmatpush3.msra.mxu1 %v936_v31  ;;  %v1583_v31 = vld [vmem:[#allocation16 + $0x50] sm:$0xff] }
 0x709   :  { %3513 = vmatprep.subr.mxu1 %v935_v27 }
 0x70a   :  { %3514 = vmatpush3.msra.mxu1 %v935_v27  ;;  %v1582_v27 = vld [vmem:[#allocation16 + $0x48] sm:$0xff] }
 0x70b   :  { %3515 = vmatprep.subr.mxu1 %v934_v43 }
 0x70c   :  { %3516 = vmatpush3.msra.mxu1 %v934_v43  ;;  %v1581_v43 = vld [vmem:[#allocation16 + $0x40] sm:$0xff] }
 0x70d   :  { %3517 = vmatprep.subr.mxu1 %v933_v33 }
 0x70e   :  { %3518 = vmatpush3.msra.mxu1 %v933_v33  ;;  %v1580_v33 = vld [vmem:[#allocation16 + $0x38] sm:$0xff] }
 0x70f   :  { %3519 = vmatprep.subr.mxu1 %v932_v34 }
 0x710   :  { %3520 = vmatpush3.msra.mxu1 %v932_v34  ;;  %v1579_v34 = vld [vmem:[#allocation16 + $0x30] sm:$0xff] }
 0x711   :  { %3521 = vmatprep.subr.mxu1 %v931_v46 }
 0x712   :  { %3522 = vmatpush3.msra.mxu1 %v931_v46  ;;  %v1578_v46 = vld [vmem:[#allocation16 + $0x28] sm:$0xff] }
 0x713   :  { %3523 = vmatprep.subr.mxu1 %v930_v35 }
 0x714   :  { %3524 = vmatpush3.msra.mxu1 %v930_v35  ;;  %v1577_v35 = vld [vmem:[#allocation16 + $0x20] sm:$0xff] }
 0x715   :  { %3526 = vmatmul.mubr.f32.vlgmr.msra.gmra.mxu1 %v4378_v26  ;;  %3563 = vmatprep.subr.mxu1 %v1588_v21 }
 0x716   :  { %3564 = vmatpush3.msra.mxu1 %v1588_v21  ;;  %v1872_v21 = vld [vmem:[#allocation11 + $0x2e8] sm:$0xff] }
 0x717   :  { %3565 = vmatprep.subr.mxu1 %v1587_v22 }
 0x718   :  { %3566 = vmatpush3.msra.mxu1 %v1587_v22  ;;  %v1871_v22 = vld [vmem:[#allocation11 + $0x2e0] sm:$0xff] }
 0x719   :  { %3567 = vmatprep.subr.mxu1 %v1586_v23 }
 0x71a   :  { %3568 = vmatpush3.msra.mxu1 %v1586_v23  ;;  %v1868_v23 = vld [vmem:[#allocation11 + $0x2c8] sm:$0xff] }
 0x71b   :  { %3569 = vmatprep.subr.mxu1 %v1585_v24 }
 0x71c   :  { %3570 = vmatpush3.msra.mxu1 %v1585_v24  ;;  %v1867_v24 = vld [vmem:[#allocation11 + $0x2c0] sm:$0xff] }
 0x71d   :  { %3571 = vmatprep.subr.mxu1 %v1584_v25 }
 0x71e   :  { %3572 = vmatpush3.msra.mxu1 %v1584_v25  ;;  %v1864_v25 = vld [vmem:[#allocation11 + $0x2a8] sm:$0xff] }
 0x71f   :  { %3573 = vmatprep.subr.mxu1 %v1583_v31 }
 0x720   :  { %3574 = vmatpush3.msra.mxu1 %v1583_v31  ;;  %v1863_v31 = vld [vmem:[#allocation11 + $0x2a0] sm:$0xff] }
 0x721   :  { %3575 = vmatprep.subr.mxu1 %v1582_v27 }
 0x722   :  { %3576 = vmatpush3.msra.mxu1 %v1582_v27  ;;  %v1860_v27 = vld [vmem:[#allocation11 + $0x288] sm:$0xff] }
 0x723   :  { %3577 = vmatprep.subr.mxu1 %v1581_v43 }
 0x724   :  { %3578 = vmatpush3.msra.mxu1 %v1581_v43  ;;  %v1859_v43 = vld [vmem:[#allocation11 + $0x280] sm:$0xff] }
 0x725   :  { %3579 = vmatprep.subr.mxu1 %v1580_v33 }
 0x726   :  { %3580 = vmatpush3.msra.mxu1 %v1580_v33  ;;  %v1856_v33 = vld [vmem:[#allocation11 + $0x268] sm:$0xff] }
 0x727   :  { %3581 = vmatprep.subr.mxu1 %v1579_v34 }
 0x728   :  { %3582 = vmatpush3.msra.mxu1 %v1579_v34  ;;  %v1855_v34 = vld [vmem:[#allocation11 + $0x260] sm:$0xff] }
 0x729   :  { %3583 = vmatprep.subr.mxu1 %v1578_v46 }
 0x72a   :  { %3584 = vmatpush3.msra.mxu1 %v1578_v46  ;;  %v1852_v46 = vld [vmem:[#allocation11 + $0x248] sm:$0xff] }
 0x72b   :  { %3585 = vmatprep.subr.mxu1 %v1577_v35 }
 0x72c   :  { %3586 = vmatpush3.msra.mxu1 %v1577_v35  ;;  %v1851_v35 = vld [vmem:[#allocation11 + $0x240] sm:$0xff] }
 0x7b1   :  { %v1177_v38 = vpop.f32.mrf.mxu1 }
 0x7b2   :  { %3490 = vmatprep.mubr.f32.mxu0 %v1177_v38 }
 0x7b3   :  { %v3452_v39 = vpop.f32.mrf.mxu1 }
 0x7b5   :  { %v1250_v40 = vpop.f32.mrf.mxu1 }
 0x7b6   :  { %3491 = vmatmul.mubr.f32.vlgmr.msra.gmra.mxu0 %v1250_v40 }
 0x7b7   :  { %v3457_v41 = vpop.f32.mrf.mxu1  ;;  %3529 = vmatpush3.msra.mxu0 %v1488_v57  ;;  %v1575_v57 = vld [vmem:[#allocation16 + $0x10] sm:$0xff] }
 0x7b8   :  { %3530 = vmatprep.subr.mxu0 %v1487_v60 }
 0x7b9   :  { %3531 = vmatpush3.msra.mxu0 %v1487_v60  ;;  %v1574_v60 = vld [vmem:[#allocation16 + $0x8] sm:$0xff] }
 0x7ba   :  { %3532 = vmatprep.subr.mxu0 %v1486_v61 }
 0x7bb   :  { %3533 = vmatpush3.msra.mxu0 %v1486_v61  ;;  %v1573_v61 = vld [vmem:[#allocation16] sm:$0xff] }
 0x7bc   :  { %3534 = vmatprep.subr.mxu0 %v1485_v7 }
 0x7bd   :  { %3535 = vmatpush3.msra.mxu0 %v1485_v7  ;;  %v1899_v7 = vld [vmem:[#allocation11 + $0x3c0] sm:$0xff] }
 0x7be   :  { %3536 = vmatprep.subr.mxu0 %v1484_v8 }
 0x7bf   :  { %3537 = vmatpush3.msra.mxu0 %v1484_v8  ;;  %v1896_v8 = vld [vmem:[#allocation11 + $0x3a8] sm:$0xff] }
 0x7c0   :  { %3538 = vmatprep.subr.mxu0 %v1483_v10 }
 0x7c1   :  { %3539 = vmatpush3.msra.mxu0 %v1483_v10  ;;  %v1895_v10 = vld [vmem:[#allocation11 + $0x3a0] sm:$0xff] }
 0x7c2   :  { %3540 = vmatprep.subr.mxu0 %v1482_v11 }
 0x7c3   :  { %3541 = vmatpush3.msra.mxu0 %v1482_v11  ;;  %v1892_v11 = vld [vmem:[#allocation11 + $0x388] sm:$0xff] }
 0x7c4   :  { %3542 = vmatprep.subr.mxu0 %v1481_v12 }
 0x7c5   :  { %3543 = vmatpush3.msra.mxu0 %v1481_v12  ;;  %v1891_v12 = vld [vmem:[#allocation11 + $0x380] sm:$0xff] }
 0x7d5   :  { %v3527_v44 = vpop.f32.mrf.mxu1 }
 0x7d7   :  { %v1411_v26 = vpop.f32.mrf.mxu1 }
 0x876   :  { %v3492_v47 = vpop.f32.mrf.mxu0 }
 0x877   :  { %v1417_v50 = vadd.f32 %v3527_v44, %v3492_v47  ;;  %v3218_v47 = vld [vmem:[%s4602_s12] ss:$0 sm:$0xff] }
 0x878   :  { %v1336_v52 = vpop.f32.mrf.mxu0 }
 0x879   :  { %v1428_v53 = vadd.f32 %v3217_v49, %v1417_v50  ;;  %v1412_v54 = vadd.f32 %v1411_v26, %v1336_v52 }
 0x87b   :  { %v1427_v55 = vadd.f32 %v3217_v49, %v1412_v54  ;;  %v1430_v56 = vadd.f32 %v1428_v53, %v4302_v59  ;;  %v3219_v53 = vld [vmem:[%s4603_s13] ss:$0 sm:$0xff] }
 0x87d   :  { %1435 = vadd.xlane.f32.xlu0 %v1430_v56  ;;  %v1429_v28 = vadd.f32 %v1427_v55, %v4297_v51 }
 0x87f   :  { %1433 = vadd.xlane.f32.xlu1 %v1429_v28 }
 0x906   :  { %v1436_v62 = vpop.xlane.xlu0 %1435 }
 0x907   :  { %v1438_v63 = vmul.f32 0.03125, %v1436_v62  ;;  %v1904_v62 = vld [vmem:[#allocation11 + $0x3e8] sm:$0xff] }
 0x908   :  { %v1434_v0 = vpop.xlane.xlu1 %1433 }
 0x909   :  { %v1440_v2 = vsub.f32 %v1430_v56, %v1438_v63  ;;  %v1437_v3 = vmul.f32 0.03125, %v1434_v0  ;;  %v3220_v63 = vld [vmem:[%s4605_s15] ss:$0 sm:$0xff] }
 0x90b   :  { %v1439_v4 = vsub.f32 %v1429_v28, %v1437_v3  ;;  %v4399_v59 = vmul.f32 %v4265_v58, %v1440_v2  ;;  %v1576_v28 = vld [vmem:[#allocation16 + $0x18] sm:$0xff] }
 0x90c   :  { %3587 = vmatprep.subr.mxu1 %v1576_v28 }
 0x90d   :  { %v1444_v51 = vmul.f32 %v4399_v59, %v4399_v59  ;;  %v4404_v5 = vmul.f32 %v4265_v58, %v1439_v4  ;;  %v1480_v58 = vld [vmem:[#allocation14 + $0x38] sm:$0xff]  ;;  %3588 = vmatpush3.msra.mxu1 %v1576_v28  ;;  %v1749_v28 = vld [vmem:[#allocation10 + $0x1e8] sm:$0xff] }
 0x90e   :  { %3544 = vmatprep.subr.mxu0 %v1480_v58  ;;  %3589 = vmatprep.subr.mxu1 %v1575_v57 }
 0x90f   :  { %1447 = vadd.xlane.f32.xlu0 %v1444_v51  ;;  %v1443_v6 = vmul.f32 %v4404_v5, %v4404_v5  ;;  %3545 = vmatpush3.msra.mxu0 %v1480_v58  ;;  %v1888_v58 = vld [vmem:[#allocation11 + $0x368] sm:$0xff] }
 0x910   :  { %3546 = vmatprep.subr.mxu0 %v1479_v13  ;;  %3590 = vmatpush3.msra.mxu1 %v1575_v57  ;;  %v1747_v57 = vld [vmem:[#allocation10 + $0x1d8] sm:$0xff] }
 0x911   :  { %1445 = vadd.xlane.f32.xlu1 %v1443_v6  ;;  %3547 = vmatpush3.msra.mxu0 %v1479_v13  ;;  %v1900_v6 = vld [vmem:[#allocation11 + $0x3c8] sm:$0xff]  ;;  %v1887_v13 = vld [vmem:[#allocation11 + $0x360] sm:$0xff] }
 0x912   :  { %3548 = vmatprep.subr.mxu0 %v1478_v14  ;;  %3591 = vmatprep.subr.mxu1 %v1574_v60 }
 0x913   :  { %3549 = vmatpush3.msra.mxu0 %v1478_v14  ;;  %3592 = vmatpush3.msra.mxu1 %v1574_v60  ;;  %v1884_v14 = vld [vmem:[#allocation11 + $0x348] sm:$0xff]  ;;  %v1746_v60 = vld [vmem:[#allocation10 + $0x1d0] sm:$0xff] }
 0x914   :  { %3550 = vmatprep.subr.mxu0 %v1477_v15  ;;  %3593 = vmatprep.subr.mxu1 %v1573_v61 }
 0x915   :  { %3551 = vmatpush3.msra.mxu0 %v1477_v15  ;;  %3594 = vmatpush3.msra.mxu1 %v1573_v61  ;;  %v1883_v15 = vld [vmem:[#allocation11 + $0x340] sm:$0xff]  ;;  %v1745_v61 = vld [vmem:[#allocation10 + $0x1c8] sm:$0xff] }
 0x916   :  { %3552 = vmatprep.subr.mxu0 %v1476_v16  ;;  %1930 = vmatprep.subr.mxu1 %v1904_v62 }
 0x917   :  { %3553 = vmatpush3.msra.mxu0 %v1476_v16  ;;  %v1880_v16 = vld [vmem:[#allocation11 + $0x328] sm:$0xff] }
 0x918   :  { %3554 = vmatprep.subr.mxu0 %v1475_v17 }
 0x919   :  { %3555 = vmatpush3.msra.mxu0 %v1475_v17  ;;  %v1879_v17 = vld [vmem:[#allocation11 + $0x320] sm:$0xff] }
 0x91a   :  { %3556 = vmatprep.subr.mxu0 %v1474_v18 }
 0x91b   :  { %3557 = vmatpush3.msra.mxu0 %v1474_v18  ;;  %v1876_v18 = vld [vmem:[#allocation11 + $0x308] sm:$0xff] }
 0x91c   :  { %3558 = vmatprep.subr.mxu0 %v1473_v20 }
 0x91d   :  { %3559 = vmatpush3.msra.mxu0 %v1473_v20  ;;  %v1875_v20 = vld [vmem:[#allocation11 + $0x300] sm:$0xff] }
 0x998   :  { %v1448_v36 = vpop.xlane.xlu0 %1447 }
 0x999   :  { %v1450_v32 = vmul.f32 0.03125, %v1448_v36  ;;  %v1848_v36 = vld [vmem:[#allocation11 + $0x228] sm:$0xff] }
 0x99a   :  { %v1446_v38 = vpop.xlane.xlu1 %1445 }
 0x99b   :  { %v1452_v39 = vadd.f32 1e-08, %v1450_v32  ;;  %v1449_v40 = vmul.f32 0.03125, %v1446_v38  ;;  %v1847_v32 = vld [vmem:[#allocation11 + $0x220] sm:$0xff]  ;;  %v1844_v38 = vld [vmem:[#allocation11 + $0x208] sm:$0xff] }
 0x99d   :  { %3820 = vrsqrt.f32 %v1452_v39  ;;  %v1451_v41 = vadd.f32 1e-08, %v1449_v40  ;;  %v1843_v39 = vld [vmem:[#allocation11 + $0x200] sm:$0xff]  ;;  %v3221_v40 = vld [vmem:[%s4607_s17] ss:$0 sm:$0xff] }
 0x99f   :  { %3822 = vrsqrt.f32 %v1451_v41 }
 0x9aa   :  { %v3821_v44 = vpop.eup %3820 }
 0x9ab   :  { %v1456_v49 = vmul.f32 %v3821_v44, %v4399_v59 }
 0x9ac   :  { %v3823_v50 = vpop.eup %3822 }
 0x9ad   :  { %v1455_v26 = vmul.f32 %v3823_v50, %v4404_v5  ;;  %v1464_v52 = vmul.f32 %v3218_v47, %v1456_v49  ;;  %v1903_v5 = vld [vmem:[#allocation11 + $0x3e0] sm:$0xff] }
 0x9af   :  { %v1463_v54 = vmul.f32 %v3218_v47, %v1455_v26  ;;  %v4418_v56 = vadd.f32 %v3219_v53, %v1464_v52 }
 0x9b1   :  { %v4416_v55 = vadd.f32 %v3219_v53, %v1463_v54  ;;  %v1751_v54 = vld [vmem:[#allocation10 + $0x1f8] sm:$0xff] }
 0x9b2   :  { %1765 = vmatprep.subr.mxu0 %v1751_v54 }
 0x9b3   :  { %3560 = vmatprep.mubr.f32.mxu0 %v4416_v55 }
 0x9b4   :  { %3561 = vmatmul.mubr.f32.vlgmr.msra.gmra.mxu0 %v4418_v56 }
 0x9b5   :  { %1829 = vmatprep.mubr.f32.mxu0 %v4083_v1 }
 0xa74   :  { %v3562_v0 = vpop.f32.mrf.mxu0 }
 0xa75   :  { %v1568_v2 = vadd.f32 %v3562_v0, %v3220_v63 }
 0xa76   :  { %v1562_v3 = vpop.f32.mrf.mxu0 }
 0xa77   :  { %v1563_v4 = vadd.f32 %v3220_v63, %v1562_v3  ;;  %v1572_v51 = vmax.f32 %v1568_v2, 0.0 }
 0xa79   :  { %v1571_v59 = vmax.f32 %v1563_v4, 0.0 }
 0xa7b   :  { %3595 = vmatprep.mubr.f32.mxu1 %v1571_v59  ;;  %v4448_v59 = vld [vmem:[#allocation5] ss:$0 sm:$0xff] }
 0xa7c   :  { %3596 = vmatmul.mubr.f32.vlgmr.msra.gmra.mxu1 %v1572_v51 }
 0xa7d   :  { %1931 = vmatpush1.msra.mxu1 %v1903_v5  ;;  %1994 = vmatprep.mubr.f32.mxu1 %v4083_v1 }
 0xa7e   :  { %1932 = vmatprep.subr.mxu1 %v1900_v6 }
 0xa7f   :  { %1933 = vmatpush1.msra.mxu1 %v1899_v7 }
 0xa80   :  { %1934 = vmatprep.subr.mxu1 %v1896_v8  ;;  %v1744_v8 = vld [vmem:[#allocation10 + $0x1c0] sm:$0xff] }
 0xa81   :  { %1935 = vmatpush1.msra.mxu1 %v1895_v10  ;;  %v1743_v10 = vld [vmem:[#allocation10 + $0x1b8] sm:$0xff] }
 0xa82   :  { %1936 = vmatprep.subr.mxu1 %v1892_v11  ;;  %v1742_v11 = vld [vmem:[#allocation10 + $0x1b0] sm:$0xff] }
 0xa83   :  { %1937 = vmatpush1.msra.mxu1 %v1891_v12  ;;  %v1741_v12 = vld [vmem:[#allocation10 + $0x1a8] sm:$0xff] }
 0xa84   :  { %1938 = vmatprep.subr.mxu1 %v1888_v58  ;;  %v1740_v58 = vld [vmem:[#allocation10 + $0x1a0] sm:$0xff] }
 0xa85   :  { %1939 = vmatpush1.msra.mxu1 %v1887_v13  ;;  %v1739_v13 = vld [vmem:[#allocation10 + $0x198] sm:$0xff] }
 0xa86   :  { %1940 = vmatprep.subr.mxu1 %v1884_v14  ;;  %v1738_v14 = vld [vmem:[#allocation10 + $0x190] sm:$0xff] }
 0xa87   :  { %1941 = vmatpush1.msra.mxu1 %v1883_v15  ;;  %v1737_v15 = vld [vmem:[#allocation10 + $0x188] sm:$0xff] }
 0xa88   :  { %1942 = vmatprep.subr.mxu1 %v1880_v16  ;;  %v1736_v16 = vld [vmem:[#allocation10 + $0x180] sm:$0xff] }
 0xa89   :  { %1943 = vmatpush1.msra.mxu1 %v1879_v17  ;;  %v1735_v17 = vld [vmem:[#allocation10 + $0x178] sm:$0xff] }
 0xa8a   :  { %1944 = vmatprep.subr.mxu1 %v1876_v18  ;;  %v1734_v18 = vld [vmem:[#allocation10 + $0x170] sm:$0xff] }
 0xa8b   :  { %1945 = vmatpush1.msra.mxu1 %v1875_v20  ;;  %v1733_v20 = vld [vmem:[#allocation10 + $0x168] sm:$0xff] }
 0xa8c   :  { %1946 = vmatprep.subr.mxu1 %v1872_v21  ;;  %v1732_v21 = vld [vmem:[#allocation10 + $0x160] sm:$0xff] }
 0xa8d   :  { %1947 = vmatpush1.msra.mxu1 %v1871_v22  ;;  %v1731_v22 = vld [vmem:[#allocation10 + $0x158] sm:$0xff] }
 0xa8e   :  { %1948 = vmatprep.subr.mxu1 %v1868_v23  ;;  %v1730_v23 = vld [vmem:[#allocation10 + $0x150] sm:$0xff] }
 0xa8f   :  { %1949 = vmatpush1.msra.mxu1 %v1867_v24  ;;  %v1729_v24 = vld [vmem:[#allocation10 + $0x148] sm:$0xff] }
 0xa90   :  { %1950 = vmatprep.subr.mxu1 %v1864_v25  ;;  %v1728_v25 = vld [vmem:[#allocation10 + $0x140] sm:$0xff] }
 0xa91   :  { %1951 = vmatpush1.msra.mxu1 %v1863_v31  ;;  %v1727_v31 = vld [vmem:[#allocation10 + $0x138] sm:$0xff] }
 0xa92   :  { %1952 = vmatprep.subr.mxu1 %v1860_v27  ;;  %v1726_v27 = vld [vmem:[#allocation10 + $0x130] sm:$0xff] }
 0xa93   :  { %1953 = vmatpush1.msra.mxu1 %v1859_v43  ;;  %v1725_v43 = vld [vmem:[#allocation10 + $0x128] sm:$0xff] }
 0xa94   :  { %1954 = vmatprep.subr.mxu1 %v1856_v33  ;;  %v1724_v33 = vld [vmem:[#allocation10 + $0x120] sm:$0xff] }
 0xa95   :  { %1955 = vmatpush1.msra.mxu1 %v1855_v34  ;;  %v1723_v34 = vld [vmem:[#allocation10 + $0x118] sm:$0xff] }
 0xa96   :  { %1956 = vmatprep.subr.mxu1 %v1852_v46  ;;  %v1722_v46 = vld [vmem:[#allocation10 + $0x110] sm:$0xff] }
 0xa97   :  { %1957 = vmatpush1.msra.mxu1 %v1851_v35  ;;  %v1721_v35 = vld [vmem:[#allocation10 + $0x108] sm:$0xff] }
 0xa98   :  { %1958 = vmatprep.subr.mxu1 %v1848_v36  ;;  %v1720_v36 = vld [vmem:[#allocation10 + $0x100] sm:$0xff] }
 0xa99   :  { %1959 = vmatpush1.msra.mxu1 %v1847_v32  ;;  %v1906_v32 = vld [vmem:[#allocation11 + $0x3f8] sm:$0xff] }
 0xa9a   :  { %1960 = vmatprep.subr.mxu1 %v1844_v38  ;;  %v4463_v38 = vld [vmem:[%s4599_s9 + $0x4] sm:$0xf] }
 0xa9b   :  { %1961 = vmatpush1.msra.mxu1 %v1843_v39  ;;  %v4467_v39 = vrot.slane %v4463_v38, %v4283_v30 }
 0xa9c   :  { %3598 = vmatprep.subr.mxu1 %v4083_v1 }
 0xb3c   :  { %v3597_v41 = vpop.f32.mrf.mxu1 }
 0xb3d   :  { %v1668_v44 = vadd.f32 %v3597_v41, %v3221_v40 }
 0xb3e   :  { %v1662_v47 = vpop.f32.mrf.mxu1 }
 0xb3f   :  { %v1672_v49 = vadd.f32 %v1668_v44, %v4418_v56  ;;  %v1663_v50 = vadd.f32 %v3221_v40, %v1662_v47  ;;  %v1750_v56 = vld [vmem:[#allocation10 + $0x1f0] sm:$0xff] }
 0xb40   :  { %1766 = vmatpush1.msra.mxu0 %v1750_v56 }
 0xb41   :  { %v4433_v26 = vmul.f32 %v1672_v49, %v4257_v45  ;;  %v1671_v52 = vadd.f32 %v1663_v50, %v4416_v55  ;;  %v1748_v55 = vld [vmem:[#allocation10 + $0x1e0] sm:$0xff]  ;;  %1767 = vmatprep.subr.mxu0 %v1749_v28 }
 0xb42   :  { %1768 = vmatpush1.msra.mxu0 %v1748_v55 }
 0xb43   :  { %v4437_v53 = vmul.f32 %v1671_v52, %v4250_v42  ;;  %1681 = vadd.xlane.f32.xlu0 %v4433_v26  ;;  %1769 = vmatprep.subr.mxu0 %v1747_v57 }
 0xb44   :  { %1770 = vmatpush1.msra.mxu0 %v1746_v60  ;;  %v3222_v60 = vld [vmem:[#allocation7 + $0x1] ss:$0 sm:$0xff] }
 0xb45   :  { %1679 = vadd.xlane.f32.xlu1 %v4437_v53  ;;  %1995 = vmatmul.mubr.f32.vlgmr.msra.gmra.mxu1 %v4437_v53 }
 0xb46   :  { %2000 = vmatprep.mubr.f32.mxu1 %v4083_v1  ;;  %1771 = vmatprep.subr.mxu0 %v1745_v61 }
 0xb47   :  { %1772 = vmatpush1.msra.mxu0 %v1744_v8  ;;  %v1893_v8 = vld [vmem:[#allocation11 + $0x390] sm:$0xff] }
 0xb48   :  { %1773 = vmatprep.subr.mxu0 %v1743_v10  ;;  %v1890_v10 = vld [vmem:[#allocation11 + $0x378] sm:$0xff] }
 0xb49   :  { %2001 = vmatmul.mubr.f32.gmra.mxu1 %v4433_v26  ;;  %1774 = vmatpush1.msra.mxu0 %v1742_v11  ;;  %v1889_v11 = vld [vmem:[#allocation11 + $0x370] sm:$0xff] }
 0xb4a   :  { %3600 = vmatprep.mubr.msk.f32.mxu1 %vm4084_vm0, %v4083_v1  ;;  %1775 = vmatprep.subr.mxu0 %v1741_v12  ;;  %v1886_v12 = vld [vmem:[#allocation11 + $0x358] sm:$0xff] }
 0xb4b   :  { %1776 = vmatpush1.msra.mxu0 %v1740_v58  ;;  %v1885_v58 = vld [vmem:[#allocation11 + $0x350] sm:$0xff] }
 0xb4c   :  { %1777 = vmatprep.subr.mxu0 %v1739_v13  ;;  %v1882_v13 = vld [vmem:[#allocation11 + $0x338] sm:$0xff] }
 0xb4d   :  { %1778 = vmatpush1.msra.mxu0 %v1738_v14  ;;  %v1881_v14 = vld [vmem:[#allocation11 + $0x330] sm:$0xff] }
 0xb4e   :  { %1779 = vmatprep.subr.mxu0 %v1737_v15  ;;  %v1878_v15 = vld [vmem:[#allocation11 + $0x318] sm:$0xff] }
 0xb4f   :  { %1780 = vmatpush1.msra.mxu0 %v1736_v16  ;;  %v1877_v16 = vld [vmem:[#allocation11 + $0x310] sm:$0xff] }
 0xb50   :  { %1781 = vmatprep.subr.mxu0 %v1735_v17  ;;  %v1874_v17 = vld [vmem:[#allocation11 + $0x2f8] sm:$0xff] }
 0xb51   :  { %1782 = vmatpush1.msra.mxu0 %v1734_v18  ;;  %v1873_v18 = vld [vmem:[#allocation11 + $0x2f0] sm:$0xff] }
 0xb52   :  { %1783 = vmatprep.subr.mxu0 %v1733_v20  ;;  %v1870_v20 = vld [vmem:[#allocation11 + $0x2d8] sm:$0xff] }
 0xb53   :  { %1784 = vmatpush1.msra.mxu0 %v1732_v21  ;;  %v1869_v21 = vld [vmem:[#allocation11 + $0x2d0] sm:$0xff] }
 0xb54   :  { %1785 = vmatprep.subr.mxu0 %v1731_v22  ;;  %v1866_v22 = vld [vmem:[#allocation11 + $0x2b8] sm:$0xff] }
 0xb55   :  { %1786 = vmatpush1.msra.mxu0 %v1730_v23  ;;  %v1865_v23 = vld [vmem:[#allocation11 + $0x2b0] sm:$0xff] }
 0xb56   :  { %1787 = vmatprep.subr.mxu0 %v1729_v24  ;;  %v1862_v24 = vld [vmem:[#allocation11 + $0x298] sm:$0xff] }
 0xb57   :  { %1788 = vmatpush1.msra.mxu0 %v1728_v25  ;;  %v1861_v25 = vld [vmem:[#allocation11 + $0x290] sm:$0xff] }
 0xb58   :  { %1789 = vmatprep.subr.mxu0 %v1727_v31  ;;  %v1858_v31 = vld [vmem:[#allocation11 + $0x278] sm:$0xff] }
 0xb59   :  { %1790 = vmatpush1.msra.mxu0 %v1726_v27  ;;  %v1857_v27 = vld [vmem:[#allocation11 + $0x270] sm:$0xff] }
 0xb5a   :  { %1791 = vmatprep.subr.mxu0 %v1725_v43  ;;  %v1854_v43 = vld [vmem:[#allocation11 + $0x258] sm:$0xff] }
 0xb5b   :  { %1792 = vmatpush1.msra.mxu0 %v1724_v33  ;;  %v1853_v33 = vld [vmem:[#allocation11 + $0x250] sm:$0xff] }
 0xb5c   :  { %1793 = vmatprep.subr.mxu0 %v1723_v34  ;;  %v1850_v34 = vld [vmem:[#allocation11 + $0x238] sm:$0xff] }
 0xb5d   :  { %1794 = vmatpush1.msra.mxu0 %v1722_v46  ;;  %v1849_v46 = vld [vmem:[#allocation11 + $0x230] sm:$0xff] }
 0xb5e   :  { %1795 = vmatprep.subr.mxu0 %v1721_v35  ;;  %v1846_v35 = vld [vmem:[#allocation11 + $0x218] sm:$0xff] }
 0xb5f   :  { %1796 = vmatpush1.msra.mxu0 %v1720_v36  ;;  %v1845_v36 = vld [vmem:[#allocation11 + $0x210] sm:$0xff] }
 0xb60   :  { %2007 = vmatprep.subr.mxu0 %v1906_v32  ;;  %v4490_v32 = vld [vmem:[%s4597_s7 + $0x2] sm:$0x3] }
 0xbcc   :  { %v1682_v62 = vpop.xlane.xlu0 %1681 }
 0xbcd   :  { %v1684_v63 = vmul.f32 0.03125, %v1682_v62  ;;  %v3223_v62 = vld [vmem:[#allocation8 + $0x1] ss:$0 sm:$0xff] }
 0xbce   :  { %v1680_v0 = vpop.xlane.xlu1 %1679 }
 0xbcf   :  { %v1686_v2 = vsub.f32 %v4433_v26, %v1684_v63  ;;  %v1683_v3 = vmul.f32 0.03125, %v1680_v0  ;;  %v1905_v0 = vld [vmem:[#allocation11 + $0x3f0] sm:$0xff] }
 0xbd1   :  { %v1685_v4 = vsub.f32 %v4437_v53, %v1683_v3  ;;  %v4451_v51 = vmul.f32 %v4448_v59, %v1686_v2  ;;  %v1902_v3 = vld [vmem:[#allocation11 + $0x3d8] sm:$0xff] }
 0xbd3   :  { %v1690_v5 = vmul.f32 %v4451_v51, %v4451_v51  ;;  %v4456_v6 = vmul.f32 %v4448_v59, %v1685_v4  ;;  %v1901_v4 = vld [vmem:[#allocation11 + $0x3d0] sm:$0xff] }
 0xbd5   :  { %1693 = vadd.xlane.f32.xlu0 %v1690_v5  ;;  %v1689_v7 = vmul.f32 %v4456_v6, %v4456_v6  ;;  %v1898_v5 = vld [vmem:[#allocation11 + $0x3b8] sm:$0xff] }
 0xbd7   :  { %1691 = vadd.xlane.f32.xlu1 %v1689_v7 }
 0xc05   :  { %v1996_v40 = vpop.f32.mrf.mxu1 }
 0xc06   :  { %v1997_v41 = vadd.f32 %v1996_v40, %v4467_v39 }
 0xc07   :  { %v4492_v40 = vpop.f32.mrf.mxu1 }
 0xc08   :  { %3599 = vmatpush3.xpose.msra.mxu1 %v1997_v41  ;;  %v1758_v41 = vrot.slane %v4490_v32, %v4283_v30  ;;  %v1921_v30 = vrot.slane %v4463_v38, %v457_v37 }
 0xc09   :  { %3603 = vmatprep.subr.mxu1 %v4083_v1 }
 0xc5e   :  { %v1694_v44 = vpop.xlane.xlu0 %1693 }
 0xc5f   :  { %v1696_v47 = vmul.f32 0.03125, %v1694_v44 }
 0xc60   :  { %v1692_v49 = vpop.xlane.xlu1 %1691 }
 0xc61   :  { %v1698_v50 = vadd.f32 1e-08, %v1696_v47  ;;  %v1695_v52 = vmul.f32 0.03125, %v1692_v49 }
 0xc63   :  { %3824 = vrsqrt.f32 %v1698_v50  ;;  %v1697_v54 = vadd.f32 1e-08, %v1695_v52 }
 0xc65   :  { %3826 = vrsqrt.f32 %v1697_v54  ;;  %v1925_v54 = vrot.slane %v4463_v38, %v461_v19 }
 0xc70   :  { %v3825_v56 = vpop.eup %3824 }
 0xc71   :  { %v1702_v57 = vmul.f32 %v3825_v56, %v4451_v51  ;;  %v1894_v51 = vld [vmem:[#allocation11 + $0x398] sm:$0xff] }
 0xc72   :  { %v3827_v28 = vpop.eup %3826 }
 0xc73   :  { %v1701_v55 = vmul.f32 %v3827_v28, %v4456_v6  ;;  %v1710_v2 = vmul.f32 %v3222_v60, %v1702_v57  ;;  %v1897_v6 = vld [vmem:[#allocation11 + $0x3b0] sm:$0xff] }
 0xc75   :  { %v1709_v61 = vmul.f32 %v3222_v60, %v1701_v55  ;;  %v4477_v7 = vadd.f32 %v3223_v62, %v1710_v2 }
 0xc77   :  { %v4473_v63 = vadd.f32 %v3223_v62, %v1709_v61 }
 0xc79   :  { %1830 = vmatmul.mubr.f32.vlgmr.msra.gmra.mxu0 %v4473_v63 }
 0xc7a   :  { %2008 = vmatpush1.msra.mxu0 %v1905_v0  ;;  %1835 = vmatprep.mubr.f32.mxu0 %v4083_v1 }
 0xc7b   :  { %2009 = vmatprep.subr.mxu0 %v1902_v3 }
 0xc7c   :  { %2010 = vmatpush1.msra.mxu0 %v1901_v4 }
 0xc7d   :  { %2011 = vmatprep.subr.mxu0 %v1898_v5  ;;  %1836 = vmatmul.mubr.f32.gmra.mxu0 %v4477_v7 }
 0xc7e   :  { %2012 = vmatpush1.msra.mxu0 %v1897_v6  ;;  %2071 = vmatprep.mubr.f32.mxu0 %v4083_v1 }
 0xc7f   :  { %2013 = vmatprep.subr.mxu0 %v1894_v51 }
 0xc80   :  { %2014 = vmatpush1.msra.mxu0 %v1893_v8 }
 0xc81   :  { %2015 = vmatprep.subr.mxu0 %v1890_v10 }
 0xc82   :  { %2016 = vmatpush1.msra.mxu0 %v1889_v11 }
 0xc83   :  { %2017 = vmatprep.subr.mxu0 %v1886_v12 }
 0xc84   :  { %2018 = vmatpush1.msra.mxu0 %v1885_v58 }
 0xc85   :  { %2019 = vmatprep.subr.mxu0 %v1882_v13 }
 0xc86   :  { %2020 = vmatpush1.msra.mxu0 %v1881_v14 }
 0xc87   :  { %2021 = vmatprep.subr.mxu0 %v1878_v15 }
 0xc88   :  { %2022 = vmatpush1.msra.mxu0 %v1877_v16 }
 0xc89   :  { %2023 = vmatprep.subr.mxu0 %v1874_v17 }
 0xc8a   :  { %2024 = vmatpush1.msra.mxu0 %v1873_v18 }
 0xc8b   :  { %2025 = vmatprep.subr.mxu0 %v1870_v20 }
 0xc8c   :  { %2026 = vmatpush1.msra.mxu0 %v1869_v21 }
 0xc8d   :  { %2027 = vmatprep.subr.mxu0 %v1866_v22 }
 0xc8e   :  { %2028 = vmatpush1.msra.mxu0 %v1865_v23  ;;  %v1917_v23 = vrot.slane %v4463_v38, %v4346_v9 }
 0xc8f   :  { %2029 = vmatprep.subr.mxu0 %v1862_v24 }
 0xc90   :  { %2030 = vmatpush1.msra.mxu0 %v1861_v25  ;;  %v1762_v25 = vrot.slane %v4490_v32, %v4346_v9 }
 0xc91   :  { %2031 = vmatprep.subr.mxu0 %v1858_v31 }
 0xc92   :  { %2032 = vmatpush1.msra.mxu0 %v1857_v27  ;;  %v1999_v27 = vadd.f32 %v4492_v40, %v1917_v23 }
 0xc93   :  { %2033 = vmatprep.subr.mxu0 %v1854_v43 }
 0xc94   :  { %2034 = vmatpush1.msra.mxu0 %v1853_v33 }
 0xc95   :  { %2035 = vmatprep.subr.mxu0 %v1850_v34 }
 0xc96   :  { %2036 = vmatpush1.msra.mxu0 %v1849_v46 }
 0xc97   :  { %2037 = vmatprep.subr.mxu0 %v1846_v35 }
 0xc98   :  { %2038 = vmatpush1.msra.mxu0 %v1845_v36 }
 0xc99   :  { %2072 = vmatmul.mubr.f32.vlgmr.msra.gmra.mxu0 %v4437_v53  ;;  %3633 = vmatprep.subr.mxu0 %v4083_v1  ;;  %v2002_v53 = vpop.f32.mrf.mxu1 }
 0xc9a   :  { %2077 = vmatprep.mubr.f32.mxu0 %v4083_v1  ;;  %v2003_v49 = vadd.f32 %v2002_v53, %v4467_v39 }
 0xc9b   :  { %v2004_v2 = vpop.f32.mrf.mxu1 }
 0xc9c   :  { %v2005_v43 = vadd.f32 %v2004_v2, %v1917_v23  ;;  %v2731_v2 = vld [vmem:[#allocation13 + $0x1f0] sm:$0xff]  ;;  %v2720_v23 = vld [vmem:[#allocation13 + $0x198] sm:$0xff] }
 0xc9d   :  { %2078 = vmatmul.mubr.f32.gmra.mxu0 %v4433_v26 }
 0xc9e   :  { %3635 = vmatprep.mubr.msk.f32.mxu0 %vm4084_vm0, %v4083_v1 }
 0xd39   :  { %v1831_v44 = vpop.f32.mrf.mxu0 }
 0xd3a   :  { %v1832_v47 = vadd.f32 %v1831_v44, %v1758_v41 }
 0xd3b   :  { %v4497_v50 = vpop.f32.mrf.mxu0 }
 0xd3c   :  { %3601 = vmatmul.mubr.f32.vlgmr.msra.gmra.mxu1 %v1832_v47  ;;  %v1834_v38 = vadd.f32 %v4497_v50, %v1762_v25 }
 0xd3d   :  { %3604 = vmatpush3.xpose.msra.mxu1 %v2003_v49  ;;  %v1837_v26 = vpop.f32.mrf.mxu0  ;;  %3605 = vmatprep.mubr.msk.f32.mxu1 %vm4084_vm0, %v4083_v1 }
 0xd3e   :  { %v1838_v52 = vadd.f32 %v1837_v26, %v1758_v41  ;;  %3608 = vmatprep.subr.mxu1 %v4083_v1 }
 0xd3f   :  { %v1839_v39 = vpop.f32.mrf.mxu0 }
 0xd40   :  { %3606 = vmatmul.mubr.f32.vlgmr.msra.gmra.mxu1 %v1838_v52  ;;  %v1840_v9 = vadd.f32 %v1839_v39, %v1762_v25  ;;  %v2719_v25 = vld [vmem:[#allocation13 + $0x190] sm:$0xff] }
 0xd41   :  { %3610 = vmatprep.mubr.msk.f32.mxu1 %vm4084_vm0, %v4083_v1 }
 0xd59   :  { %v2073_v56 = vpop.f32.mrf.mxu0 }
 0xd5a   :  { %v2074_v28 = vadd.f32 %v2073_v56, %v1921_v30 }
 0xd5b   :  { %v2075_v55 = vpop.f32.mrf.mxu0 }
 0xd5c   :  { %v2076_v57 = vadd.f32 %v2075_v55, %v1925_v54  ;;  %3609 = vmatpush3.msra.mxu1 %v2074_v28 }
 0xd5d   :  { %v2079_v60 = vpop.f32.mrf.mxu0  ;;  %3613 = vmatprep.subr.mxu1 %v4083_v1 }
 0xd5e   :  { %v2080_v61 = vadd.f32 %v2079_v60, %v1921_v30 }
 0xd5f   :  { %v2081_v62 = vpop.f32.mrf.mxu0 }
 0xd60   :  { %v2082_v0 = vadd.f32 %v2081_v62, %v1925_v54 }
 0xd62   :  { %3634 = vmatpush3.msra.mxu0 %v2082_v0 }
 0xdfc   :  { %v2150_v3 = vpop.f32.mrf.mxu1 }
 0xdfd   :  { %v2151_v37 = vadd.f32 %v2150_v3, %v4337_v48 }
 0xdfe   :  { %v3602_v4 = vpop.f32.mrf.mxu1 }
 0xdff   :  { %v2224_v29 = vsel %vm761_vm2, %v2151_v37, -inf }
 0xe00   :  { %2225 = vmax.xlane.f32.xlu1 %v2224_v29  ;;  %v2220_v19 = vpop.f32.mrf.mxu1  ;;  %v2407_v29 = vld [vmem:[#allocation13 + $0x170] sm:$0xff] }
 0xe01   :  { %v2221_v5 = vadd.f32 %v2220_v19, %v4337_v48  ;;  %v2729_v19 = vld [vmem:[#allocation13 + $0x1e0] sm:$0xff] }
 0xe02   :  { %v3607_v6 = vpop.f32.mrf.mxu1 }
 0xe03   :  { %v2227_v51 = vsel %vm761_vm2, %v2221_v5, -inf  ;;  %v2728_v6 = vld [vmem:[#allocation13 + $0x1d8] sm:$0xff] }
 0xe04   :  { %2228 = vmax.xlane.f32.xlu0 %v2227_v51  ;;  %v2405_v51 = vld [vmem:[#allocation13 + $0x160] sm:$0xff] }
 0xe89   :  { %v2226_v8 = vpop.xlane.xlu1 %2225 }
 0xe8a   :  { %v2230_v10 = vsub.f32 %v2151_v37, %v2226_v8  ;;  %v2730_v37 = vld [vmem:[#allocation13 + $0x1e8] sm:$0xff]  ;;  %v2727_v8 = vld [vmem:[#allocation13 + $0x1d0] sm:$0xff] }
 0xe8c   :  { %v2232_v11 = vmul.f32 1.442695, %v2230_v10  ;;  %v2404_v10 = vld [vmem:[#allocation13 + $0x158] sm:$0xff] }
 0xe8d   :  { %v2229_v12 = vpop.xlane.xlu0 %2228 }
 0xe8e   :  { %3828 = vpow2.f32 %v2232_v11  ;;  %v2231_v58 = vsub.f32 %v2221_v5, %v2229_v12  ;;  %v2406_v5 = vld [vmem:[#allocation13 + $0x168] sm:$0xff]  ;;  %v2403_v12 = vld [vmem:[#allocation13 + $0x150] sm:$0xff] }
 0xe8f   :  { %v2726_v11 = vld [vmem:[#allocation13 + $0x1c8] sm:$0xff] }
 0xe90   :  { %v2234_v13 = vmul.f32 1.442695, %v2231_v58  ;;  %v2725_v58 = vld [vmem:[#allocation13 + $0x1c0] sm:$0xff] }
 0xe92   :  { %3830 = vpow2.f32 %v2234_v13  ;;  %v2402_v13 = vld [vmem:[#allocation13 + $0x148] sm:$0xff] }
 0xe9b   :  { %v3829_v14 = vpop.eup %3828 }
 0xe9c   :  { %v2236_v15 = vsel %vm761_vm2, %v3829_v14, 0.0 }
 0xe9d   :  { %2237 = vadd.xlane.f32.xlu1 %v2236_v15  ;;  %v2401_v15 = vld [vmem:[#allocation13 + $0x140] sm:$0xff] }
 0xe9f   :  { %v3831_v16 = vpop.eup %3830 }
 0xea0   :  { %v2239_v17 = vsel %vm761_vm2, %v3831_v16, 0.0 }
 0xea1   :  { %2240 = vadd.xlane.f32.xlu0 %v2239_v17  ;;  %v2400_v17 = vld [vmem:[#allocation13 + $0x138] sm:$0xff] }
 0xf26   :  { %v2238_v18 = vpop.xlane.xlu1 %2237 }
 0xf27   :  { %3832 = vrcp.f32 %v2238_v18  ;;  %v2722_v18 = vld [vmem:[#allocation13 + $0x1a8] sm:$0xff] }
 0xf2a   :  { %v2241_v20 = vpop.xlane.xlu0 %2240 }
 0xf2b   :  { %3834 = vrcp.f32 %v2241_v20  ;;  %v2399_v20 = vld [vmem:[#allocation13 + $0x130] sm:$0xff] }
 0xf34   :  { %v3833_v21 = vpop.eup %3832 }
 0xf35   :  { %v2244_v22 = vmul.f32 %v3833_v21, %v3829_v14  ;;  %v2724_v14 = vld [vmem:[#allocation13 + $0x1b8] sm:$0xff]  ;;  %v2721_v21 = vld [vmem:[#allocation13 + $0x1a0] sm:$0xff] }
 0xf37   :  { %3611 = vmatmul.mubr.msk.f32.vlgmr.msra.gmra.mxu1 %vm761_vm2, %v2244_v22  ;;  %v2398_v22 = vld [vmem:[#allocation13 + $0x128] sm:$0xff] }
 0xf38   :  { %v3835_v24 = vpop.eup %3834  ;;  %3614 = vmatpush3.msra.mxu1 %v2080_v61  ;;  %3615 = vmatprep.mubr.msk.f32.mxu1 %vm4084_vm0, %v4083_v1 }
 0xf39   :  { %3618 = vmatprep.subr.mxu1 %v4083_v1  ;;  %v2245_v31 = vmul.f32 %v3835_v24, %v3831_v16  ;;  %v2723_v16 = vld [vmem:[#allocation13 + $0x1b0] sm:$0xff]  ;;  %v2397_v24 = vld [vmem:[#allocation13 + $0x120] sm:$0xff] }
 0xf3b   :  { %3616 = vmatmul.mubr.msk.f32.vlgmr.msra.gmra.mxu1 %vm761_vm2, %v2245_v31  ;;  %v2396_v31 = vld [vmem:[#allocation13 + $0x118] sm:$0xff] }
 0xf3c   :  { %3619 = vmatpush3.xpose.msra.mxu1 %v1999_v27  ;;  %3620 = vmatprep.mubr.msk.f32.mxu1 %vm4084_vm0, %v4083_v1  ;;  %v2395_v27 = vld [vmem:[#allocation13 + $0x110] sm:$0xff] }
 0xf3d   :  { %3623 = vmatprep.subr.mxu1 %v4083_v1 }
 0xf3f   :  { %3621 = vmatmul.mubr.f32.vlgmr.msra.gmra.mxu1 %v1834_v38  ;;  %v2394_v38 = vld [vmem:[#allocation13 + $0x108] sm:$0xff] }
 0xf40   :  { %3624 = vmatpush3.xpose.msra.mxu1 %v2005_v43  ;;  %3625 = vmatprep.mubr.msk.f32.mxu1 %vm4084_vm0, %v4083_v1  ;;  %v2393_v43 = vld [vmem:[#allocation13 + $0x100] sm:$0xff] }
 0xf41   :  { %3628 = vmatprep.subr.mxu1 %v4083_v1 }
 0xf43   :  { %3626 = vmatmul.mubr.f32.vlgmr.msra.gmra.mxu1 %v1840_v9  ;;  %v2718_v9 = vld [vmem:[#allocation13 + $0x188] sm:$0xff] }
 0xf44   :  { %3629 = vmatpush3.msra.mxu1 %v2076_v57  ;;  %3630 = vmatprep.mubr.msk.f32.mxu1 %vm4084_vm0, %v4083_v1  ;;  %v2732_v57 = vld [vmem:[#allocation13 + $0x1f8] sm:$0xff] }
 0xf45   :  { %3638 = vmatprep.subr.mxu1 %v2732_v57 }
 0xff7   :  { %v2315_v33 = vpop.f32.mrf.mxu1 }
 0xff9   :  { %v3612_v34 = vpop.f32.mrf.mxu1 }
 0xffb   :  { %v4536_v46 = vpop.f32.mrf.mxu1 }
 0xffd   :  { %v3617_v35 = vpop.f32.mrf.mxu1 }
 0xfff   :  { %v2475_v36 = vpop.f32.mrf.mxu1 }
0x1000   :  { %v2476_v32 = vadd.f32 %v2475_v36, %v4337_v48 }
0x1001   :  { %v3622_v40 = vpop.f32.mrf.mxu1 }
0x1002   :  { %v2549_v41 = vsel %vm761_vm2, %v2476_v32, -inf }
0x1003   :  { %2550 = vmax.xlane.f32.xlu1 %v2549_v41  ;;  %v2545_v53 = vpop.f32.mrf.mxu1 }
0x1004   :  { %v2546_v44 = vadd.f32 %v2545_v53, %v4337_v48  ;;  %v2408_v48 = vld [vmem:[#allocation13 + $0x178] sm:$0xff]  ;;  %v3231_v53 = vld [vmem:[%s4601_s11 + $0x1] ss:$0 sm:$0xff] }
0x1005   :  { %v3627_v47 = vpop.f32.mrf.mxu1  ;;  %3673 = vmatprep.subr.mxu0 %v2408_v48 }
0x1006   :  { %v2552_v49 = vsel %vm761_vm2, %v2546_v44, -inf }
0x1007   :  { %2553 = vmax.xlane.f32.xlu0 %v2552_v49 }
0x108c   :  { %v2551_v1 = vpop.xlane.xlu1 %2550 }
0x108d   :  { %v2555_v50 = vsub.f32 %v2476_v32, %v2551_v1 }
0x108f   :  { %v2557_v26 = vmul.f32 1.442695, %v2555_v50 }
0x1090   :  { %v2554_v52 = vpop.xlane.xlu0 %2553 }
0x1091   :  { %3836 = vpow2.f32 %v2557_v26  ;;  %v2556_v30 = vsub.f32 %v2546_v44, %v2554_v52 }
0x1093   :  { %v2559_v39 = vmul.f32 1.442695, %v2556_v30  ;;  %v2955_v30 = vld [vmem:[#allocation14 + $0xf8] sm:$0xff] }
0x1095   :  { %3838 = vpow2.f32 %v2559_v39  ;;  %v2954_v39 = vld [vmem:[#allocation14 + $0xf0] sm:$0xff] }
0x109e   :  { %v3837_v54 = vpop.eup %3836 }
0x109f   :  { %v2561_v56 = vsel %vm761_vm2, %v3837_v54, 0.0 }
0x10a0   :  { %2562 = vadd.xlane.f32.xlu1 %v2561_v56 }
0x10a2   :  { %v3839_v28 = vpop.eup %3838 }
0x10a3   :  { %v2564_v55 = vsel %vm761_vm2, %v3839_v28, 0.0 }
0x10a4   :  { %2565 = vadd.xlane.f32.xlu0 %v2564_v55 }
0x1129   :  { %v2563_v60 = vpop.xlane.xlu1 %2562 }
0x112a   :  { %3840 = vrcp.f32 %v2563_v60 }
0x112d   :  { %v2566_v61 = vpop.xlane.xlu0 %2565 }
0x112e   :  { %3842 = vrcp.f32 %v2566_v61 }
0x1137   :  { %v3841_v62 = vpop.eup %3840 }
0x1138   :  { %v2569_v0 = vmul.f32 %v3841_v62, %v3837_v54  ;;  %v2953_v54 = vld [vmem:[#allocation14 + $0xe8] sm:$0xff] }
0x113a   :  { %3631 = vmatmul.mubr.msk.f32.vlgmr.msra.gmra.mxu1 %vm761_vm2, %v2569_v0  ;;  %v2952_v0 = vld [vmem:[#allocation14 + $0xe0] sm:$0xff] }
0x113b   :  { %v3843_v3 = vpop.eup %3842  ;;  %3639 = vmatpush3.msra.mxu1 %v2732_v57 }
0x113c   :  { %v2570_v4 = vmul.f32 %v3843_v3, %v3839_v28  ;;  %3640 = vmatprep.subr.mxu1 %v2731_v2  ;;  %v2950_v3 = vld [vmem:[#allocation14 + $0xd0] sm:$0xff] }
0x113d   :  { %3641 = vmatpush3.msra.mxu1 %v2731_v2  ;;  %v2951_v2 = vld [vmem:[#allocation14 + $0xd8] sm:$0xff] }
0x113e   :  { %3636 = vmatmul.mubr.msk.f32.vlgmr.msra.gmra.mxu0 %vm761_vm2, %v2570_v4  ;;  %3642 = vmatprep.subr.mxu1 %v2730_v37  ;;  %v2948_v4 = vld [vmem:[#allocation14 + $0xc0] sm:$0xff] }
0x113f   :  { %3674 = vmatpush3.msra.mxu0 %v2408_v48  ;;  %3705 = vmatprep.mubr.f32.mxu0 %v2315_v33  ;;  %v2717_v33 = vld [vmem:[#allocation13 + $0x180] sm:$0xff] }
0x1140   :  { %3675 = vmatprep.subr.mxu0 %v2407_v29  ;;  %3643 = vmatpush3.msra.mxu1 %v2730_v37  ;;  %v2949_v37 = vld [vmem:[#allocation14 + $0xc8] sm:$0xff] }
0x1141   :  { %3676 = vmatpush3.msra.mxu0 %v2407_v29  ;;  %3644 = vmatprep.subr.mxu1 %v2729_v19  ;;  %v2946_v29 = vld [vmem:[#allocation14 + $0xb0] sm:$0xff] }
0x1142   :  { %3677 = vmatprep.subr.mxu0 %v2406_v5  ;;  %3645 = vmatpush3.msra.mxu1 %v2729_v19  ;;  %v2945_v19 = vld [vmem:[#allocation14 + $0xa8] sm:$0xff] }
0x1143   :  { %3678 = vmatpush3.msra.mxu0 %v2406_v5  ;;  %3646 = vmatprep.subr.mxu1 %v2728_v6  ;;  %v2944_v5 = vld [vmem:[#allocation14 + $0xa0] sm:$0xff] }
0x1144   :  { %3679 = vmatprep.subr.mxu0 %v2405_v51  ;;  %3647 = vmatpush3.msra.mxu1 %v2728_v6  ;;  %v2943_v6 = vld [vmem:[#allocation14 + $0x98] sm:$0xff] }
0x1145   :  { %3680 = vmatpush3.msra.mxu0 %v2405_v51  ;;  %3648 = vmatprep.subr.mxu1 %v2727_v8  ;;  %v2942_v51 = vld [vmem:[#allocation14 + $0x90] sm:$0xff] }
0x1146   :  { %3681 = vmatprep.subr.mxu0 %v2404_v10  ;;  %3649 = vmatpush3.msra.mxu1 %v2727_v8  ;;  %v2941_v8 = vld [vmem:[#allocation14 + $0x88] sm:$0xff] }
0x1147   :  { %3682 = vmatpush3.msra.mxu0 %v2404_v10  ;;  %3650 = vmatprep.subr.mxu1 %v2726_v11  ;;  %v2940_v10 = vld [vmem:[#allocation14 + $0x80] sm:$0xff] }
0x1148   :  { %3683 = vmatprep.subr.mxu0 %v2403_v12  ;;  %3651 = vmatpush3.msra.mxu1 %v2726_v11  ;;  %v3057_v11 = vld [vmem:[#allocation16 + $0xf8] sm:$0xff] }
0x1149   :  { %3684 = vmatpush3.msra.mxu0 %v2403_v12  ;;  %3652 = vmatprep.subr.mxu1 %v2725_v58  ;;  %v3056_v12 = vld [vmem:[#allocation16 + $0xf0] sm:$0xff] }
0x114a   :  { %3685 = vmatprep.subr.mxu0 %v2402_v13  ;;  %3653 = vmatpush3.msra.mxu1 %v2725_v58  ;;  %v3055_v58 = vld [vmem:[#allocation16 + $0xe8] sm:$0xff] }
0x114b   :  { %3686 = vmatpush3.msra.mxu0 %v2402_v13  ;;  %3654 = vmatprep.subr.mxu1 %v2724_v14  ;;  %v3054_v13 = vld [vmem:[#allocation16 + $0xe0] sm:$0xff] }
0x114c   :  { %3687 = vmatprep.subr.mxu0 %v2401_v15  ;;  %3655 = vmatpush3.msra.mxu1 %v2724_v14  ;;  %v3053_v14 = vld [vmem:[#allocation16 + $0xd8] sm:$0xff] }
0x114d   :  { %3688 = vmatpush3.msra.mxu0 %v2401_v15  ;;  %3656 = vmatprep.subr.mxu1 %v2723_v16  ;;  %v3052_v15 = vld [vmem:[#allocation16 + $0xd0] sm:$0xff] }
0x114e   :  { %3689 = vmatprep.subr.mxu0 %v2400_v17  ;;  %3657 = vmatpush3.msra.mxu1 %v2723_v16  ;;  %v3051_v16 = vld [vmem:[#allocation16 + $0xc8] sm:$0xff] }
0x114f   :  { %3690 = vmatpush3.msra.mxu0 %v2400_v17  ;;  %3658 = vmatprep.subr.mxu1 %v2722_v18  ;;  %v3050_v17 = vld [vmem:[#allocation16 + $0xc0] sm:$0xff] }
0x1150   :  { %3691 = vmatprep.subr.mxu0 %v2399_v20  ;;  %3659 = vmatpush3.msra.mxu1 %v2722_v18  ;;  %v3049_v18 = vld [vmem:[#allocation16 + $0xb8] sm:$0xff] }
0x1151   :  { %3692 = vmatpush3.msra.mxu0 %v2399_v20  ;;  %3660 = vmatprep.subr.mxu1 %v2721_v21  ;;  %v3048_v20 = vld [vmem:[#allocation16 + $0xb0] sm:$0xff] }
0x1152   :  { %3693 = vmatprep.subr.mxu0 %v2398_v22  ;;  %3661 = vmatpush3.msra.mxu1 %v2721_v21  ;;  %v3047_v21 = vld [vmem:[#allocation16 + $0xa8] sm:$0xff] }
0x1153   :  { %3694 = vmatpush3.msra.mxu0 %v2398_v22  ;;  %3662 = vmatprep.subr.mxu1 %v2720_v23  ;;  %v3046_v22 = vld [vmem:[#allocation16 + $0xa0] sm:$0xff] }
0x1154   :  { %3695 = vmatprep.subr.mxu0 %v2397_v24  ;;  %3663 = vmatpush3.msra.mxu1 %v2720_v23 }
0x1155   :  { %3696 = vmatpush3.msra.mxu0 %v2397_v24  ;;  %3664 = vmatprep.subr.mxu1 %v2719_v25 }
0x1156   :  { %3697 = vmatprep.subr.mxu0 %v2396_v31  ;;  %3665 = vmatpush3.msra.mxu1 %v2719_v25 }
0x1157   :  { %3698 = vmatpush3.msra.mxu0 %v2396_v31  ;;  %3666 = vmatprep.subr.mxu1 %v2718_v9 }
0x1158   :  { %3699 = vmatprep.subr.mxu0 %v2395_v27  ;;  %3667 = vmatpush3.msra.mxu1 %v2718_v9  ;;  %v3234_v9 = vld [vmem:[%s4602_s12 + $0x1] ss:$0 sm:$0xff] }
0x1159   :  { %3700 = vmatpush3.msra.mxu0 %v2395_v27  ;;  %3668 = vmatprep.subr.mxu1 %v2717_v33 }
0x115a   :  { %3701 = vmatprep.subr.mxu0 %v2394_v38  ;;  %3669 = vmatpush3.msra.mxu1 %v2717_v33 }
0x115b   :  { %3702 = vmatpush3.msra.mxu0 %v2394_v38  ;;  %3708 = vmatprep.subr.mxu1 %v2955_v30 }
0x115c   :  { %3703 = vmatprep.subr.mxu0 %v2393_v43 }
0x115d   :  { %3704 = vmatpush3.msra.mxu0 %v2393_v43 }
0x115e   :  { %3706 = vmatmul.mubr.f32.vlgmr.msra.gmra.mxu0 %v4536_v46  ;;  %3743 = vmatprep.subr.mxu0 %v3057_v11 }
0x115f   :  { %3744 = vmatpush3.msra.mxu0 %v3057_v11 }
0x1160   :  { %3745 = vmatprep.subr.mxu0 %v3056_v12 }
0x1161   :  { %3746 = vmatpush3.msra.mxu0 %v3056_v12 }
0x1162   :  { %3747 = vmatprep.subr.mxu0 %v3055_v58 }
0x1163   :  { %3748 = vmatpush3.msra.mxu0 %v3055_v58  ;;  %v3240_v58 = vld [vmem:[%s4608_s18] ss:$0 sm:$0xff] }
0x1164   :  { %3749 = vmatprep.subr.mxu0 %v3054_v13 }
0x1165   :  { %3750 = vmatpush3.msra.mxu0 %v3054_v13 }
0x1166   :  { %3751 = vmatprep.subr.mxu0 %v3053_v14 }
0x1167   :  { %3752 = vmatpush3.msra.mxu0 %v3053_v14 }
0x1168   :  { %3753 = vmatprep.subr.mxu0 %v3052_v15 }
0x1169   :  { %3754 = vmatpush3.msra.mxu0 %v3052_v15  ;;  %v3241_v15 = vld [vmem:[%s4609_s19] ss:$0 sm:$0xff] }
0x116a   :  { %3755 = vmatprep.subr.mxu0 %v3051_v16 }
0x116b   :  { %3756 = vmatpush3.msra.mxu0 %v3051_v16 }
0x116c   :  { %3757 = vmatprep.subr.mxu0 %v3050_v17 }
0x116d   :  { %3758 = vmatpush3.msra.mxu0 %v3050_v17 }
0x116e   :  { %3759 = vmatprep.subr.mxu0 %v3049_v18 }
0x116f   :  { %3760 = vmatpush3.msra.mxu0 %v3049_v18 }
0x1170   :  { %3761 = vmatprep.subr.mxu0 %v3048_v20 }
0x1171   :  { %3762 = vmatpush3.msra.mxu0 %v3048_v20 }
0x1172   :  { %3763 = vmatprep.subr.mxu0 %v3047_v21 }
0x1173   :  { %3764 = vmatpush3.msra.mxu0 %v3047_v21 }
0x1174   :  { %3765 = vmatprep.subr.mxu0 %v3046_v22 }
0x1175   :  { %3766 = vmatpush3.msra.mxu0 %v3046_v22 }
0x11fa   :  { %v2640_v34 = vpop.f32.mrf.mxu1 }
0x11fb   :  { %3670 = vmatprep.mubr.f32.mxu1 %v2640_v34 }
0x11fc   :  { %v3632_v35 = vpop.f32.mrf.mxu1 }
0x11fe   :  { %v2713_v36 = vpop.f32.mrf.mxu0 }
0x11ff   :  { %3671 = vmatmul.mubr.f32.vlgmr.msra.gmra.mxu1 %v2713_v36 }
0x1200   :  { %v3637_v32 = vpop.f32.mrf.mxu0  ;;  %3709 = vmatpush3.msra.mxu1 %v2955_v30 }
0x1201   :  { %3710 = vmatprep.subr.mxu1 %v2954_v39  ;;  %v3235_v32 = vld [vmem:[%s4603_s13 + $0x1] ss:$0 sm:$0xff] }
0x1202   :  { %3711 = vmatpush3.msra.mxu1 %v2954_v39 }
0x1203   :  { %3712 = vmatprep.subr.mxu1 %v2953_v54 }
0x1204   :  { %3713 = vmatpush3.msra.mxu1 %v2953_v54 }
0x1205   :  { %3714 = vmatprep.subr.mxu1 %v2952_v0 }
0x1206   :  { %3715 = vmatpush3.msra.mxu1 %v2952_v0 }
0x1207   :  { %3716 = vmatprep.subr.mxu1 %v2951_v2 }
0x1208   :  { %3717 = vmatpush3.msra.mxu1 %v2951_v2 }
0x1209   :  { %3718 = vmatprep.subr.mxu1 %v2950_v3 }
0x120a   :  { %3719 = vmatpush3.msra.mxu1 %v2950_v3 }
0x120b   :  { %3720 = vmatprep.subr.mxu1 %v2949_v37 }
0x120c   :  { %3721 = vmatpush3.msra.mxu1 %v2949_v37 }
0x120d   :  { %3722 = vmatprep.subr.mxu1 %v2948_v4 }
0x120e   :  { %3723 = vmatpush3.msra.mxu1 %v2948_v4 }
0x121e   :  { %v3707_v40 = vpop.f32.mrf.mxu0 }
0x1220   :  { %v2874_v46 = vpop.f32.mrf.mxu0 }
0x12bf   :  { %v3672_v41 = vpop.f32.mrf.mxu1 }
0x12c0   :  { %v2880_v44 = vadd.f32 %v3707_v40, %v3672_v41 }
0x12c1   :  { %v2799_v47 = vpop.f32.mrf.mxu1 }
0x12c2   :  { %v2892_v49 = vadd.f32 %v3231_v53, %v2880_v44  ;;  %v2875_v1 = vadd.f32 %v2874_v46, %v2799_v47  ;;  %v3045_v44 = vld [vmem:[#allocation16 + $0x98] sm:$0xff]  ;;  %v3044_v46 = vld [vmem:[#allocation16 + $0x90] sm:$0xff]  ;;  %v3043_v47 = vld [vmem:[#allocation16 + $0x88] sm:$0xff] }
0x12c3   :  { %3767 = vmatprep.subr.mxu0 %v3045_v44 }
0x12c4   :  { %v2891_v50 = vadd.f32 %v3231_v53, %v2875_v1  ;;  %v2894_v26 = vadd.f32 %v2892_v49, %v4477_v7  ;;  %3768 = vmatpush3.msra.mxu0 %v3045_v44  ;;  %v3042_v49 = vld [vmem:[#allocation16 + $0x80] sm:$0xff]  ;;  %v3237_v1 = vld [vmem:[%s4605_s15 + $0x1] ss:$0 sm:$0xff] }
0x12c5   :  { %3769 = vmatprep.subr.mxu0 %v3044_v46 }
0x12c6   :  { %2901 = vadd.xlane.f32.xlu0 %v2894_v26  ;;  %v2893_v52 = vadd.f32 %v2891_v50, %v4473_v63  ;;  %3770 = vmatpush3.msra.mxu0 %v3044_v46 }
0x12c7   :  { %3771 = vmatprep.subr.mxu0 %v3043_v47 }
0x12c8   :  { %2899 = vadd.xlane.f32.xlu1 %v2893_v52  ;;  %3772 = vmatpush3.msra.mxu0 %v3043_v47 }
0x12c9   :  { %3773 = vmatprep.subr.mxu0 %v3042_v49 }
0x12ca   :  { %3774 = vmatpush3.msra.mxu0 %v3042_v49 }
0x134f   :  { %v2902_v56 = vpop.xlane.xlu0 %2901 }
0x1350   :  { %v2904_v28 = vmul.f32 0.03125, %v2902_v56  ;;  %v3239_v56 = vld [vmem:[%s4607_s17 + $0x1] ss:$0 sm:$0xff] }
0x1351   :  { %v2900_v55 = vpop.xlane.xlu1 %2899 }
0x1352   :  { %v2906_v48 = vsub.f32 %v2894_v26, %v2904_v28  ;;  %v2903_v57 = vmul.f32 0.03125, %v2900_v55 }
0x1354   :  { %v2905_v60 = vsub.f32 %v2893_v52, %v2903_v57  ;;  %v4553_v7 = vmul.f32 %v4448_v59, %v2906_v48 }
0x1356   :  { %v2910_v63 = vmul.f32 %v4553_v7, %v4553_v7  ;;  %v4558_v61 = vmul.f32 %v4448_v59, %v2905_v60  ;;  %v2947_v59 = vld [vmem:[#allocation14 + $0xb8] sm:$0xff] }
0x1357   :  { %3724 = vmatprep.subr.mxu1 %v2947_v59 }
0x1358   :  { %2913 = vadd.xlane.f32.xlu0 %v2910_v63  ;;  %v2909_v62 = vmul.f32 %v4558_v61, %v4558_v61  ;;  %3725 = vmatpush3.msra.mxu1 %v2947_v59  ;;  %v3853_v59 = vld [vmem:[#allocation5] ss:$0 sm:$0xff] }
0x1359   :  { %3726 = vmatprep.subr.mxu1 %v2946_v29 }
0x135a   :  { %2911 = vadd.xlane.f32.xlu1 %v2909_v62  ;;  %3727 = vmatpush3.msra.mxu1 %v2946_v29 }
0x135b   :  { %3728 = vmatprep.subr.mxu1 %v2945_v19 }
0x135c   :  { %3729 = vmatpush3.msra.mxu1 %v2945_v19 }
0x135d   :  { %3730 = vmatprep.subr.mxu1 %v2944_v5 }
0x135e   :  { %3731 = vmatpush3.msra.mxu1 %v2944_v5 }
0x135f   :  { %3732 = vmatprep.subr.mxu1 %v2943_v6 }
0x1360   :  { %3733 = vmatpush3.msra.mxu1 %v2943_v6 }
0x1361   :  { %3734 = vmatprep.subr.mxu1 %v2942_v51 }
0x1362   :  { %3735 = vmatpush3.msra.mxu1 %v2942_v51 }
0x1363   :  { %3736 = vmatprep.subr.mxu1 %v2941_v8 }
0x1364   :  { %3737 = vmatpush3.msra.mxu1 %v2941_v8 }
0x1365   :  { %3738 = vmatprep.subr.mxu1 %v2940_v10 }
0x1366   :  { %3739 = vmatpush3.msra.mxu1 %v2940_v10 }
0x13e1   :  { %v2914_v23 = vpop.xlane.xlu0 %2913 }
0x13e2   :  { %v2916_v24 = vmul.f32 0.03125, %v2914_v23 }
0x13e3   :  { %v2912_v25 = vpop.xlane.xlu1 %2911 }
0x13e4   :  { %v2918_v31 = vadd.f32 1e-08, %v2916_v24  ;;  %v2915_v27 = vmul.f32 0.03125, %v2912_v25 }
0x13e6   :  { %3844 = vrsqrt.f32 %v2918_v31  ;;  %v2917_v38 = vadd.f32 1e-08, %v2915_v27 }
0x13e8   :  { %3846 = vrsqrt.f32 %v2917_v38 }
0x13f3   :  { %v3845_v43 = vpop.eup %3844 }
0x13f4   :  { %v2922_v33 = vmul.f32 %v3845_v43, %v4553_v7 }
0x13f5   :  { %v3847_v34 = vpop.eup %3846 }
0x13f6   :  { %v2921_v35 = vmul.f32 %v3847_v34, %v4558_v61  ;;  %v2930_v36 = vmul.f32 %v3234_v9, %v2922_v33 }
0x13f8   :  { %v2929_v40 = vmul.f32 %v3234_v9, %v2921_v35  ;;  %v2938_v53 = vadd.f32 %v3235_v32, %v2930_v36 }
0x13fa   :  { %v2937_v41 = vadd.f32 %v3235_v32, %v2929_v40 }
0x13fc   :  { %3740 = vmatprep.mubr.f32.mxu1 %v2937_v41 }
0x13fd   :  { %3741 = vmatmul.mubr.f32.vlgmr.msra.gmra.mxu1 %v2938_v53 }
0x14bd   :  { %v3742_v50 = vpop.f32.mrf.mxu1 }
0x14be   :  { %v3036_v26 = vadd.f32 %v3742_v50, %v3237_v1 }
0x14bf   :  { %v3030_v52 = vpop.f32.mrf.mxu1 }
0x14c0   :  { %v3031_v30 = vadd.f32 %v3237_v1, %v3030_v52  ;;  %v3040_v54 = vmax.f32 %v3036_v26, 0.0 }
0x14c2   :  { %v3039_v39 = vmax.f32 %v3031_v30, 0.0 }
0x14c4   :  { %3775 = vmatprep.mubr.f32.mxu0 %v3039_v39 }
0x14c5   :  { %3776 = vmatmul.mubr.f32.vlgmr.msra.gmra.mxu0 %v3040_v54 }
0x1585   :  { %v3777_v28 = vpop.f32.mrf.mxu0 }
0x1586   :  { %v3138_v55 = vadd.f32 %v3777_v28, %v3239_v56 }
0x1587   :  { %v3132_v48 = vpop.f32.mrf.mxu0 }
0x1588   :  { %v3142_v57 = vadd.f32 %v3138_v55, %v2938_v53  ;;  %v3133_v60 = vadd.f32 %v3239_v56, %v3132_v48 }
0x158a   :  { %v3141_v7 = vadd.f32 %v3133_v60, %v2937_v41  ;;  %v3144_v63 = vmul.f32 %v3142_v57, %v4257_v45 }
0x158c   :  { %3149 = vadd.xlane.f32.xlu0 %v3144_v63  ;;  %v3143_v61 = vmul.f32 %v3141_v7, %v4250_v42 }
0x158e   :  { %3147 = vadd.xlane.f32.xlu1 %v3143_v61 }
0x1615   :  { %v3150_v62 = vpop.xlane.xlu0 %3149 }
0x1616   :  { %v3152_v0 = vmul.f32 0.03125, %v3150_v62 }
0x1617   :  { %v3148_v2 = vpop.xlane.xlu1 %3147 }
0x1618   :  { %v3154_v3 = vsub.f32 %v3144_v63, %v3152_v0  ;;  %v3151_v37 = vmul.f32 0.03125, %v3148_v2 }
0x161a   :  { %v3153_v4 = vsub.f32 %v3143_v61, %v3151_v37  ;;  %v3156_v29 = vmul.f32 %v3853_v59, %v3154_v3 }
0x161c   :  { %v3158_v19 = vmul.f32 %v3156_v29, %v3156_v29  ;;  %v3155_v5 = vmul.f32 %v3853_v59, %v3153_v4 }
0x161e   :  { %3161 = vadd.xlane.f32.xlu0 %v3158_v19  ;;  %v3157_v6 = vmul.f32 %v3155_v5, %v3155_v5 }
0x1620   :  { %3159 = vadd.xlane.f32.xlu1 %v3157_v6 }
0x16a7   :  { %v3162_v51 = vpop.xlane.xlu0 %3161 }
0x16a8   :  { %v3164_v8 = vmul.f32 0.03125, %v3162_v51 }
0x16a9   :  { %v3160_v45 = vpop.xlane.xlu1 %3159 }
0x16aa   :  { %v3166_v10 = vadd.f32 1e-08, %v3164_v8  ;;  %v3163_v11 = vmul.f32 0.03125, %v3160_v45 }
0x16ac   :  { %3848 = vrsqrt.f32 %v3166_v10  ;;  %v3165_v42 = vadd.f32 1e-08, %v3163_v11 }
0x16ae   :  { %3850 = vrsqrt.f32 %v3165_v42 }
0x16b9   :  { %v3849_v12 = vpop.eup %3848 }
0x16ba   :  { %v3170_v13 = vmul.f32 %v3849_v12, %v3156_v29 }
0x16bb   :  { %v3851_v14 = vpop.eup %3850 }
0x16bc   :  { %v3169_v16 = vmul.f32 %v3851_v14, %v3155_v5  ;;  %v3178_v17 = vmul.f32 %v3240_v58, %v3170_v13 }
0x16be   :  { %v3177_v18 = vmul.f32 %v3240_v58, %v3169_v16  ;;  %v3186_v20 = vadd.f32 %v3241_v15, %v3178_v17 }
0x16c0   :  { %v3185_v21 = vadd.f32 %v3241_v15, %v3177_v18  ;;  %3188 = vst [vmem:[#allocation17 + $0x8] sm:$0xff] %v3186_v20 }
0x16c2   :  { %3187 = vst [vmem:[#allocation17] sm:$0xff] %v3185_v21 }
0x16c3   :  { %4045 = shalt.err (!%p4042_p7)
}
0x16c4   :  { %3200 = dma.vmem_to_hbm [thread:$0]  %s3195_s30, 256, %s4610_s20, [#allocation4], %s4075_s27, %s4075_s27, %s4076_s21  }
0x16c5   :  { %4064 = dma.done.wait [#allocation4], 256  }
0x16c6   :  { %4065 = vsyncadd [#allocation4], 4294967040 }
0x16c7   :  { %3204 = vsyncpa [#allocation3], 1 }
0x16c8   :  { %3205 = vsyncpa [#allocation6], 1 }
0x16c9   :  { %3206 = vsyncpa [#allocation9], 1 }
0x16ca   :  { %3207 = vsyncpa [#allocation12], 1 }
0x16cb   :  { %3208 = vsyncpa [#allocation15], 1 }
0x16cc   :  { %3209 = vsyncpa [#allocation4], 1 }

</bundles_post_ra>
